<compile_context>
chip_gen: v7x
topology: tpu7x:2x2x1
jax: 0.10.0
libtpu: 0.0.40
codegen_flags: <defaults>
</compile_context>

<pallas_src>
import functools

import jax
import jax.numpy as jnp
from jax import lax
from jax.experimental import pallas as pl
from jax.experimental.pallas import tpu as pltpu

BN_EPS = 1e-5


def _simsiam_branch_kernel(ids_ref,                     # SMEM scalar prefetch (2, seq*rows)
                           emb_hbm_ref,                 # HBM (vocab, embDim)
                           wih_ref, whh_ref, brnn_ref,
                           wproj_ref, bproj_ref,
                           wp1_ref, g2_ref, b2_ref, wp2_ref, bp2_ref,
                           out_ref,
                           emb_vmem, gather_sem, x_scratch,
                           *, seq, rows):
    """One SimSiam branch per grid step: gather -> RNN -> projector -> predictor."""
    branch = pl.program_id(0)
    n_tok = seq * rows

    # ---- 1) Fused embedding gather: one small async DMA per token row. ----
    # All scalar (SMEM) reads happen before any DMA wait; all copies share one
    # DMA semaphore and are in flight concurrently.
    copies = []
    for r in range(n_tok):
        tok = ids_ref[branch, r]
        cp = pltpu.make_async_copy(emb_hbm_ref.at[pl.ds(tok, 1), :],
                                   emb_vmem.at[pl.ds(r, 1), :],
                                   gather_sem)
        cp.start()
        copies.append(cp)
    for cp in copies:
        cp.wait()

    # ---- 2) Input projection hoisted out of the recurrence. ----------------
    # One MXU push for all timesteps, RNN bias (b_ih + b_hh) folded in.
    # Spilled to VMEM scratch so it doesn't blow the vreg budget at real dims;
    # the per-step reloads use vld slots that are idle under the serial chain.
    x_scratch[...] = (
        jnp.dot(emb_vmem[...], wih_ref[...], preferred_element_type=jnp.float32)
        + brnn_ref[...])

    # ---- 3) Unrolled vanilla-RNN recurrence (h lives in vregs). ------------
    # TODO(synk): hold W_hh resident on the MXU (pltpu.matmul_push_rhs /
    # matmul_acc_lhs / matmul_pop) to avoid re-staging it every timestep.
    whh = whh_ref[...]
    hid = whh.shape[0]
    h = jnp.zeros((rows, hid), jnp.float32)
    for t in range(seq):
        x_t = x_scratch[t * rows:(t + 1) * rows, :]       # static, sublane-aligned
        h = jnp.tanh(x_t + jnp.dot(h, whh, preferred_element_type=jnp.float32))

    # ---- 4) Projector / predictor. ------------------------------------------
    def batchnorm(v):
        # Training-mode BN over this branch's rows (biased variance, eps inside
        # rsqrt) using XLU sublane reductions — no averaging matmul needed.
        mu = jnp.mean(v, axis=0, keepdims=True)
        var = jnp.mean((v - mu) ** 2, axis=0, keepdims=True)
        return (v - mu) * lax.rsqrt(var + BN_EPS)

    # projector: Linear(hid, proj) + BatchNorm1d(proj, affine=False)
    z = jnp.dot(h, wproj_ref[...], preferred_element_type=jnp.float32) + bproj_ref[...]
    proj = batchnorm(z)

    # predictor: Linear(proj, pred, bias=False) + BatchNorm1d(pred) + ReLU + Linear(pred, proj)
    p = jnp.dot(proj, wp1_ref[...], preferred_element_type=jnp.float32)
    p = batchnorm(p) * g2_ref[...] + b2_ref[...]
    p = jnp.maximum(p, 0.0)
    pred = jnp.dot(p, wp2_ref[...], preferred_element_type=jnp.float32) + bp2_ref[...]

    # Lane-dense single output slab: [pred | proj] -> (rows, 2*proj_dim).
    out_ref[...] = jnp.concatenate([pred, proj], axis=1)


def _replicated_spec(shape):
    """Full-array VMEM block, same block for every grid step (weights/biases)."""
    zeros = (0,) * len(shape)
    return pl.BlockSpec(shape, lambda b, ids: zeros)


def nlp_simsiam_forward(x1, x2, params):
    """Full NLPSimSiam.forward: returns (pred1, pred2, proj1.detach(), proj2.detach())."""
    seq, batch = x1.shape
    emb_table = params["emb_table"]
    _, emb_dim = emb_table.shape
    hid_dim = params["w_hh_t"].shape[0]
    proj_dim = params["w_proj_t"].shape[1]

    # Keep the output slab lane-dense / sublane-aligned (unmasked vst).
    assert batch % 8 == 0, "batch must be a multiple of 8 (f32 sublane tile)"
    assert (2 * proj_dim) % 128 == 0, "2*projDim must be a multiple of 128 (lane-dense slab)"

    # Token ids for both branches -> scalar prefetch (SMEM). Row r of branch b
    # corresponds to timestep r // batch, batch column r % batch.
    ids = jnp.stack([x1.reshape(-1), x2.reshape(-1)], axis=0).astype(jnp.int32)

    weight_args = (
        params["w_ih_t"], params["w_hh_t"], params["b_rnn"],
        params["w_proj_t"], params["b_proj"],
        params["w_pred1_t"], params["bn2_gamma"], params["bn2_beta"],
        params["w_pred2_t"], params["b_pred2"],
    )

    kernel = functools.partial(_simsiam_branch_kernel, seq=seq, rows=batch)

    grid_spec = pltpu.PrefetchScalarGridSpec(
        num_scalar_prefetch=1,
        grid=(2,),                                   # one SimSiam branch per grid step / TC
        in_specs=[pl.BlockSpec(memory_space=pl.ANY)]  # embedding table stays in HBM
                 + [_replicated_spec(w.shape) for w in weight_args],
        out_specs=pl.BlockSpec((batch, 2 * proj_dim), lambda b, ids: (b, 0)),
        scratch_shapes=[
            pltpu.VMEM((seq * batch, emb_dim), jnp.float32),   # gathered embeddings
            pltpu.SemaphoreType.DMA(()),                       # shared gather DMA sem
            pltpu.VMEM((seq * batch, hid_dim), jnp.float32),   # hoisted input projection
        ],
    )

    # TODO(synk): at real NLPSimSiam dims, cast matmul operands to bf16 (keep
    # f32 accumulation/elementwise), tile the input projection over a seq grid
    # axis ("arbitrary", h persistent in scratch) and set an explicit
    # vmem_limit_bytes budget for v7x's 64 MiB VMEM.
    out = pl.pallas_call(
        kernel,
        out_shape=jax.ShapeDtypeStruct((2 * batch, 2 * proj_dim), jnp.float32),
        grid_spec=grid_spec,
        compiler_params=pltpu.CompilerParams(
            dimension_semantics=("parallel",)),
    )(ids, emb_table, *weight_args)

    pred = out[:, :proj_dim]
    proj = out[:, proj_dim:]
    pred1, pred2 = pred[:batch], pred[batch:]
    proj1, proj2 = proj[:batch], proj[batch:]
    return pred1, pred2, lax.stop_gradient(proj1), lax.stop_gradient(proj2)


def reference_branch(emb, params):
    """Pure-JAX reference for correctness checking (single branch)."""
    seq, batch, _ = emb.shape
    hid_dim = params["w_ih_t"].shape[1]
    h = jnp.zeros((batch, hid_dim), jnp.float32)
    for t in range(seq):
        h = jnp.tanh(emb[t] @ params["w_ih_t"] + h @ params["w_hh_t"] + params["b_rnn"])
    z = h @ params["w_proj_t"] + params["b_proj"]
    mu = z.mean(0, keepdims=True)
    var = ((z - mu) ** 2).mean(0, keepdims=True)
    proj = (z - mu) / jnp.sqrt(var + BN_EPS)
    p = proj @ params["w_pred1_t"]
    mu2 = p.mean(0, keepdims=True)
    v2 = ((p - mu2) ** 2).mean(0, keepdims=True)
    p = (p - mu2) / jnp.sqrt(v2 + BN_EPS) * params["bn2_gamma"] + params["bn2_beta"]
    p = jnp.maximum(p, 0.0)
    pred = p @ params["w_pred2_t"] + params["b_pred2"]
    return pred, proj


def make_params(key, voc_dim, emb_dim, hid_dim, proj_dim, pred_dim):
    ks = jax.random.split(key, 10)
    scale = 0.1
    params = {
        # nn.Embedding(vocDim, embDim)
        "emb_table": scale * jax.random.normal(ks[0], (voc_dim, emb_dim), jnp.float32),
        # nn.RNN(embDim, hidDim): W_ih (hid, emb), W_hh (hid, hid), b_ih+b_hh -> stored transposed
        "w_ih_t": scale * jax.random.normal(ks[1], (emb_dim, hid_dim), jnp.float32),
        "w_hh_t": scale * jax.random.normal(ks[2], (hid_dim, hid_dim), jnp.float32),
        "b_rnn": scale * jax.random.normal(ks[3], (1, hid_dim), jnp.float32),
        # projector: Linear(hidDim, projDim) (+ BN affine=False -> no params)
        "w_proj_t": scale * jax.random.normal(ks[4], (hid_dim, proj_dim), jnp.float32),
        "b_proj": scale * jax.random.normal(ks[5], (1, proj_dim), jnp.float32),
        # predictor: Linear(projDim, predDim, bias=False)
        "w_pred1_t": scale * jax.random.normal(ks[6], (proj_dim, pred_dim), jnp.float32),
        # BatchNorm1d(predDim) affine params (PyTorch default init: gamma=1, beta=0)
        "bn2_gamma": jnp.ones((1, pred_dim), jnp.float32),
        "bn2_beta": jnp.zeros((1, pred_dim), jnp.float32),
        # Linear(predDim, projDim)
        "w_pred2_t": scale * jax.random.normal(ks[7], (pred_dim, proj_dim), jnp.float32),
        "b_pred2": scale * jax.random.normal(ks[8], (1, proj_dim), jnp.float32),
    }
    return params


if __name__ == "__main__":
    # Small shapes consistent with the module (defaults scaled down).
    SEQ, BATCH = 8, 8
    VOC, EMB, HID, PROJ, PRED = 64, 128, 128, 64, 64

    key = jax.random.PRNGKey(0)
    k_params, k_x1, k_x2 = jax.random.split(key, 3)
    params = make_params(k_params, VOC, EMB, HID, PROJ, PRED)

    x1 = jax.random.randint(k_x1, (SEQ, BATCH), 0, VOC, dtype=jnp.int32)
    x2 = jax.random.randint(k_x2, (SEQ, BATCH), 0, VOC, dtype=jnp.int32)

    pred1, pred2, proj1, proj2 = jax.block_until_ready(
        nlp_simsiam_forward(x1, x2, params))

    # Verify against a pure-JAX reference (each branch normalized independently).
    emb1 = jnp.take(params["emb_table"], x1, axis=0)
    emb2 = jnp.take(params["emb_table"], x2, axis=0)
    ref_pred1, ref_proj1 = reference_branch(emb1, params)
    ref_pred2, ref_proj2 = reference_branch(emb2, params)

    import numpy as np
    np.testing.assert_allclose(np.asarray(pred1), np.asarray(ref_pred1), rtol=1e-4, atol=1e-4)
    np.testing.assert_allclose(np.asarray(pred2), np.asarray(ref_pred2), rtol=1e-4, atol=1e-4)
    np.testing.assert_allclose(np.asarray(proj1), np.asarray(ref_proj1), rtol=1e-4, atol=1e-4)
    np.testing.assert_allclose(np.asarray(proj2), np.asarray(ref_proj2), rtol=1e-4, atol=1e-4)

    print("KERNEL_OK")
</pallas_src>

<mosaic_0001>
module attributes {stable_mosaic.version = 11 : i64} {
  func.func @_simsiam_branch_kernel(%arg0: i32, %arg1: memref<2x64xi32, #tpu.memory_space<smem>>, %arg2: memref<64x128xf32, #tpu.memory_space<any>>, %arg3: memref<128x128xf32, #tpu.memory_space<vmem>>, %arg4: memref<128x128xf32, #tpu.memory_space<vmem>>, %arg5: memref<1x128xf32, #tpu.memory_space<vmem>>, %arg6: memref<128x64xf32, #tpu.memory_space<vmem>>, %arg7: memref<1x64xf32, #tpu.memory_space<vmem>>, %arg8: memref<64x64xf32, #tpu.memory_space<vmem>>, %arg9: memref<1x64xf32, #tpu.memory_space<vmem>>, %arg10: memref<1x64xf32, #tpu.memory_space<vmem>>, %arg11: memref<64x64xf32, #tpu.memory_space<vmem>>, %arg12: memref<1x64xf32, #tpu.memory_space<vmem>>, %arg13: memref<8x128xf32, #tpu.memory_space<vmem>>, %arg14: memref<64x128xf32, #tpu.memory_space<vmem>>, %arg15: memref<!tpu.dma_semaphore, #tpu.memory_space<semaphore_mem>>, %arg16: memref<64x128xf32, #tpu.memory_space<vmem>>) attributes {dimension_semantics = [#tpu.dimension_semantics<parallel>], iteration_bounds = array<i64: 2>, scalar_prefetch = 1 : i64, scratch_operands = 3 : i64, tpu.core_type = #tpu.core_type<tc>, window_params = [{}, {pipeline_mode = #tpu.pipeline_mode<synchronous>, transform_indices = @transform_1, window_bounds = array<i64: 128, 128>}, {pipeline_mode = #tpu.pipeline_mode<synchronous>, transform_indices = @transform_2, window_bounds = array<i64: 128, 128>}, {pipeline_mode = #tpu.pipeline_mode<synchronous>, transform_indices = @transform_3, window_bounds = array<i64: 1, 128>}, {pipeline_mode = #tpu.pipeline_mode<synchronous>, transform_indices = @transform_4, window_bounds = array<i64: 128, 64>}, {pipeline_mode = #tpu.pipeline_mode<synchronous>, transform_indices = @transform_5, window_bounds = array<i64: 1, 64>}, {pipeline_mode = #tpu.pipeline_mode<synchronous>, transform_indices = @transform_6, window_bounds = array<i64: 64, 64>}, {pipeline_mode = #tpu.pipeline_mode<synchronous>, transform_indices = @transform_7, window_bounds = array<i64: 1, 64>}, {pipeline_mode = #tpu.pipeline_mode<synchronous>, transform_indices = @transform_8, window_bounds = array<i64: 1, 64>}, {pipeline_mode = #tpu.pipeline_mode<synchronous>, transform_indices = @transform_9, window_bounds = array<i64: 64, 64>}, {pipeline_mode = #tpu.pipeline_mode<synchronous>, transform_indices = @transform_10, window_bounds = array<i64: 1, 64>}, {transform_indices = @transform_11, window_bounds = array<i64: 8, 128>}]} {
    %0 = arith.index_cast %arg0 : i32 to index
    %c0 = arith.constant 0 : index
    %1 = memref.load %arg1[%0, %c0] : memref<2x64xi32, #tpu.memory_space<smem>>
    %c0_i32 = arith.constant 0 : i32
    %2 = tpu.memref_slice %arg2[%1, %c0_i32] : memref<64x128xf32, #tpu.memory_space<any>> -> memref<1x128xf32, #tpu.memory_space<any>>
    %c0_i32_0 = arith.constant 0 : i32
    %c0_i32_1 = arith.constant 0 : i32
    %3 = tpu.memref_slice %arg14[%c0_i32_0, %c0_i32_1] : memref<64x128xf32, #tpu.memory_space<vmem>> -> memref<1x128xf32, #tpu.memory_space<vmem>>
    tpu.enqueue_dma source(%2 : memref<1x128xf32, #tpu.memory_space<any>>) target(%3 : memref<1x128xf32, #tpu.memory_space<vmem>>) target_semaphore(%arg15 : memref<!tpu.dma_semaphore, #tpu.memory_space<semaphore_mem>>)
    %4 = arith.index_cast %arg0 : i32 to index
    %c1 = arith.constant 1 : index
    %5 = memref.load %arg1[%4, %c1] : memref<2x64xi32, #tpu.memory_space<smem>>
    %c0_i32_2 = arith.constant 0 : i32
    %6 = tpu.memref_slice %arg2[%5, %c0_i32_2] : memref<64x128xf32, #tpu.memory_space<any>> -> memref<1x128xf32, #tpu.memory_space<any>>
    %c1_i32 = arith.constant 1 : i32
    %c0_i32_3 = arith.constant 0 : i32
    %7 = tpu.memref_slice %arg14[%c1_i32, %c0_i32_3] : memref<64x128xf32, #tpu.memory_space<vmem>> -> memref<1x128xf32, #tpu.memory_space<vmem>>
    tpu.enqueue_dma source(%6 : memref<1x128xf32, #tpu.memory_space<any>>) target(%7 : memref<1x128xf32, #tpu.memory_space<vmem>>) target_semaphore(%arg15 : memref<!tpu.dma_semaphore, #tpu.memory_space<semaphore_mem>>)
    %8 = arith.index_cast %arg0 : i32 to index
    %c2 = arith.constant 2 : index
    %9 = memref.load %arg1[%8, %c2] : memref<2x64xi32, #tpu.memory_space<smem>>
    %c0_i32_4 = arith.constant 0 : i32
    %10 = tpu.memref_slice %arg2[%9, %c0_i32_4] : memref<64x128xf32, #tpu.memory_space<any>> -> memref<1x128xf32, #tpu.memory_space<any>>
    %c2_i32 = arith.constant 2 : i32
    %c0_i32_5 = arith.constant 0 : i32
    %11 = tpu.memref_slice %arg14[%c2_i32, %c0_i32_5] : memref<64x128xf32, #tpu.memory_space<vmem>> -> memref<1x128xf32, #tpu.memory_space<vmem>>
    tpu.enqueue_dma source(%10 : memref<1x128xf32, #tpu.memory_space<any>>) target(%11 : memref<1x128xf32, #tpu.memory_space<vmem>>) target_semaphore(%arg15 : memref<!tpu.dma_semaphore, #tpu.memory_space<semaphore_mem>>)
    %12 = arith.index_cast %arg0 : i32 to index
    %c3 = arith.constant 3 : index
    %13 = memref.load %arg1[%12, %c3] : memref<2x64xi32, #tpu.memory_space<smem>>
    %c0_i32_6 = arith.constant 0 : i32
    %14 = tpu.memref_slice %arg2[%13, %c0_i32_6] : memref<64x128xf32, #tpu.memory_space<any>> -> memref<1x128xf32, #tpu.memory_space<any>>
    %c3_i32 = arith.constant 3 : i32
    %c0_i32_7 = arith.constant 0 : i32
    %15 = tpu.memref_slice %arg14[%c3_i32, %c0_i32_7] : memref<64x128xf32, #tpu.memory_space<vmem>> -> memref<1x128xf32, #tpu.memory_space<vmem>>
    tpu.enqueue_dma source(%14 : memref<1x128xf32, #tpu.memory_space<any>>) target(%15 : memref<1x128xf32, #tpu.memory_space<vmem>>) target_semaphore(%arg15 : memref<!tpu.dma_semaphore, #tpu.memory_space<semaphore_mem>>)
    %16 = arith.index_cast %arg0 : i32 to index
    %c4 = arith.constant 4 : index
    %17 = memref.load %arg1[%16, %c4] : memref<2x64xi32, #tpu.memory_space<smem>>
    %c0_i32_8 = arith.constant 0 : i32
    %18 = tpu.memref_slice %arg2[%17, %c0_i32_8] : memref<64x128xf32, #tpu.memory_space<any>> -> memref<1x128xf32, #tpu.memory_space<any>>
    %c4_i32 = arith.constant 4 : i32
    %c0_i32_9 = arith.constant 0 : i32
    %19 = tpu.memref_slice %arg14[%c4_i32, %c0_i32_9] : memref<64x128xf32, #tpu.memory_space<vmem>> -> memref<1x128xf32, #tpu.memory_space<vmem>>
    tpu.enqueue_dma source(%18 : memref<1x128xf32, #tpu.memory_space<any>>) target(%19 : memref<1x128xf32, #tpu.memory_space<vmem>>) target_semaphore(%arg15 : memref<!tpu.dma_semaphore, #tpu.memory_space<semaphore_mem>>)
    %20 = arith.index_cast %arg0 : i32 to index
    %c5 = arith.constant 5 : index
    %21 = memref.load %arg1[%20, %c5] : memref<2x64xi32, #tpu.memory_space<smem>>
    %c0_i32_10 = arith.constant 0 : i32
    %22 = tpu.memref_slice %arg2[%21, %c0_i32_10] : memref<64x128xf32, #tpu.memory_space<any>> -> memref<1x128xf32, #tpu.memory_space<any>>
    %c5_i32 = arith.constant 5 : i32
    %c0_i32_11 = arith.constant 0 : i32
    %23 = tpu.memref_slice %arg14[%c5_i32, %c0_i32_11] : memref<64x128xf32, #tpu.memory_space<vmem>> -> memref<1x128xf32, #tpu.memory_space<vmem>>
    tpu.enqueue_dma source(%22 : memref<1x128xf32, #tpu.memory_space<any>>) target(%23 : memref<1x128xf32, #tpu.memory_space<vmem>>) target_semaphore(%arg15 : memref<!tpu.dma_semaphore, #tpu.memory_space<semaphore_mem>>)
    %24 = arith.index_cast %arg0 : i32 to index
    %c6 = arith.constant 6 : index
    %25 = memref.load %arg1[%24, %c6] : memref<2x64xi32, #tpu.memory_space<smem>>
    %c0_i32_12 = arith.constant 0 : i32
    %26 = tpu.memref_slice %arg2[%25, %c0_i32_12] : memref<64x128xf32, #tpu.memory_space<any>> -> memref<1x128xf32, #tpu.memory_space<any>>
    %c6_i32 = arith.constant 6 : i32
    %c0_i32_13 = arith.constant 0 : i32
    %27 = tpu.memref_slice %arg14[%c6_i32, %c0_i32_13] : memref<64x128xf32, #tpu.memory_space<vmem>> -> memref<1x128xf32, #tpu.memory_space<vmem>>
    tpu.enqueue_dma source(%26 : memref<1x128xf32, #tpu.memory_space<any>>) target(%27 : memref<1x128xf32, #tpu.memory_space<vmem>>) target_semaphore(%arg15 : memref<!tpu.dma_semaphore, #tpu.memory_space<semaphore_mem>>)
    %28 = arith.index_cast %arg0 : i32 to index
    %c7 = arith.constant 7 : index
    %29 = memref.load %arg1[%28, %c7] : memref<2x64xi32, #tpu.memory_space<smem>>
    %c0_i32_14 = arith.constant 0 : i32
    %30 = tpu.memref_slice %arg2[%29, %c0_i32_14] : memref<64x128xf32, #tpu.memory_space<any>> -> memref<1x128xf32, #tpu.memory_space<any>>
    %c7_i32 = arith.constant 7 : i32
    %c0_i32_15 = arith.constant 0 : i32
    %31 = tpu.memref_slice %arg14[%c7_i32, %c0_i32_15] : memref<64x128xf32, #tpu.memory_space<vmem>> -> memref<1x128xf32, #tpu.memory_space<vmem>>
    tpu.enqueue_dma source(%30 : memref<1x128xf32, #tpu.memory_space<any>>) target(%31 : memref<1x128xf32, #tpu.memory_space<vmem>>) target_semaphore(%arg15 : memref<!tpu.dma_semaphore, #tpu.memory_space<semaphore_mem>>)
    %32 = arith.index_cast %arg0 : i32 to index
    %c8 = arith.constant 8 : index
    %33 = memref.load %arg1[%32, %c8] : memref<2x64xi32, #tpu.memory_space<smem>>
    %c0_i32_16 = arith.constant 0 : i32
    %34 = tpu.memref_slice %arg2[%33, %c0_i32_16] : memref<64x128xf32, #tpu.memory_space<any>> -> memref<1x128xf32, #tpu.memory_space<any>>
    %c8_i32 = arith.constant 8 : i32
    %c0_i32_17 = arith.constant 0 : i32
    %35 = tpu.memref_slice %arg14[%c8_i32, %c0_i32_17] : memref<64x128xf32, #tpu.memory_space<vmem>> -> memref<1x128xf32, #tpu.memory_space<vmem>>
    tpu.enqueue_dma source(%34 : memref<1x128xf32, #tpu.memory_space<any>>) target(%35 : memref<1x128xf32, #tpu.memory_space<vmem>>) target_semaphore(%arg15 : memref<!tpu.dma_semaphore, #tpu.memory_space<semaphore_mem>>)
    %36 = arith.index_cast %arg0 : i32 to index
    %c9 = arith.constant 9 : index
    %37 = memref.load %arg1[%36, %c9] : memref<2x64xi32, #tpu.memory_space<smem>>
    %c0_i32_18 = arith.constant 0 : i32
    %38 = tpu.memref_slice %arg2[%37, %c0_i32_18] : memref<64x128xf32, #tpu.memory_space<any>> -> memref<1x128xf32, #tpu.memory_space<any>>
    %c9_i32 = arith.constant 9 : i32
    %c0_i32_19 = arith.constant 0 : i32
    %39 = tpu.memref_slice %arg14[%c9_i32, %c0_i32_19] : memref<64x128xf32, #tpu.memory_space<vmem>> -> memref<1x128xf32, #tpu.memory_space<vmem>>
    tpu.enqueue_dma source(%38 : memref<1x128xf32, #tpu.memory_space<any>>) target(%39 : memref<1x128xf32, #tpu.memory_space<vmem>>) target_semaphore(%arg15 : memref<!tpu.dma_semaphore, #tpu.memory_space<semaphore_mem>>)
    %40 = arith.index_cast %arg0 : i32 to index
    %c10 = arith.constant 10 : index
    %41 = memref.load %arg1[%40, %c10] : memref<2x64xi32, #tpu.memory_space<smem>>
    %c0_i32_20 = arith.constant 0 : i32
    %42 = tpu.memref_slice %arg2[%41, %c0_i32_20] : memref<64x128xf32, #tpu.memory_space<any>> -> memref<1x128xf32, #tpu.memory_space<any>>
    %c10_i32 = arith.constant 10 : i32
    %c0_i32_21 = arith.constant 0 : i32
    %43 = tpu.memref_slice %arg14[%c10_i32, %c0_i32_21] : memref<64x128xf32, #tpu.memory_space<vmem>> -> memref<1x128xf32, #tpu.memory_space<vmem>>
    tpu.enqueue_dma source(%42 : memref<1x128xf32, #tpu.memory_space<any>>) target(%43 : memref<1x128xf32, #tpu.memory_space<vmem>>) target_semaphore(%arg15 : memref<!tpu.dma_semaphore, #tpu.memory_space<semaphore_mem>>)
    %44 = arith.index_cast %arg0 : i32 to index
    %c11 = arith.constant 11 : index
    %45 = memref.load %arg1[%44, %c11] : memref<2x64xi32, #tpu.memory_space<smem>>
    %c0_i32_22 = arith.constant 0 : i32
    %46 = tpu.memref_slice %arg2[%45, %c0_i32_22] : memref<64x128xf32, #tpu.memory_space<any>> -> memref<1x128xf32, #tpu.memory_space<any>>
    %c11_i32 = arith.constant 11 : i32
    %c0_i32_23 = arith.constant 0 : i32
    %47 = tpu.memref_slice %arg14[%c11_i32, %c0_i32_23] : memref<64x128xf32, #tpu.memory_space<vmem>> -> memref<1x128xf32, #tpu.memory_space<vmem>>
    tpu.enqueue_dma source(%46 : memref<1x128xf32, #tpu.memory_space<any>>) target(%47 : memref<1x128xf32, #tpu.memory_space<vmem>>) target_semaphore(%arg15 : memref<!tpu.dma_semaphore, #tpu.memory_space<semaphore_mem>>)
    %48 = arith.index_cast %arg0 : i32 to index
    %c12 = arith.constant 12 : index
    %49 = memref.load %arg1[%48, %c12] : memref<2x64xi32, #tpu.memory_space<smem>>
    %c0_i32_24 = arith.constant 0 : i32
    %50 = tpu.memref_slice %arg2[%49, %c0_i32_24] : memref<64x128xf32, #tpu.memory_space<any>> -> memref<1x128xf32, #tpu.memory_space<any>>
    %c12_i32 = arith.constant 12 : i32
    %c0_i32_25 = arith.constant 0 : i32
    %51 = tpu.memref_slice %arg14[%c12_i32, %c0_i32_25] : memref<64x128xf32, #tpu.memory_space<vmem>> -> memref<1x128xf32, #tpu.memory_space<vmem>>
    tpu.enqueue_dma source(%50 : memref<1x128xf32, #tpu.memory_space<any>>) target(%51 : memref<1x128xf32, #tpu.memory_space<vmem>>) target_semaphore(%arg15 : memref<!tpu.dma_semaphore, #tpu.memory_space<semaphore_mem>>)
    %52 = arith.index_cast %arg0 : i32 to index
    %c13 = arith.constant 13 : index
    %53 = memref.load %arg1[%52, %c13] : memref<2x64xi32, #tpu.memory_space<smem>>
    %c0_i32_26 = arith.constant 0 : i32
    %54 = tpu.memref_slice %arg2[%53, %c0_i32_26] : memref<64x128xf32, #tpu.memory_space<any>> -> memref<1x128xf32, #tpu.memory_space<any>>
    %c13_i32 = arith.constant 13 : i32
    %c0_i32_27 = arith.constant 0 : i32
    %55 = tpu.memref_slice %arg14[%c13_i32, %c0_i32_27] : memref<64x128xf32, #tpu.memory_space<vmem>> -> memref<1x128xf32, #tpu.memory_space<vmem>>
    tpu.enqueue_dma source(%54 : memref<1x128xf32, #tpu.memory_space<any>>) target(%55 : memref<1x128xf32, #tpu.memory_space<vmem>>) target_semaphore(%arg15 : memref<!tpu.dma_semaphore, #tpu.memory_space<semaphore_mem>>)
    %56 = arith.index_cast %arg0 : i32 to index
    %c14 = arith.constant 14 : index
    %57 = memref.load %arg1[%56, %c14] : memref<2x64xi32, #tpu.memory_space<smem>>
    %c0_i32_28 = arith.constant 0 : i32
    %58 = tpu.memref_slice %arg2[%57, %c0_i32_28] : memref<64x128xf32, #tpu.memory_space<any>> -> memref<1x128xf32, #tpu.memory_space<any>>
    %c14_i32 = arith.constant 14 : i32
    %c0_i32_29 = arith.constant 0 : i32
    %59 = tpu.memref_slice %arg14[%c14_i32, %c0_i32_29] : memref<64x128xf32, #tpu.memory_space<vmem>> -> memref<1x128xf32, #tpu.memory_space<vmem>>
    tpu.enqueue_dma source(%58 : memref<1x128xf32, #tpu.memory_space<any>>) target(%59 : memref<1x128xf32, #tpu.memory_space<vmem>>) target_semaphore(%arg15 : memref<!tpu.dma_semaphore, #tpu.memory_space<semaphore_mem>>)
    %60 = arith.index_cast %arg0 : i32 to index
    %c15 = arith.constant 15 : index
    %61 = memref.load %arg1[%60, %c15] : memref<2x64xi32, #tpu.memory_space<smem>>
    %c0_i32_30 = arith.constant 0 : i32
    %62 = tpu.memref_slice %arg2[%61, %c0_i32_30] : memref<64x128xf32, #tpu.memory_space<any>> -> memref<1x128xf32, #tpu.memory_space<any>>
    %c15_i32 = arith.constant 15 : i32
    %c0_i32_31 = arith.constant 0 : i32
    %63 = tpu.memref_slice %arg14[%c15_i32, %c0_i32_31] : memref<64x128xf32, #tpu.memory_space<vmem>> -> memref<1x128xf32, #tpu.memory_space<vmem>>
    tpu.enqueue_dma source(%62 : memref<1x128xf32, #tpu.memory_space<any>>) target(%63 : memref<1x128xf32, #tpu.memory_space<vmem>>) target_semaphore(%arg15 : memref<!tpu.dma_semaphore, #tpu.memory_space<semaphore_mem>>)
    %64 = arith.index_cast %arg0 : i32 to index
    %c16 = arith.constant 16 : index
    %65 = memref.load %arg1[%64, %c16] : memref<2x64xi32, #tpu.memory_space<smem>>
    %c0_i32_32 = arith.constant 0 : i32
    %66 = tpu.memref_slice %arg2[%65, %c0_i32_32] : memref<64x128xf32, #tpu.memory_space<any>> -> memref<1x128xf32, #tpu.memory_space<any>>
    %c16_i32 = arith.constant 16 : i32
    %c0_i32_33 = arith.constant 0 : i32
    %67 = tpu.memref_slice %arg14[%c16_i32, %c0_i32_33] : memref<64x128xf32, #tpu.memory_space<vmem>> -> memref<1x128xf32, #tpu.memory_space<vmem>>
    tpu.enqueue_dma source(%66 : memref<1x128xf32, #tpu.memory_space<any>>) target(%67 : memref<1x128xf32, #tpu.memory_space<vmem>>) target_semaphore(%arg15 : memref<!tpu.dma_semaphore, #tpu.memory_space<semaphore_mem>>)
    %68 = arith.index_cast %arg0 : i32 to index
    %c17 = arith.constant 17 : index
    %69 = memref.load %arg1[%68, %c17] : memref<2x64xi32, #tpu.memory_space<smem>>
    %c0_i32_34 = arith.constant 0 : i32
    %70 = tpu.memref_slice %arg2[%69, %c0_i32_34] : memref<64x128xf32, #tpu.memory_space<any>> -> memref<1x128xf32, #tpu.memory_space<any>>
    %c17_i32 = arith.constant 17 : i32
    %c0_i32_35 = arith.constant 0 : i32
    %71 = tpu.memref_slice %arg14[%c17_i32, %c0_i32_35] : memref<64x128xf32, #tpu.memory_space<vmem>> -> memref<1x128xf32, #tpu.memory_space<vmem>>
    tpu.enqueue_dma source(%70 : memref<1x128xf32, #tpu.memory_space<any>>) target(%71 : memref<1x128xf32, #tpu.memory_space<vmem>>) target_semaphore(%arg15 : memref<!tpu.dma_semaphore, #tpu.memory_space<semaphore_mem>>)
    %72 = arith.index_cast %arg0 : i32 to index
    %c18 = arith.constant 18 : index
    %73 = memref.load %arg1[%72, %c18] : memref<2x64xi32, #tpu.memory_space<smem>>
    %c0_i32_36 = arith.constant 0 : i32
    %74 = tpu.memref_slice %arg2[%73, %c0_i32_36] : memref<64x128xf32, #tpu.memory_space<any>> -> memref<1x128xf32, #tpu.memory_space<any>>
    %c18_i32 = arith.constant 18 : i32
    %c0_i32_37 = arith.constant 0 : i32
    %75 = tpu.memref_slice %arg14[%c18_i32, %c0_i32_37] : memref<64x128xf32, #tpu.memory_space<vmem>> -> memref<1x128xf32, #tpu.memory_space<vmem>>
    tpu.enqueue_dma source(%74 : memref<1x128xf32, #tpu.memory_space<any>>) target(%75 : memref<1x128xf32, #tpu.memory_space<vmem>>) target_semaphore(%arg15 : memref<!tpu.dma_semaphore, #tpu.memory_space<semaphore_mem>>)
    %76 = arith.index_cast %arg0 : i32 to index
    %c19 = arith.constant 19 : index
    %77 = memref.load %arg1[%76, %c19] : memref<2x64xi32, #tpu.memory_space<smem>>
    %c0_i32_38 = arith.constant 0 : i32
    %78 = tpu.memref_slice %arg2[%77, %c0_i32_38] : memref<64x128xf32, #tpu.memory_space<any>> -> memref<1x128xf32, #tpu.memory_space<any>>
    %c19_i32 = arith.constant 19 : i32
    %c0_i32_39 = arith.constant 0 : i32
    %79 = tpu.memref_slice %arg14[%c19_i32, %c0_i32_39] : memref<64x128xf32, #tpu.memory_space<vmem>> -> memref<1x128xf32, #tpu.memory_space<vmem>>
    tpu.enqueue_dma source(%78 : memref<1x128xf32, #tpu.memory_space<any>>) target(%79 : memref<1x128xf32, #tpu.memory_space<vmem>>) target_semaphore(%arg15 : memref<!tpu.dma_semaphore, #tpu.memory_space<semaphore_mem>>)
    %80 = arith.index_cast %arg0 : i32 to index
    %c20 = arith.constant 20 : index
    %81 = memref.load %arg1[%80, %c20] : memref<2x64xi32, #tpu.memory_space<smem>>
    %c0_i32_40 = arith.constant 0 : i32
    %82 = tpu.memref_slice %arg2[%81, %c0_i32_40] : memref<64x128xf32, #tpu.memory_space<any>> -> memref<1x128xf32, #tpu.memory_space<any>>
    %c20_i32 = arith.constant 20 : i32
    %c0_i32_41 = arith.constant 0 : i32
    %83 = tpu.memref_slice %arg14[%c20_i32, %c0_i32_41] : memref<64x128xf32, #tpu.memory_space<vmem>> -> memref<1x128xf32, #tpu.memory_space<vmem>>
    tpu.enqueue_dma source(%82 : memref<1x128xf32, #tpu.memory_space<any>>) target(%83 : memref<1x128xf32, #tpu.memory_space<vmem>>) target_semaphore(%arg15 : memref<!tpu.dma_semaphore, #tpu.memory_space<semaphore_mem>>)
    %84 = arith.index_cast %arg0 : i32 to index
    %c21 = arith.constant 21 : index
    %85 = memref.load %arg1[%84, %c21] : memref<2x64xi32, #tpu.memory_space<smem>>
    %c0_i32_42 = arith.constant 0 : i32
    %86 = tpu.memref_slice %arg2[%85, %c0_i32_42] : memref<64x128xf32, #tpu.memory_space<any>> -> memref<1x128xf32, #tpu.memory_space<any>>
    %c21_i32 = arith.constant 21 : i32
    %c0_i32_43 = arith.constant 0 : i32
    %87 = tpu.memref_slice %arg14[%c21_i32, %c0_i32_43] : memref<64x128xf32, #tpu.memory_space<vmem>> -> memref<1x128xf32, #tpu.memory_space<vmem>>
    tpu.enqueue_dma source(%86 : memref<1x128xf32, #tpu.memory_space<any>>) target(%87 : memref<1x128xf32, #tpu.memory_space<vmem>>) target_semaphore(%arg15 : memref<!tpu.dma_semaphore, #tpu.memory_space<semaphore_mem>>)
    %88 = arith.index_cast %arg0 : i32 to index
    %c22 = arith.constant 22 : index
    %89 = memref.load %arg1[%88, %c22] : memref<2x64xi32, #tpu.memory_space<smem>>
    %c0_i32_44 = arith.constant 0 : i32
    %90 = tpu.memref_slice %arg2[%89, %c0_i32_44] : memref<64x128xf32, #tpu.memory_space<any>> -> memref<1x128xf32, #tpu.memory_space<any>>
    %c22_i32 = arith.constant 22 : i32
    %c0_i32_45 = arith.constant 0 : i32
    %91 = tpu.memref_slice %arg14[%c22_i32, %c0_i32_45] : memref<64x128xf32, #tpu.memory_space<vmem>> -> memref<1x128xf32, #tpu.memory_space<vmem>>
    tpu.enqueue_dma source(%90 : memref<1x128xf32, #tpu.memory_space<any>>) target(%91 : memref<1x128xf32, #tpu.memory_space<vmem>>) target_semaphore(%arg15 : memref<!tpu.dma_semaphore, #tpu.memory_space<semaphore_mem>>)
    %92 = arith.index_cast %arg0 : i32 to index
    %c23 = arith.constant 23 : index
    %93 = memref.load %arg1[%92, %c23] : memref<2x64xi32, #tpu.memory_space<smem>>
    %c0_i32_46 = arith.constant 0 : i32
    %94 = tpu.memref_slice %arg2[%93, %c0_i32_46] : memref<64x128xf32, #tpu.memory_space<any>> -> memref<1x128xf32, #tpu.memory_space<any>>
    %c23_i32 = arith.constant 23 : i32
    %c0_i32_47 = arith.constant 0 : i32
    %95 = tpu.memref_slice %arg14[%c23_i32, %c0_i32_47] : memref<64x128xf32, #tpu.memory_space<vmem>> -> memref<1x128xf32, #tpu.memory_space<vmem>>
    tpu.enqueue_dma source(%94 : memref<1x128xf32, #tpu.memory_space<any>>) target(%95 : memref<1x128xf32, #tpu.memory_space<vmem>>) target_semaphore(%arg15 : memref<!tpu.dma_semaphore, #tpu.memory_space<semaphore_mem>>)
    %96 = arith.index_cast %arg0 : i32 to index
    %c24 = arith.constant 24 : index
    %97 = memref.load %arg1[%96, %c24] : memref<2x64xi32, #tpu.memory_space<smem>>
    %c0_i32_48 = arith.constant 0 : i32
    %98 = tpu.memref_slice %arg2[%97, %c0_i32_48] : memref<64x128xf32, #tpu.memory_space<any>> -> memref<1x128xf32, #tpu.memory_space<any>>
    %c24_i32 = arith.constant 24 : i32
    %c0_i32_49 = arith.constant 0 : i32
    %99 = tpu.memref_slice %arg14[%c24_i32, %c0_i32_49] : memref<64x128xf32, #tpu.memory_space<vmem>> -> memref<1x128xf32, #tpu.memory_space<vmem>>
    tpu.enqueue_dma source(%98 : memref<1x128xf32, #tpu.memory_space<any>>) target(%99 : memref<1x128xf32, #tpu.memory_space<vmem>>) target_semaphore(%arg15 : memref<!tpu.dma_semaphore, #tpu.memory_space<semaphore_mem>>)
    %100 = arith.index_cast %arg0 : i32 to index
    %c25 = arith.constant 25 : index
    %101 = memref.load %arg1[%100, %c25] : memref<2x64xi32, #tpu.memory_space<smem>>
    %c0_i32_50 = arith.constant 0 : i32
    %102 = tpu.memref_slice %arg2[%101, %c0_i32_50] : memref<64x128xf32, #tpu.memory_space<any>> -> memref<1x128xf32, #tpu.memory_space<any>>
    %c25_i32 = arith.constant 25 : i32
    %c0_i32_51 = arith.constant 0 : i32
    %103 = tpu.memref_slice %arg14[%c25_i32, %c0_i32_51] : memref<64x128xf32, #tpu.memory_space<vmem>> -> memref<1x128xf32, #tpu.memory_space<vmem>>
    tpu.enqueue_dma source(%102 : memref<1x128xf32, #tpu.memory_space<any>>) target(%103 : memref<1x128xf32, #tpu.memory_space<vmem>>) target_semaphore(%arg15 : memref<!tpu.dma_semaphore, #tpu.memory_space<semaphore_mem>>)
    %104 = arith.index_cast %arg0 : i32 to index
    %c26 = arith.constant 26 : index
    %105 = memref.load %arg1[%104, %c26] : memref<2x64xi32, #tpu.memory_space<smem>>
    %c0_i32_52 = arith.constant 0 : i32
    %106 = tpu.memref_slice %arg2[%105, %c0_i32_52] : memref<64x128xf32, #tpu.memory_space<any>> -> memref<1x128xf32, #tpu.memory_space<any>>
    %c26_i32 = arith.constant 26 : i32
    %c0_i32_53 = arith.constant 0 : i32
    %107 = tpu.memref_slice %arg14[%c26_i32, %c0_i32_53] : memref<64x128xf32, #tpu.memory_space<vmem>> -> memref<1x128xf32, #tpu.memory_space<vmem>>
    tpu.enqueue_dma source(%106 : memref<1x128xf32, #tpu.memory_space<any>>) target(%107 : memref<1x128xf32, #tpu.memory_space<vmem>>) target_semaphore(%arg15 : memref<!tpu.dma_semaphore, #tpu.memory_space<semaphore_mem>>)
    %108 = arith.index_cast %arg0 : i32 to index
    %c27 = arith.constant 27 : index
    %109 = memref.load %arg1[%108, %c27] : memref<2x64xi32, #tpu.memory_space<smem>>
    %c0_i32_54 = arith.constant 0 : i32
    %110 = tpu.memref_slice %arg2[%109, %c0_i32_54] : memref<64x128xf32, #tpu.memory_space<any>> -> memref<1x128xf32, #tpu.memory_space<any>>
    %c27_i32 = arith.constant 27 : i32
    %c0_i32_55 = arith.constant 0 : i32
    %111 = tpu.memref_slice %arg14[%c27_i32, %c0_i32_55] : memref<64x128xf32, #tpu.memory_space<vmem>> -> memref<1x128xf32, #tpu.memory_space<vmem>>
    tpu.enqueue_dma source(%110 : memref<1x128xf32, #tpu.memory_space<any>>) target(%111 : memref<1x128xf32, #tpu.memory_space<vmem>>) target_semaphore(%arg15 : memref<!tpu.dma_semaphore, #tpu.memory_space<semaphore_mem>>)
    %112 = arith.index_cast %arg0 : i32 to index
    %c28 = arith.constant 28 : index
    %113 = memref.load %arg1[%112, %c28] : memref<2x64xi32, #tpu.memory_space<smem>>
    %c0_i32_56 = arith.constant 0 : i32
    %114 = tpu.memref_slice %arg2[%113, %c0_i32_56] : memref<64x128xf32, #tpu.memory_space<any>> -> memref<1x128xf32, #tpu.memory_space<any>>
    %c28_i32 = arith.constant 28 : i32
    %c0_i32_57 = arith.constant 0 : i32
    %115 = tpu.memref_slice %arg14[%c28_i32, %c0_i32_57] : memref<64x128xf32, #tpu.memory_space<vmem>> -> memref<1x128xf32, #tpu.memory_space<vmem>>
    tpu.enqueue_dma source(%114 : memref<1x128xf32, #tpu.memory_space<any>>) target(%115 : memref<1x128xf32, #tpu.memory_space<vmem>>) target_semaphore(%arg15 : memref<!tpu.dma_semaphore, #tpu.memory_space<semaphore_mem>>)
    %116 = arith.index_cast %arg0 : i32 to index
    %c29 = arith.constant 29 : index
    %117 = memref.load %arg1[%116, %c29] : memref<2x64xi32, #tpu.memory_space<smem>>
    %c0_i32_58 = arith.constant 0 : i32
    %118 = tpu.memref_slice %arg2[%117, %c0_i32_58] : memref<64x128xf32, #tpu.memory_space<any>> -> memref<1x128xf32, #tpu.memory_space<any>>
    %c29_i32 = arith.constant 29 : i32
    %c0_i32_59 = arith.constant 0 : i32
    %119 = tpu.memref_slice %arg14[%c29_i32, %c0_i32_59] : memref<64x128xf32, #tpu.memory_space<vmem>> -> memref<1x128xf32, #tpu.memory_space<vmem>>
    tpu.enqueue_dma source(%118 : memref<1x128xf32, #tpu.memory_space<any>>) target(%119 : memref<1x128xf32, #tpu.memory_space<vmem>>) target_semaphore(%arg15 : memref<!tpu.dma_semaphore, #tpu.memory_space<semaphore_mem>>)
    %120 = arith.index_cast %arg0 : i32 to index
    %c30 = arith.constant 30 : index
    %121 = memref.load %arg1[%120, %c30] : memref<2x64xi32, #tpu.memory_space<smem>>
    %c0_i32_60 = arith.constant 0 : i32
    %122 = tpu.memref_slice %arg2[%121, %c0_i32_60] : memref<64x128xf32, #tpu.memory_space<any>> -> memref<1x128xf32, #tpu.memory_space<any>>
    %c30_i32 = arith.constant 30 : i32
    %c0_i32_61 = arith.constant 0 : i32
    %123 = tpu.memref_slice %arg14[%c30_i32, %c0_i32_61] : memref<64x128xf32, #tpu.memory_space<vmem>> -> memref<1x128xf32, #tpu.memory_space<vmem>>
    tpu.enqueue_dma source(%122 : memref<1x128xf32, #tpu.memory_space<any>>) target(%123 : memref<1x128xf32, #tpu.memory_space<vmem>>) target_semaphore(%arg15 : memref<!tpu.dma_semaphore, #tpu.memory_space<semaphore_mem>>)
    %124 = arith.index_cast %arg0 : i32 to index
    %c31 = arith.constant 31 : index
    %125 = memref.load %arg1[%124, %c31] : memref<2x64xi32, #tpu.memory_space<smem>>
    %c0_i32_62 = arith.constant 0 : i32
    %126 = tpu.memref_slice %arg2[%125, %c0_i32_62] : memref<64x128xf32, #tpu.memory_space<any>> -> memref<1x128xf32, #tpu.memory_space<any>>
    %c31_i32 = arith.constant 31 : i32
    %c0_i32_63 = arith.constant 0 : i32
    %127 = tpu.memref_slice %arg14[%c31_i32, %c0_i32_63] : memref<64x128xf32, #tpu.memory_space<vmem>> -> memref<1x128xf32, #tpu.memory_space<vmem>>
    tpu.enqueue_dma source(%126 : memref<1x128xf32, #tpu.memory_space<any>>) target(%127 : memref<1x128xf32, #tpu.memory_space<vmem>>) target_semaphore(%arg15 : memref<!tpu.dma_semaphore, #tpu.memory_space<semaphore_mem>>)
    %128 = arith.index_cast %arg0 : i32 to index
    %c32 = arith.constant 32 : index
    %129 = memref.load %arg1[%128, %c32] : memref<2x64xi32, #tpu.memory_space<smem>>
    %c0_i32_64 = arith.constant 0 : i32
    %130 = tpu.memref_slice %arg2[%129, %c0_i32_64] : memref<64x128xf32, #tpu.memory_space<any>> -> memref<1x128xf32, #tpu.memory_space<any>>
    %c32_i32 = arith.constant 32 : i32
    %c0_i32_65 = arith.constant 0 : i32
    %131 = tpu.memref_slice %arg14[%c32_i32, %c0_i32_65] : memref<64x128xf32, #tpu.memory_space<vmem>> -> memref<1x128xf32, #tpu.memory_space<vmem>>
    tpu.enqueue_dma source(%130 : memref<1x128xf32, #tpu.memory_space<any>>) target(%131 : memref<1x128xf32, #tpu.memory_space<vmem>>) target_semaphore(%arg15 : memref<!tpu.dma_semaphore, #tpu.memory_space<semaphore_mem>>)
    %132 = arith.index_cast %arg0 : i32 to index
    %c33 = arith.constant 33 : index
    %133 = memref.load %arg1[%132, %c33] : memref<2x64xi32, #tpu.memory_space<smem>>
    %c0_i32_66 = arith.constant 0 : i32
    %134 = tpu.memref_slice %arg2[%133, %c0_i32_66] : memref<64x128xf32, #tpu.memory_space<any>> -> memref<1x128xf32, #tpu.memory_space<any>>
    %c33_i32 = arith.constant 33 : i32
    %c0_i32_67 = arith.constant 0 : i32
    %135 = tpu.memref_slice %arg14[%c33_i32, %c0_i32_67] : memref<64x128xf32, #tpu.memory_space<vmem>> -> memref<1x128xf32, #tpu.memory_space<vmem>>
    tpu.enqueue_dma source(%134 : memref<1x128xf32, #tpu.memory_space<any>>) target(%135 : memref<1x128xf32, #tpu.memory_space<vmem>>) target_semaphore(%arg15 : memref<!tpu.dma_semaphore, #tpu.memory_space<semaphore_mem>>)
    %136 = arith.index_cast %arg0 : i32 to index
    %c34 = arith.constant 34 : index
    %137 = memref.load %arg1[%136, %c34] : memref<2x64xi32, #tpu.memory_space<smem>>
    %c0_i32_68 = arith.constant 0 : i32
    %138 = tpu.memref_slice %arg2[%137, %c0_i32_68] : memref<64x128xf32, #tpu.memory_space<any>> -> memref<1x128xf32, #tpu.memory_space<any>>
    %c34_i32 = arith.constant 34 : i32
    %c0_i32_69 = arith.constant 0 : i32
    %139 = tpu.memref_slice %arg14[%c34_i32, %c0_i32_69] : memref<64x128xf32, #tpu.memory_space<vmem>> -> memref<1x128xf32, #tpu.memory_space<vmem>>
    tpu.enqueue_dma source(%138 : memref<1x128xf32, #tpu.memory_space<any>>) target(%139 : memref<1x128xf32, #tpu.memory_space<vmem>>) target_semaphore(%arg15 : memref<!tpu.dma_semaphore, #tpu.memory_space<semaphore_mem>>)
    %140 = arith.index_cast %arg0 : i32 to index
    %c35 = arith.constant 35 : index
    %141 = memref.load %arg1[%140, %c35] : memref<2x64xi32, #tpu.memory_space<smem>>
    %c0_i32_70 = arith.constant 0 : i32
    %142 = tpu.memref_slice %arg2[%141, %c0_i32_70] : memref<64x128xf32, #tpu.memory_space<any>> -> memref<1x128xf32, #tpu.memory_space<any>>
    %c35_i32 = arith.constant 35 : i32
    %c0_i32_71 = arith.constant 0 : i32
    %143 = tpu.memref_slice %arg14[%c35_i32, %c0_i32_71] : memref<64x128xf32, #tpu.memory_space<vmem>> -> memref<1x128xf32, #tpu.memory_space<vmem>>
    tpu.enqueue_dma source(%142 : memref<1x128xf32, #tpu.memory_space<any>>) target(%143 : memref<1x128xf32, #tpu.memory_space<vmem>>) target_semaphore(%arg15 : memref<!tpu.dma_semaphore, #tpu.memory_space<semaphore_mem>>)
    %144 = arith.index_cast %arg0 : i32 to index
    %c36 = arith.constant 36 : index
    %145 = memref.load %arg1[%144, %c36] : memref<2x64xi32, #tpu.memory_space<smem>>
    %c0_i32_72 = arith.constant 0 : i32
    %146 = tpu.memref_slice %arg2[%145, %c0_i32_72] : memref<64x128xf32, #tpu.memory_space<any>> -> memref<1x128xf32, #tpu.memory_space<any>>
    %c36_i32 = arith.constant 36 : i32
    %c0_i32_73 = arith.constant 0 : i32
    %147 = tpu.memref_slice %arg14[%c36_i32, %c0_i32_73] : memref<64x128xf32, #tpu.memory_space<vmem>> -> memref<1x128xf32, #tpu.memory_space<vmem>>
    tpu.enqueue_dma source(%146 : memref<1x128xf32, #tpu.memory_space<any>>) target(%147 : memref<1x128xf32, #tpu.memory_space<vmem>>) target_semaphore(%arg15 : memref<!tpu.dma_semaphore, #tpu.memory_space<semaphore_mem>>)
    %148 = arith.index_cast %arg0 : i32 to index
    %c37 = arith.constant 37 : index
    %149 = memref.load %arg1[%148, %c37] : memref<2x64xi32, #tpu.memory_space<smem>>
    %c0_i32_74 = arith.constant 0 : i32
    %150 = tpu.memref_slice %arg2[%149, %c0_i32_74] : memref<64x128xf32, #tpu.memory_space<any>> -> memref<1x128xf32, #tpu.memory_space<any>>
    %c37_i32 = arith.constant 37 : i32
    %c0_i32_75 = arith.constant 0 : i32
    %151 = tpu.memref_slice %arg14[%c37_i32, %c0_i32_75] : memref<64x128xf32, #tpu.memory_space<vmem>> -> memref<1x128xf32, #tpu.memory_space<vmem>>
    tpu.enqueue_dma source(%150 : memref<1x128xf32, #tpu.memory_space<any>>) target(%151 : memref<1x128xf32, #tpu.memory_space<vmem>>) target_semaphore(%arg15 : memref<!tpu.dma_semaphore, #tpu.memory_space<semaphore_mem>>)
    %152 = arith.index_cast %arg0 : i32 to index
    %c38 = arith.constant 38 : index
    %153 = memref.load %arg1[%152, %c38] : memref<2x64xi32, #tpu.memory_space<smem>>
    %c0_i32_76 = arith.constant 0 : i32
    %154 = tpu.memref_slice %arg2[%153, %c0_i32_76] : memref<64x128xf32, #tpu.memory_space<any>> -> memref<1x128xf32, #tpu.memory_space<any>>
    %c38_i32 = arith.constant 38 : i32
    %c0_i32_77 = arith.constant 0 : i32
    %155 = tpu.memref_slice %arg14[%c38_i32, %c0_i32_77] : memref<64x128xf32, #tpu.memory_space<vmem>> -> memref<1x128xf32, #tpu.memory_space<vmem>>
    tpu.enqueue_dma source(%154 : memref<1x128xf32, #tpu.memory_space<any>>) target(%155 : memref<1x128xf32, #tpu.memory_space<vmem>>) target_semaphore(%arg15 : memref<!tpu.dma_semaphore, #tpu.memory_space<semaphore_mem>>)
    %156 = arith.index_cast %arg0 : i32 to index
    %c39 = arith.constant 39 : index
    %157 = memref.load %arg1[%156, %c39] : memref<2x64xi32, #tpu.memory_space<smem>>
    %c0_i32_78 = arith.constant 0 : i32
    %158 = tpu.memref_slice %arg2[%157, %c0_i32_78] : memref<64x128xf32, #tpu.memory_space<any>> -> memref<1x128xf32, #tpu.memory_space<any>>
    %c39_i32 = arith.constant 39 : i32
    %c0_i32_79 = arith.constant 0 : i32
    %159 = tpu.memref_slice %arg14[%c39_i32, %c0_i32_79] : memref<64x128xf32, #tpu.memory_space<vmem>> -> memref<1x128xf32, #tpu.memory_space<vmem>>
    tpu.enqueue_dma source(%158 : memref<1x128xf32, #tpu.memory_space<any>>) target(%159 : memref<1x128xf32, #tpu.memory_space<vmem>>) target_semaphore(%arg15 : memref<!tpu.dma_semaphore, #tpu.memory_space<semaphore_mem>>)
    %160 = arith.index_cast %arg0 : i32 to index
    %c40 = arith.constant 40 : index
    %161 = memref.load %arg1[%160, %c40] : memref<2x64xi32, #tpu.memory_space<smem>>
    %c0_i32_80 = arith.constant 0 : i32
    %162 = tpu.memref_slice %arg2[%161, %c0_i32_80] : memref<64x128xf32, #tpu.memory_space<any>> -> memref<1x128xf32, #tpu.memory_space<any>>
    %c40_i32 = arith.constant 40 : i32
    %c0_i32_81 = arith.constant 0 : i32
    %163 = tpu.memref_slice %arg14[%c40_i32, %c0_i32_81] : memref<64x128xf32, #tpu.memory_space<vmem>> -> memref<1x128xf32, #tpu.memory_space<vmem>>
    tpu.enqueue_dma source(%162 : memref<1x128xf32, #tpu.memory_space<any>>) target(%163 : memref<1x128xf32, #tpu.memory_space<vmem>>) target_semaphore(%arg15 : memref<!tpu.dma_semaphore, #tpu.memory_space<semaphore_mem>>)
    %164 = arith.index_cast %arg0 : i32 to index
    %c41 = arith.constant 41 : index
    %165 = memref.load %arg1[%164, %c41] : memref<2x64xi32, #tpu.memory_space<smem>>
    %c0_i32_82 = arith.constant 0 : i32
    %166 = tpu.memref_slice %arg2[%165, %c0_i32_82] : memref<64x128xf32, #tpu.memory_space<any>> -> memref<1x128xf32, #tpu.memory_space<any>>
    %c41_i32 = arith.constant 41 : i32
    %c0_i32_83 = arith.constant 0 : i32
    %167 = tpu.memref_slice %arg14[%c41_i32, %c0_i32_83] : memref<64x128xf32, #tpu.memory_space<vmem>> -> memref<1x128xf32, #tpu.memory_space<vmem>>
    tpu.enqueue_dma source(%166 : memref<1x128xf32, #tpu.memory_space<any>>) target(%167 : memref<1x128xf32, #tpu.memory_space<vmem>>) target_semaphore(%arg15 : memref<!tpu.dma_semaphore, #tpu.memory_space<semaphore_mem>>)
    %168 = arith.index_cast %arg0 : i32 to index
    %c42 = arith.constant 42 : index
    %169 = memref.load %arg1[%168, %c42] : memref<2x64xi32, #tpu.memory_space<smem>>
    %c0_i32_84 = arith.constant 0 : i32
    %170 = tpu.memref_slice %arg2[%169, %c0_i32_84] : memref<64x128xf32, #tpu.memory_space<any>> -> memref<1x128xf32, #tpu.memory_space<any>>
    %c42_i32 = arith.constant 42 : i32
    %c0_i32_85 = arith.constant 0 : i32
    %171 = tpu.memref_slice %arg14[%c42_i32, %c0_i32_85] : memref<64x128xf32, #tpu.memory_space<vmem>> -> memref<1x128xf32, #tpu.memory_space<vmem>>
    tpu.enqueue_dma source(%170 : memref<1x128xf32, #tpu.memory_space<any>>) target(%171 : memref<1x128xf32, #tpu.memory_space<vmem>>) target_semaphore(%arg15 : memref<!tpu.dma_semaphore, #tpu.memory_space<semaphore_mem>>)
    %172 = arith.index_cast %arg0 : i32 to index
    %c43 = arith.constant 43 : index
    %173 = memref.load %arg1[%172, %c43] : memref<2x64xi32, #tpu.memory_space<smem>>
    %c0_i32_86 = arith.constant 0 : i32
    %174 = tpu.memref_slice %arg2[%173, %c0_i32_86] : memref<64x128xf32, #tpu.memory_space<any>> -> memref<1x128xf32, #tpu.memory_space<any>>
    %c43_i32 = arith.constant 43 : i32
    %c0_i32_87 = arith.constant 0 : i32
    %175 = tpu.memref_slice %arg14[%c43_i32, %c0_i32_87] : memref<64x128xf32, #tpu.memory_space<vmem>> -> memref<1x128xf32, #tpu.memory_space<vmem>>
    tpu.enqueue_dma source(%174 : memref<1x128xf32, #tpu.memory_space<any>>) target(%175 : memref<1x128xf32, #tpu.memory_space<vmem>>) target_semaphore(%arg15 : memref<!tpu.dma_semaphore, #tpu.memory_space<semaphore_mem>>)
    %176 = arith.index_cast %arg0 : i32 to index
    %c44 = arith.constant 44 : index
    %177 = memref.load %arg1[%176, %c44] : memref<2x64xi32, #tpu.memory_space<smem>>
    %c0_i32_88 = arith.constant 0 : i32
    %178 = tpu.memref_slice %arg2[%177, %c0_i32_88] : memref<64x128xf32, #tpu.memory_space<any>> -> memref<1x128xf32, #tpu.memory_space<any>>
    %c44_i32 = arith.constant 44 : i32
    %c0_i32_89 = arith.constant 0 : i32
    %179 = tpu.memref_slice %arg14[%c44_i32, %c0_i32_89] : memref<64x128xf32, #tpu.memory_space<vmem>> -> memref<1x128xf32, #tpu.memory_space<vmem>>
    tpu.enqueue_dma source(%178 : memref<1x128xf32, #tpu.memory_space<any>>) target(%179 : memref<1x128xf32, #tpu.memory_space<vmem>>) target_semaphore(%arg15 : memref<!tpu.dma_semaphore, #tpu.memory_space<semaphore_mem>>)
    %180 = arith.index_cast %arg0 : i32 to index
    %c45 = arith.constant 45 : index
    %181 = memref.load %arg1[%180, %c45] : memref<2x64xi32, #tpu.memory_space<smem>>
    %c0_i32_90 = arith.constant 0 : i32
    %182 = tpu.memref_slice %arg2[%181, %c0_i32_90] : memref<64x128xf32, #tpu.memory_space<any>> -> memref<1x128xf32, #tpu.memory_space<any>>
    %c45_i32 = arith.constant 45 : i32
    %c0_i32_91 = arith.constant 0 : i32
    %183 = tpu.memref_slice %arg14[%c45_i32, %c0_i32_91] : memref<64x128xf32, #tpu.memory_space<vmem>> -> memref<1x128xf32, #tpu.memory_space<vmem>>
    tpu.enqueue_dma source(%182 : memref<1x128xf32, #tpu.memory_space<any>>) target(%183 : memref<1x128xf32, #tpu.memory_space<vmem>>) target_semaphore(%arg15 : memref<!tpu.dma_semaphore, #tpu.memory_space<semaphore_mem>>)
    %184 = arith.index_cast %arg0 : i32 to index
    %c46 = arith.constant 46 : index
    %185 = memref.load %arg1[%184, %c46] : memref<2x64xi32, #tpu.memory_space<smem>>
    %c0_i32_92 = arith.constant 0 : i32
    %186 = tpu.memref_slice %arg2[%185, %c0_i32_92] : memref<64x128xf32, #tpu.memory_space<any>> -> memref<1x128xf32, #tpu.memory_space<any>>
    %c46_i32 = arith.constant 46 : i32
    %c0_i32_93 = arith.constant 0 : i32
    %187 = tpu.memref_slice %arg14[%c46_i32, %c0_i32_93] : memref<64x128xf32, #tpu.memory_space<vmem>> -> memref<1x128xf32, #tpu.memory_space<vmem>>
    tpu.enqueue_dma source(%186 : memref<1x128xf32, #tpu.memory_space<any>>) target(%187 : memref<1x128xf32, #tpu.memory_space<vmem>>) target_semaphore(%arg15 : memref<!tpu.dma_semaphore, #tpu.memory_space<semaphore_mem>>)
    %188 = arith.index_cast %arg0 : i32 to index
    %c47 = arith.constant 47 : index
    %189 = memref.load %arg1[%188, %c47] : memref<2x64xi32, #tpu.memory_space<smem>>
    %c0_i32_94 = arith.constant 0 : i32
    %190 = tpu.memref_slice %arg2[%189, %c0_i32_94] : memref<64x128xf32, #tpu.memory_space<any>> -> memref<1x128xf32, #tpu.memory_space<any>>
    %c47_i32 = arith.constant 47 : i32
    %c0_i32_95 = arith.constant 0 : i32
    %191 = tpu.memref_slice %arg14[%c47_i32, %c0_i32_95] : memref<64x128xf32, #tpu.memory_space<vmem>> -> memref<1x128xf32, #tpu.memory_space<vmem>>
    tpu.enqueue_dma source(%190 : memref<1x128xf32, #tpu.memory_space<any>>) target(%191 : memref<1x128xf32, #tpu.memory_space<vmem>>) target_semaphore(%arg15 : memref<!tpu.dma_semaphore, #tpu.memory_space<semaphore_mem>>)
    %192 = arith.index_cast %arg0 : i32 to index
    %c48 = arith.constant 48 : index
    %193 = memref.load %arg1[%192, %c48] : memref<2x64xi32, #tpu.memory_space<smem>>
    %c0_i32_96 = arith.constant 0 : i32
    %194 = tpu.memref_slice %arg2[%193, %c0_i32_96] : memref<64x128xf32, #tpu.memory_space<any>> -> memref<1x128xf32, #tpu.memory_space<any>>
    %c48_i32 = arith.constant 48 : i32
    %c0_i32_97 = arith.constant 0 : i32
    %195 = tpu.memref_slice %arg14[%c48_i32, %c0_i32_97] : memref<64x128xf32, #tpu.memory_space<vmem>> -> memref<1x128xf32, #tpu.memory_space<vmem>>
    tpu.enqueue_dma source(%194 : memref<1x128xf32, #tpu.memory_space<any>>) target(%195 : memref<1x128xf32, #tpu.memory_space<vmem>>) target_semaphore(%arg15 : memref<!tpu.dma_semaphore, #tpu.memory_space<semaphore_mem>>)
    %196 = arith.index_cast %arg0 : i32 to index
    %c49 = arith.constant 49 : index
    %197 = memref.load %arg1[%196, %c49] : memref<2x64xi32, #tpu.memory_space<smem>>
    %c0_i32_98 = arith.constant 0 : i32
    %198 = tpu.memref_slice %arg2[%197, %c0_i32_98] : memref<64x128xf32, #tpu.memory_space<any>> -> memref<1x128xf32, #tpu.memory_space<any>>
    %c49_i32 = arith.constant 49 : i32
    %c0_i32_99 = arith.constant 0 : i32
    %199 = tpu.memref_slice %arg14[%c49_i32, %c0_i32_99] : memref<64x128xf32, #tpu.memory_space<vmem>> -> memref<1x128xf32, #tpu.memory_space<vmem>>
    tpu.enqueue_dma source(%198 : memref<1x128xf32, #tpu.memory_space<any>>) target(%199 : memref<1x128xf32, #tpu.memory_space<vmem>>) target_semaphore(%arg15 : memref<!tpu.dma_semaphore, #tpu.memory_space<semaphore_mem>>)
    %200 = arith.index_cast %arg0 : i32 to index
    %c50 = arith.constant 50 : index
    %201 = memref.load %arg1[%200, %c50] : memref<2x64xi32, #tpu.memory_space<smem>>
    %c0_i32_100 = arith.constant 0 : i32
    %202 = tpu.memref_slice %arg2[%201, %c0_i32_100] : memref<64x128xf32, #tpu.memory_space<any>> -> memref<1x128xf32, #tpu.memory_space<any>>
    %c50_i32 = arith.constant 50 : i32
    %c0_i32_101 = arith.constant 0 : i32
    %203 = tpu.memref_slice %arg14[%c50_i32, %c0_i32_101] : memref<64x128xf32, #tpu.memory_space<vmem>> -> memref<1x128xf32, #tpu.memory_space<vmem>>
    tpu.enqueue_dma source(%202 : memref<1x128xf32, #tpu.memory_space<any>>) target(%203 : memref<1x128xf32, #tpu.memory_space<vmem>>) target_semaphore(%arg15 : memref<!tpu.dma_semaphore, #tpu.memory_space<semaphore_mem>>)
    %204 = arith.index_cast %arg0 : i32 to index
    %c51 = arith.constant 51 : index
    %205 = memref.load %arg1[%204, %c51] : memref<2x64xi32, #tpu.memory_space<smem>>
    %c0_i32_102 = arith.constant 0 : i32
    %206 = tpu.memref_slice %arg2[%205, %c0_i32_102] : memref<64x128xf32, #tpu.memory_space<any>> -> memref<1x128xf32, #tpu.memory_space<any>>
    %c51_i32 = arith.constant 51 : i32
    %c0_i32_103 = arith.constant 0 : i32
    %207 = tpu.memref_slice %arg14[%c51_i32, %c0_i32_103] : memref<64x128xf32, #tpu.memory_space<vmem>> -> memref<1x128xf32, #tpu.memory_space<vmem>>
    tpu.enqueue_dma source(%206 : memref<1x128xf32, #tpu.memory_space<any>>) target(%207 : memref<1x128xf32, #tpu.memory_space<vmem>>) target_semaphore(%arg15 : memref<!tpu.dma_semaphore, #tpu.memory_space<semaphore_mem>>)
    %208 = arith.index_cast %arg0 : i32 to index
    %c52 = arith.constant 52 : index
    %209 = memref.load %arg1[%208, %c52] : memref<2x64xi32, #tpu.memory_space<smem>>
    %c0_i32_104 = arith.constant 0 : i32
    %210 = tpu.memref_slice %arg2[%209, %c0_i32_104] : memref<64x128xf32, #tpu.memory_space<any>> -> memref<1x128xf32, #tpu.memory_space<any>>
    %c52_i32 = arith.constant 52 : i32
    %c0_i32_105 = arith.constant 0 : i32
    %211 = tpu.memref_slice %arg14[%c52_i32, %c0_i32_105] : memref<64x128xf32, #tpu.memory_space<vmem>> -> memref<1x128xf32, #tpu.memory_space<vmem>>
    tpu.enqueue_dma source(%210 : memref<1x128xf32, #tpu.memory_space<any>>) target(%211 : memref<1x128xf32, #tpu.memory_space<vmem>>) target_semaphore(%arg15 : memref<!tpu.dma_semaphore, #tpu.memory_space<semaphore_mem>>)
    %212 = arith.index_cast %arg0 : i32 to index
    %c53 = arith.constant 53 : index
    %213 = memref.load %arg1[%212, %c53] : memref<2x64xi32, #tpu.memory_space<smem>>
    %c0_i32_106 = arith.constant 0 : i32
    %214 = tpu.memref_slice %arg2[%213, %c0_i32_106] : memref<64x128xf32, #tpu.memory_space<any>> -> memref<1x128xf32, #tpu.memory_space<any>>
    %c53_i32 = arith.constant 53 : i32
    %c0_i32_107 = arith.constant 0 : i32
    %215 = tpu.memref_slice %arg14[%c53_i32, %c0_i32_107] : memref<64x128xf32, #tpu.memory_space<vmem>> -> memref<1x128xf32, #tpu.memory_space<vmem>>
    tpu.enqueue_dma source(%214 : memref<1x128xf32, #tpu.memory_space<any>>) target(%215 : memref<1x128xf32, #tpu.memory_space<vmem>>) target_semaphore(%arg15 : memref<!tpu.dma_semaphore, #tpu.memory_space<semaphore_mem>>)
    %216 = arith.index_cast %arg0 : i32 to index
    %c54 = arith.constant 54 : index
    %217 = memref.load %arg1[%216, %c54] : memref<2x64xi32, #tpu.memory_space<smem>>
    %c0_i32_108 = arith.constant 0 : i32
    %218 = tpu.memref_slice %arg2[%217, %c0_i32_108] : memref<64x128xf32, #tpu.memory_space<any>> -> memref<1x128xf32, #tpu.memory_space<any>>
    %c54_i32 = arith.constant 54 : i32
    %c0_i32_109 = arith.constant 0 : i32
    %219 = tpu.memref_slice %arg14[%c54_i32, %c0_i32_109] : memref<64x128xf32, #tpu.memory_space<vmem>> -> memref<1x128xf32, #tpu.memory_space<vmem>>
    tpu.enqueue_dma source(%218 : memref<1x128xf32, #tpu.memory_space<any>>) target(%219 : memref<1x128xf32, #tpu.memory_space<vmem>>) target_semaphore(%arg15 : memref<!tpu.dma_semaphore, #tpu.memory_space<semaphore_mem>>)
    %220 = arith.index_cast %arg0 : i32 to index
    %c55 = arith.constant 55 : index
    %221 = memref.load %arg1[%220, %c55] : memref<2x64xi32, #tpu.memory_space<smem>>
    %c0_i32_110 = arith.constant 0 : i32
    %222 = tpu.memref_slice %arg2[%221, %c0_i32_110] : memref<64x128xf32, #tpu.memory_space<any>> -> memref<1x128xf32, #tpu.memory_space<any>>
    %c55_i32 = arith.constant 55 : i32
    %c0_i32_111 = arith.constant 0 : i32
    %223 = tpu.memref_slice %arg14[%c55_i32, %c0_i32_111] : memref<64x128xf32, #tpu.memory_space<vmem>> -> memref<1x128xf32, #tpu.memory_space<vmem>>
    tpu.enqueue_dma source(%222 : memref<1x128xf32, #tpu.memory_space<any>>) target(%223 : memref<1x128xf32, #tpu.memory_space<vmem>>) target_semaphore(%arg15 : memref<!tpu.dma_semaphore, #tpu.memory_space<semaphore_mem>>)
    %224 = arith.index_cast %arg0 : i32 to index
    %c56 = arith.constant 56 : index
    %225 = memref.load %arg1[%224, %c56] : memref<2x64xi32, #tpu.memory_space<smem>>
    %c0_i32_112 = arith.constant 0 : i32
    %226 = tpu.memref_slice %arg2[%225, %c0_i32_112] : memref<64x128xf32, #tpu.memory_space<any>> -> memref<1x128xf32, #tpu.memory_space<any>>
    %c56_i32 = arith.constant 56 : i32
    %c0_i32_113 = arith.constant 0 : i32
    %227 = tpu.memref_slice %arg14[%c56_i32, %c0_i32_113] : memref<64x128xf32, #tpu.memory_space<vmem>> -> memref<1x128xf32, #tpu.memory_space<vmem>>
    tpu.enqueue_dma source(%226 : memref<1x128xf32, #tpu.memory_space<any>>) target(%227 : memref<1x128xf32, #tpu.memory_space<vmem>>) target_semaphore(%arg15 : memref<!tpu.dma_semaphore, #tpu.memory_space<semaphore_mem>>)
    %228 = arith.index_cast %arg0 : i32 to index
    %c57 = arith.constant 57 : index
    %229 = memref.load %arg1[%228, %c57] : memref<2x64xi32, #tpu.memory_space<smem>>
    %c0_i32_114 = arith.constant 0 : i32
    %230 = tpu.memref_slice %arg2[%229, %c0_i32_114] : memref<64x128xf32, #tpu.memory_space<any>> -> memref<1x128xf32, #tpu.memory_space<any>>
    %c57_i32 = arith.constant 57 : i32
    %c0_i32_115 = arith.constant 0 : i32
    %231 = tpu.memref_slice %arg14[%c57_i32, %c0_i32_115] : memref<64x128xf32, #tpu.memory_space<vmem>> -> memref<1x128xf32, #tpu.memory_space<vmem>>
    tpu.enqueue_dma source(%230 : memref<1x128xf32, #tpu.memory_space<any>>) target(%231 : memref<1x128xf32, #tpu.memory_space<vmem>>) target_semaphore(%arg15 : memref<!tpu.dma_semaphore, #tpu.memory_space<semaphore_mem>>)
    %232 = arith.index_cast %arg0 : i32 to index
    %c58 = arith.constant 58 : index
    %233 = memref.load %arg1[%232, %c58] : memref<2x64xi32, #tpu.memory_space<smem>>
    %c0_i32_116 = arith.constant 0 : i32
    %234 = tpu.memref_slice %arg2[%233, %c0_i32_116] : memref<64x128xf32, #tpu.memory_space<any>> -> memref<1x128xf32, #tpu.memory_space<any>>
    %c58_i32 = arith.constant 58 : i32
    %c0_i32_117 = arith.constant 0 : i32
    %235 = tpu.memref_slice %arg14[%c58_i32, %c0_i32_117] : memref<64x128xf32, #tpu.memory_space<vmem>> -> memref<1x128xf32, #tpu.memory_space<vmem>>
    tpu.enqueue_dma source(%234 : memref<1x128xf32, #tpu.memory_space<any>>) target(%235 : memref<1x128xf32, #tpu.memory_space<vmem>>) target_semaphore(%arg15 : memref<!tpu.dma_semaphore, #tpu.memory_space<semaphore_mem>>)
    %236 = arith.index_cast %arg0 : i32 to index
    %c59 = arith.constant 59 : index
    %237 = memref.load %arg1[%236, %c59] : memref<2x64xi32, #tpu.memory_space<smem>>
    %c0_i32_118 = arith.constant 0 : i32
    %238 = tpu.memref_slice %arg2[%237, %c0_i32_118] : memref<64x128xf32, #tpu.memory_space<any>> -> memref<1x128xf32, #tpu.memory_space<any>>
    %c59_i32 = arith.constant 59 : i32
    %c0_i32_119 = arith.constant 0 : i32
    %239 = tpu.memref_slice %arg14[%c59_i32, %c0_i32_119] : memref<64x128xf32, #tpu.memory_space<vmem>> -> memref<1x128xf32, #tpu.memory_space<vmem>>
    tpu.enqueue_dma source(%238 : memref<1x128xf32, #tpu.memory_space<any>>) target(%239 : memref<1x128xf32, #tpu.memory_space<vmem>>) target_semaphore(%arg15 : memref<!tpu.dma_semaphore, #tpu.memory_space<semaphore_mem>>)
    %240 = arith.index_cast %arg0 : i32 to index
    %c60 = arith.constant 60 : index
    %241 = memref.load %arg1[%240, %c60] : memref<2x64xi32, #tpu.memory_space<smem>>
    %c0_i32_120 = arith.constant 0 : i32
    %242 = tpu.memref_slice %arg2[%241, %c0_i32_120] : memref<64x128xf32, #tpu.memory_space<any>> -> memref<1x128xf32, #tpu.memory_space<any>>
    %c60_i32 = arith.constant 60 : i32
    %c0_i32_121 = arith.constant 0 : i32
    %243 = tpu.memref_slice %arg14[%c60_i32, %c0_i32_121] : memref<64x128xf32, #tpu.memory_space<vmem>> -> memref<1x128xf32, #tpu.memory_space<vmem>>
    tpu.enqueue_dma source(%242 : memref<1x128xf32, #tpu.memory_space<any>>) target(%243 : memref<1x128xf32, #tpu.memory_space<vmem>>) target_semaphore(%arg15 : memref<!tpu.dma_semaphore, #tpu.memory_space<semaphore_mem>>)
    %244 = arith.index_cast %arg0 : i32 to index
    %c61 = arith.constant 61 : index
    %245 = memref.load %arg1[%244, %c61] : memref<2x64xi32, #tpu.memory_space<smem>>
    %c0_i32_122 = arith.constant 0 : i32
    %246 = tpu.memref_slice %arg2[%245, %c0_i32_122] : memref<64x128xf32, #tpu.memory_space<any>> -> memref<1x128xf32, #tpu.memory_space<any>>
    %c61_i32 = arith.constant 61 : i32
    %c0_i32_123 = arith.constant 0 : i32
    %247 = tpu.memref_slice %arg14[%c61_i32, %c0_i32_123] : memref<64x128xf32, #tpu.memory_space<vmem>> -> memref<1x128xf32, #tpu.memory_space<vmem>>
    tpu.enqueue_dma source(%246 : memref<1x128xf32, #tpu.memory_space<any>>) target(%247 : memref<1x128xf32, #tpu.memory_space<vmem>>) target_semaphore(%arg15 : memref<!tpu.dma_semaphore, #tpu.memory_space<semaphore_mem>>)
    %248 = arith.index_cast %arg0 : i32 to index
    %c62 = arith.constant 62 : index
    %249 = memref.load %arg1[%248, %c62] : memref<2x64xi32, #tpu.memory_space<smem>>
    %c0_i32_124 = arith.constant 0 : i32
    %250 = tpu.memref_slice %arg2[%249, %c0_i32_124] : memref<64x128xf32, #tpu.memory_space<any>> -> memref<1x128xf32, #tpu.memory_space<any>>
    %c62_i32 = arith.constant 62 : i32
    %c0_i32_125 = arith.constant 0 : i32
    %251 = tpu.memref_slice %arg14[%c62_i32, %c0_i32_125] : memref<64x128xf32, #tpu.memory_space<vmem>> -> memref<1x128xf32, #tpu.memory_space<vmem>>
    tpu.enqueue_dma source(%250 : memref<1x128xf32, #tpu.memory_space<any>>) target(%251 : memref<1x128xf32, #tpu.memory_space<vmem>>) target_semaphore(%arg15 : memref<!tpu.dma_semaphore, #tpu.memory_space<semaphore_mem>>)
    %252 = arith.index_cast %arg0 : i32 to index
    %c63 = arith.constant 63 : index
    %253 = memref.load %arg1[%252, %c63] : memref<2x64xi32, #tpu.memory_space<smem>>
    %c0_i32_126 = arith.constant 0 : i32
    %254 = tpu.memref_slice %arg2[%253, %c0_i32_126] : memref<64x128xf32, #tpu.memory_space<any>> -> memref<1x128xf32, #tpu.memory_space<any>>
    %c63_i32 = arith.constant 63 : i32
    %c0_i32_127 = arith.constant 0 : i32
    %255 = tpu.memref_slice %arg14[%c63_i32, %c0_i32_127] : memref<64x128xf32, #tpu.memory_space<vmem>> -> memref<1x128xf32, #tpu.memory_space<vmem>>
    tpu.enqueue_dma source(%254 : memref<1x128xf32, #tpu.memory_space<any>>) target(%255 : memref<1x128xf32, #tpu.memory_space<vmem>>) target_semaphore(%arg15 : memref<!tpu.dma_semaphore, #tpu.memory_space<semaphore_mem>>)
    %c0_i32_128 = arith.constant 0 : i32
    %256 = tpu.memref_slice %arg2[%1, %c0_i32_128] : memref<64x128xf32, #tpu.memory_space<any>> -> memref<1x128xf32, #tpu.memory_space<any>>
    %c0_i32_129 = arith.constant 0 : i32
    %c0_i32_130 = arith.constant 0 : i32
    %257 = tpu.memref_slice %arg14[%c0_i32_129, %c0_i32_130] : memref<64x128xf32, #tpu.memory_space<vmem>> -> memref<1x128xf32, #tpu.memory_space<vmem>>
    tpu.wait_dma2 semaphore(%arg15 : memref<!tpu.dma_semaphore, #tpu.memory_space<semaphore_mem>>) src(%256 : memref<1x128xf32, #tpu.memory_space<any>>) dst(%257 : memref<1x128xf32, #tpu.memory_space<vmem>>)
    %c0_i32_131 = arith.constant 0 : i32
    %258 = tpu.memref_slice %arg2[%5, %c0_i32_131] : memref<64x128xf32, #tpu.memory_space<any>> -> memref<1x128xf32, #tpu.memory_space<any>>
    %c1_i32_132 = arith.constant 1 : i32
    %c0_i32_133 = arith.constant 0 : i32
    %259 = tpu.memref_slice %arg14[%c1_i32_132, %c0_i32_133] : memref<64x128xf32, #tpu.memory_space<vmem>> -> memref<1x128xf32, #tpu.memory_space<vmem>>
    tpu.wait_dma2 semaphore(%arg15 : memref<!tpu.dma_semaphore, #tpu.memory_space<semaphore_mem>>) src(%258 : memref<1x128xf32, #tpu.memory_space<any>>) dst(%259 : memref<1x128xf32, #tpu.memory_space<vmem>>)
    %c0_i32_134 = arith.constant 0 : i32
    %260 = tpu.memref_slice %arg2[%9, %c0_i32_134] : memref<64x128xf32, #tpu.memory_space<any>> -> memref<1x128xf32, #tpu.memory_space<any>>
    %c2_i32_135 = arith.constant 2 : i32
    %c0_i32_136 = arith.constant 0 : i32
    %261 = tpu.memref_slice %arg14[%c2_i32_135, %c0_i32_136] : memref<64x128xf32, #tpu.memory_space<vmem>> -> memref<1x128xf32, #tpu.memory_space<vmem>>
    tpu.wait_dma2 semaphore(%arg15 : memref<!tpu.dma_semaphore, #tpu.memory_space<semaphore_mem>>) src(%260 : memref<1x128xf32, #tpu.memory_space<any>>) dst(%261 : memref<1x128xf32, #tpu.memory_space<vmem>>)
    %c0_i32_137 = arith.constant 0 : i32
    %262 = tpu.memref_slice %arg2[%13, %c0_i32_137] : memref<64x128xf32, #tpu.memory_space<any>> -> memref<1x128xf32, #tpu.memory_space<any>>
    %c3_i32_138 = arith.constant 3 : i32
    %c0_i32_139 = arith.constant 0 : i32
    %263 = tpu.memref_slice %arg14[%c3_i32_138, %c0_i32_139] : memref<64x128xf32, #tpu.memory_space<vmem>> -> memref<1x128xf32, #tpu.memory_space<vmem>>
    tpu.wait_dma2 semaphore(%arg15 : memref<!tpu.dma_semaphore, #tpu.memory_space<semaphore_mem>>) src(%262 : memref<1x128xf32, #tpu.memory_space<any>>) dst(%263 : memref<1x128xf32, #tpu.memory_space<vmem>>)
    %c0_i32_140 = arith.constant 0 : i32
    %264 = tpu.memref_slice %arg2[%17, %c0_i32_140] : memref<64x128xf32, #tpu.memory_space<any>> -> memref<1x128xf32, #tpu.memory_space<any>>
    %c4_i32_141 = arith.constant 4 : i32
    %c0_i32_142 = arith.constant 0 : i32
    %265 = tpu.memref_slice %arg14[%c4_i32_141, %c0_i32_142] : memref<64x128xf32, #tpu.memory_space<vmem>> -> memref<1x128xf32, #tpu.memory_space<vmem>>
    tpu.wait_dma2 semaphore(%arg15 : memref<!tpu.dma_semaphore, #tpu.memory_space<semaphore_mem>>) src(%264 : memref<1x128xf32, #tpu.memory_space<any>>) dst(%265 : memref<1x128xf32, #tpu.memory_space<vmem>>)
    %c0_i32_143 = arith.constant 0 : i32
    %266 = tpu.memref_slice %arg2[%21, %c0_i32_143] : memref<64x128xf32, #tpu.memory_space<any>> -> memref<1x128xf32, #tpu.memory_space<any>>
    %c5_i32_144 = arith.constant 5 : i32
    %c0_i32_145 = arith.constant 0 : i32
    %267 = tpu.memref_slice %arg14[%c5_i32_144, %c0_i32_145] : memref<64x128xf32, #tpu.memory_space<vmem>> -> memref<1x128xf32, #tpu.memory_space<vmem>>
    tpu.wait_dma2 semaphore(%arg15 : memref<!tpu.dma_semaphore, #tpu.memory_space<semaphore_mem>>) src(%266 : memref<1x128xf32, #tpu.memory_space<any>>) dst(%267 : memref<1x128xf32, #tpu.memory_space<vmem>>)
    %c0_i32_146 = arith.constant 0 : i32
    %268 = tpu.memref_slice %arg2[%25, %c0_i32_146] : memref<64x128xf32, #tpu.memory_space<any>> -> memref<1x128xf32, #tpu.memory_space<any>>
    %c6_i32_147 = arith.constant 6 : i32
    %c0_i32_148 = arith.constant 0 : i32
    %269 = tpu.memref_slice %arg14[%c6_i32_147, %c0_i32_148] : memref<64x128xf32, #tpu.memory_space<vmem>> -> memref<1x128xf32, #tpu.memory_space<vmem>>
    tpu.wait_dma2 semaphore(%arg15 : memref<!tpu.dma_semaphore, #tpu.memory_space<semaphore_mem>>) src(%268 : memref<1x128xf32, #tpu.memory_space<any>>) dst(%269 : memref<1x128xf32, #tpu.memory_space<vmem>>)
    %c0_i32_149 = arith.constant 0 : i32
    %270 = tpu.memref_slice %arg2[%29, %c0_i32_149] : memref<64x128xf32, #tpu.memory_space<any>> -> memref<1x128xf32, #tpu.memory_space<any>>
    %c7_i32_150 = arith.constant 7 : i32
    %c0_i32_151 = arith.constant 0 : i32
    %271 = tpu.memref_slice %arg14[%c7_i32_150, %c0_i32_151] : memref<64x128xf32, #tpu.memory_space<vmem>> -> memref<1x128xf32, #tpu.memory_space<vmem>>
    tpu.wait_dma2 semaphore(%arg15 : memref<!tpu.dma_semaphore, #tpu.memory_space<semaphore_mem>>) src(%270 : memref<1x128xf32, #tpu.memory_space<any>>) dst(%271 : memref<1x128xf32, #tpu.memory_space<vmem>>)
    %c0_i32_152 = arith.constant 0 : i32
    %272 = tpu.memref_slice %arg2[%33, %c0_i32_152] : memref<64x128xf32, #tpu.memory_space<any>> -> memref<1x128xf32, #tpu.memory_space<any>>
    %c8_i32_153 = arith.constant 8 : i32
    %c0_i32_154 = arith.constant 0 : i32
    %273 = tpu.memref_slice %arg14[%c8_i32_153, %c0_i32_154] : memref<64x128xf32, #tpu.memory_space<vmem>> -> memref<1x128xf32, #tpu.memory_space<vmem>>
    tpu.wait_dma2 semaphore(%arg15 : memref<!tpu.dma_semaphore, #tpu.memory_space<semaphore_mem>>) src(%272 : memref<1x128xf32, #tpu.memory_space<any>>) dst(%273 : memref<1x128xf32, #tpu.memory_space<vmem>>)
    %c0_i32_155 = arith.constant 0 : i32
    %274 = tpu.memref_slice %arg2[%37, %c0_i32_155] : memref<64x128xf32, #tpu.memory_space<any>> -> memref<1x128xf32, #tpu.memory_space<any>>
    %c9_i32_156 = arith.constant 9 : i32
    %c0_i32_157 = arith.constant 0 : i32
    %275 = tpu.memref_slice %arg14[%c9_i32_156, %c0_i32_157] : memref<64x128xf32, #tpu.memory_space<vmem>> -> memref<1x128xf32, #tpu.memory_space<vmem>>
    tpu.wait_dma2 semaphore(%arg15 : memref<!tpu.dma_semaphore, #tpu.memory_space<semaphore_mem>>) src(%274 : memref<1x128xf32, #tpu.memory_space<any>>) dst(%275 : memref<1x128xf32, #tpu.memory_space<vmem>>)
    %c0_i32_158 = arith.constant 0 : i32
    %276 = tpu.memref_slice %arg2[%41, %c0_i32_158] : memref<64x128xf32, #tpu.memory_space<any>> -> memref<1x128xf32, #tpu.memory_space<any>>
    %c10_i32_159 = arith.constant 10 : i32
    %c0_i32_160 = arith.constant 0 : i32
    %277 = tpu.memref_slice %arg14[%c10_i32_159, %c0_i32_160] : memref<64x128xf32, #tpu.memory_space<vmem>> -> memref<1x128xf32, #tpu.memory_space<vmem>>
    tpu.wait_dma2 semaphore(%arg15 : memref<!tpu.dma_semaphore, #tpu.memory_space<semaphore_mem>>) src(%276 : memref<1x128xf32, #tpu.memory_space<any>>) dst(%277 : memref<1x128xf32, #tpu.memory_space<vmem>>)
    %c0_i32_161 = arith.constant 0 : i32
    %278 = tpu.memref_slice %arg2[%45, %c0_i32_161] : memref<64x128xf32, #tpu.memory_space<any>> -> memref<1x128xf32, #tpu.memory_space<any>>
    %c11_i32_162 = arith.constant 11 : i32
    %c0_i32_163 = arith.constant 0 : i32
    %279 = tpu.memref_slice %arg14[%c11_i32_162, %c0_i32_163] : memref<64x128xf32, #tpu.memory_space<vmem>> -> memref<1x128xf32, #tpu.memory_space<vmem>>
    tpu.wait_dma2 semaphore(%arg15 : memref<!tpu.dma_semaphore, #tpu.memory_space<semaphore_mem>>) src(%278 : memref<1x128xf32, #tpu.memory_space<any>>) dst(%279 : memref<1x128xf32, #tpu.memory_space<vmem>>)
    %c0_i32_164 = arith.constant 0 : i32
    %280 = tpu.memref_slice %arg2[%49, %c0_i32_164] : memref<64x128xf32, #tpu.memory_space<any>> -> memref<1x128xf32, #tpu.memory_space<any>>
    %c12_i32_165 = arith.constant 12 : i32
    %c0_i32_166 = arith.constant 0 : i32
    %281 = tpu.memref_slice %arg14[%c12_i32_165, %c0_i32_166] : memref<64x128xf32, #tpu.memory_space<vmem>> -> memref<1x128xf32, #tpu.memory_space<vmem>>
    tpu.wait_dma2 semaphore(%arg15 : memref<!tpu.dma_semaphore, #tpu.memory_space<semaphore_mem>>) src(%280 : memref<1x128xf32, #tpu.memory_space<any>>) dst(%281 : memref<1x128xf32, #tpu.memory_space<vmem>>)
    %c0_i32_167 = arith.constant 0 : i32
    %282 = tpu.memref_slice %arg2[%53, %c0_i32_167] : memref<64x128xf32, #tpu.memory_space<any>> -> memref<1x128xf32, #tpu.memory_space<any>>
    %c13_i32_168 = arith.constant 13 : i32
    %c0_i32_169 = arith.constant 0 : i32
    %283 = tpu.memref_slice %arg14[%c13_i32_168, %c0_i32_169] : memref<64x128xf32, #tpu.memory_space<vmem>> -> memref<1x128xf32, #tpu.memory_space<vmem>>
    tpu.wait_dma2 semaphore(%arg15 : memref<!tpu.dma_semaphore, #tpu.memory_space<semaphore_mem>>) src(%282 : memref<1x128xf32, #tpu.memory_space<any>>) dst(%283 : memref<1x128xf32, #tpu.memory_space<vmem>>)
    %c0_i32_170 = arith.constant 0 : i32
    %284 = tpu.memref_slice %arg2[%57, %c0_i32_170] : memref<64x128xf32, #tpu.memory_space<any>> -> memref<1x128xf32, #tpu.memory_space<any>>
    %c14_i32_171 = arith.constant 14 : i32
    %c0_i32_172 = arith.constant 0 : i32
    %285 = tpu.memref_slice %arg14[%c14_i32_171, %c0_i32_172] : memref<64x128xf32, #tpu.memory_space<vmem>> -> memref<1x128xf32, #tpu.memory_space<vmem>>
    tpu.wait_dma2 semaphore(%arg15 : memref<!tpu.dma_semaphore, #tpu.memory_space<semaphore_mem>>) src(%284 : memref<1x128xf32, #tpu.memory_space<any>>) dst(%285 : memref<1x128xf32, #tpu.memory_space<vmem>>)
    %c0_i32_173 = arith.constant 0 : i32
    %286 = tpu.memref_slice %arg2[%61, %c0_i32_173] : memref<64x128xf32, #tpu.memory_space<any>> -> memref<1x128xf32, #tpu.memory_space<any>>
    %c15_i32_174 = arith.constant 15 : i32
    %c0_i32_175 = arith.constant 0 : i32
    %287 = tpu.memref_slice %arg14[%c15_i32_174, %c0_i32_175] : memref<64x128xf32, #tpu.memory_space<vmem>> -> memref<1x128xf32, #tpu.memory_space<vmem>>
    tpu.wait_dma2 semaphore(%arg15 : memref<!tpu.dma_semaphore, #tpu.memory_space<semaphore_mem>>) src(%286 : memref<1x128xf32, #tpu.memory_space<any>>) dst(%287 : memref<1x128xf32, #tpu.memory_space<vmem>>)
    %c0_i32_176 = arith.constant 0 : i32
    %288 = tpu.memref_slice %arg2[%65, %c0_i32_176] : memref<64x128xf32, #tpu.memory_space<any>> -> memref<1x128xf32, #tpu.memory_space<any>>
    %c16_i32_177 = arith.constant 16 : i32
    %c0_i32_178 = arith.constant 0 : i32
    %289 = tpu.memref_slice %arg14[%c16_i32_177, %c0_i32_178] : memref<64x128xf32, #tpu.memory_space<vmem>> -> memref<1x128xf32, #tpu.memory_space<vmem>>
    tpu.wait_dma2 semaphore(%arg15 : memref<!tpu.dma_semaphore, #tpu.memory_space<semaphore_mem>>) src(%288 : memref<1x128xf32, #tpu.memory_space<any>>) dst(%289 : memref<1x128xf32, #tpu.memory_space<vmem>>)
    %c0_i32_179 = arith.constant 0 : i32
    %290 = tpu.memref_slice %arg2[%69, %c0_i32_179] : memref<64x128xf32, #tpu.memory_space<any>> -> memref<1x128xf32, #tpu.memory_space<any>>
    %c17_i32_180 = arith.constant 17 : i32
    %c0_i32_181 = arith.constant 0 : i32
    %291 = tpu.memref_slice %arg14[%c17_i32_180, %c0_i32_181] : memref<64x128xf32, #tpu.memory_space<vmem>> -> memref<1x128xf32, #tpu.memory_space<vmem>>
    tpu.wait_dma2 semaphore(%arg15 : memref<!tpu.dma_semaphore, #tpu.memory_space<semaphore_mem>>) src(%290 : memref<1x128xf32, #tpu.memory_space<any>>) dst(%291 : memref<1x128xf32, #tpu.memory_space<vmem>>)
    %c0_i32_182 = arith.constant 0 : i32
    %292 = tpu.memref_slice %arg2[%73, %c0_i32_182] : memref<64x128xf32, #tpu.memory_space<any>> -> memref<1x128xf32, #tpu.memory_space<any>>
    %c18_i32_183 = arith.constant 18 : i32
    %c0_i32_184 = arith.constant 0 : i32
    %293 = tpu.memref_slice %arg14[%c18_i32_183, %c0_i32_184] : memref<64x128xf32, #tpu.memory_space<vmem>> -> memref<1x128xf32, #tpu.memory_space<vmem>>
    tpu.wait_dma2 semaphore(%arg15 : memref<!tpu.dma_semaphore, #tpu.memory_space<semaphore_mem>>) src(%292 : memref<1x128xf32, #tpu.memory_space<any>>) dst(%293 : memref<1x128xf32, #tpu.memory_space<vmem>>)
    %c0_i32_185 = arith.constant 0 : i32
    %294 = tpu.memref_slice %arg2[%77, %c0_i32_185] : memref<64x128xf32, #tpu.memory_space<any>> -> memref<1x128xf32, #tpu.memory_space<any>>
    %c19_i32_186 = arith.constant 19 : i32
    %c0_i32_187 = arith.constant 0 : i32
    %295 = tpu.memref_slice %arg14[%c19_i32_186, %c0_i32_187] : memref<64x128xf32, #tpu.memory_space<vmem>> -> memref<1x128xf32, #tpu.memory_space<vmem>>
    tpu.wait_dma2 semaphore(%arg15 : memref<!tpu.dma_semaphore, #tpu.memory_space<semaphore_mem>>) src(%294 : memref<1x128xf32, #tpu.memory_space<any>>) dst(%295 : memref<1x128xf32, #tpu.memory_space<vmem>>)
    %c0_i32_188 = arith.constant 0 : i32
    %296 = tpu.memref_slice %arg2[%81, %c0_i32_188] : memref<64x128xf32, #tpu.memory_space<any>> -> memref<1x128xf32, #tpu.memory_space<any>>
    %c20_i32_189 = arith.constant 20 : i32
    %c0_i32_190 = arith.constant 0 : i32
    %297 = tpu.memref_slice %arg14[%c20_i32_189, %c0_i32_190] : memref<64x128xf32, #tpu.memory_space<vmem>> -> memref<1x128xf32, #tpu.memory_space<vmem>>
    tpu.wait_dma2 semaphore(%arg15 : memref<!tpu.dma_semaphore, #tpu.memory_space<semaphore_mem>>) src(%296 : memref<1x128xf32, #tpu.memory_space<any>>) dst(%297 : memref<1x128xf32, #tpu.memory_space<vmem>>)
    %c0_i32_191 = arith.constant 0 : i32
    %298 = tpu.memref_slice %arg2[%85, %c0_i32_191] : memref<64x128xf32, #tpu.memory_space<any>> -> memref<1x128xf32, #tpu.memory_space<any>>
    %c21_i32_192 = arith.constant 21 : i32
    %c0_i32_193 = arith.constant 0 : i32
    %299 = tpu.memref_slice %arg14[%c21_i32_192, %c0_i32_193] : memref<64x128xf32, #tpu.memory_space<vmem>> -> memref<1x128xf32, #tpu.memory_space<vmem>>
    tpu.wait_dma2 semaphore(%arg15 : memref<!tpu.dma_semaphore, #tpu.memory_space<semaphore_mem>>) src(%298 : memref<1x128xf32, #tpu.memory_space<any>>) dst(%299 : memref<1x128xf32, #tpu.memory_space<vmem>>)
    %c0_i32_194 = arith.constant 0 : i32
    %300 = tpu.memref_slice %arg2[%89, %c0_i32_194] : memref<64x128xf32, #tpu.memory_space<any>> -> memref<1x128xf32, #tpu.memory_space<any>>
    %c22_i32_195 = arith.constant 22 : i32
    %c0_i32_196 = arith.constant 0 : i32
    %301 = tpu.memref_slice %arg14[%c22_i32_195, %c0_i32_196] : memref<64x128xf32, #tpu.memory_space<vmem>> -> memref<1x128xf32, #tpu.memory_space<vmem>>
    tpu.wait_dma2 semaphore(%arg15 : memref<!tpu.dma_semaphore, #tpu.memory_space<semaphore_mem>>) src(%300 : memref<1x128xf32, #tpu.memory_space<any>>) dst(%301 : memref<1x128xf32, #tpu.memory_space<vmem>>)
    %c0_i32_197 = arith.constant 0 : i32
    %302 = tpu.memref_slice %arg2[%93, %c0_i32_197] : memref<64x128xf32, #tpu.memory_space<any>> -> memref<1x128xf32, #tpu.memory_space<any>>
    %c23_i32_198 = arith.constant 23 : i32
    %c0_i32_199 = arith.constant 0 : i32
    %303 = tpu.memref_slice %arg14[%c23_i32_198, %c0_i32_199] : memref<64x128xf32, #tpu.memory_space<vmem>> -> memref<1x128xf32, #tpu.memory_space<vmem>>
    tpu.wait_dma2 semaphore(%arg15 : memref<!tpu.dma_semaphore, #tpu.memory_space<semaphore_mem>>) src(%302 : memref<1x128xf32, #tpu.memory_space<any>>) dst(%303 : memref<1x128xf32, #tpu.memory_space<vmem>>)
    %c0_i32_200 = arith.constant 0 : i32
    %304 = tpu.memref_slice %arg2[%97, %c0_i32_200] : memref<64x128xf32, #tpu.memory_space<any>> -> memref<1x128xf32, #tpu.memory_space<any>>
    %c24_i32_201 = arith.constant 24 : i32
    %c0_i32_202 = arith.constant 0 : i32
    %305 = tpu.memref_slice %arg14[%c24_i32_201, %c0_i32_202] : memref<64x128xf32, #tpu.memory_space<vmem>> -> memref<1x128xf32, #tpu.memory_space<vmem>>
    tpu.wait_dma2 semaphore(%arg15 : memref<!tpu.dma_semaphore, #tpu.memory_space<semaphore_mem>>) src(%304 : memref<1x128xf32, #tpu.memory_space<any>>) dst(%305 : memref<1x128xf32, #tpu.memory_space<vmem>>)
    %c0_i32_203 = arith.constant 0 : i32
    %306 = tpu.memref_slice %arg2[%101, %c0_i32_203] : memref<64x128xf32, #tpu.memory_space<any>> -> memref<1x128xf32, #tpu.memory_space<any>>
    %c25_i32_204 = arith.constant 25 : i32
    %c0_i32_205 = arith.constant 0 : i32
    %307 = tpu.memref_slice %arg14[%c25_i32_204, %c0_i32_205] : memref<64x128xf32, #tpu.memory_space<vmem>> -> memref<1x128xf32, #tpu.memory_space<vmem>>
    tpu.wait_dma2 semaphore(%arg15 : memref<!tpu.dma_semaphore, #tpu.memory_space<semaphore_mem>>) src(%306 : memref<1x128xf32, #tpu.memory_space<any>>) dst(%307 : memref<1x128xf32, #tpu.memory_space<vmem>>)
    %c0_i32_206 = arith.constant 0 : i32
    %308 = tpu.memref_slice %arg2[%105, %c0_i32_206] : memref<64x128xf32, #tpu.memory_space<any>> -> memref<1x128xf32, #tpu.memory_space<any>>
    %c26_i32_207 = arith.constant 26 : i32
    %c0_i32_208 = arith.constant 0 : i32
    %309 = tpu.memref_slice %arg14[%c26_i32_207, %c0_i32_208] : memref<64x128xf32, #tpu.memory_space<vmem>> -> memref<1x128xf32, #tpu.memory_space<vmem>>
    tpu.wait_dma2 semaphore(%arg15 : memref<!tpu.dma_semaphore, #tpu.memory_space<semaphore_mem>>) src(%308 : memref<1x128xf32, #tpu.memory_space<any>>) dst(%309 : memref<1x128xf32, #tpu.memory_space<vmem>>)
    %c0_i32_209 = arith.constant 0 : i32
    %310 = tpu.memref_slice %arg2[%109, %c0_i32_209] : memref<64x128xf32, #tpu.memory_space<any>> -> memref<1x128xf32, #tpu.memory_space<any>>
    %c27_i32_210 = arith.constant 27 : i32
    %c0_i32_211 = arith.constant 0 : i32
    %311 = tpu.memref_slice %arg14[%c27_i32_210, %c0_i32_211] : memref<64x128xf32, #tpu.memory_space<vmem>> -> memref<1x128xf32, #tpu.memory_space<vmem>>
    tpu.wait_dma2 semaphore(%arg15 : memref<!tpu.dma_semaphore, #tpu.memory_space<semaphore_mem>>) src(%310 : memref<1x128xf32, #tpu.memory_space<any>>) dst(%311 : memref<1x128xf32, #tpu.memory_space<vmem>>)
    %c0_i32_212 = arith.constant 0 : i32
    %312 = tpu.memref_slice %arg2[%113, %c0_i32_212] : memref<64x128xf32, #tpu.memory_space<any>> -> memref<1x128xf32, #tpu.memory_space<any>>
    %c28_i32_213 = arith.constant 28 : i32
    %c0_i32_214 = arith.constant 0 : i32
    %313 = tpu.memref_slice %arg14[%c28_i32_213, %c0_i32_214] : memref<64x128xf32, #tpu.memory_space<vmem>> -> memref<1x128xf32, #tpu.memory_space<vmem>>
    tpu.wait_dma2 semaphore(%arg15 : memref<!tpu.dma_semaphore, #tpu.memory_space<semaphore_mem>>) src(%312 : memref<1x128xf32, #tpu.memory_space<any>>) dst(%313 : memref<1x128xf32, #tpu.memory_space<vmem>>)
    %c0_i32_215 = arith.constant 0 : i32
    %314 = tpu.memref_slice %arg2[%117, %c0_i32_215] : memref<64x128xf32, #tpu.memory_space<any>> -> memref<1x128xf32, #tpu.memory_space<any>>
    %c29_i32_216 = arith.constant 29 : i32
    %c0_i32_217 = arith.constant 0 : i32
    %315 = tpu.memref_slice %arg14[%c29_i32_216, %c0_i32_217] : memref<64x128xf32, #tpu.memory_space<vmem>> -> memref<1x128xf32, #tpu.memory_space<vmem>>
    tpu.wait_dma2 semaphore(%arg15 : memref<!tpu.dma_semaphore, #tpu.memory_space<semaphore_mem>>) src(%314 : memref<1x128xf32, #tpu.memory_space<any>>) dst(%315 : memref<1x128xf32, #tpu.memory_space<vmem>>)
    %c0_i32_218 = arith.constant 0 : i32
    %316 = tpu.memref_slice %arg2[%121, %c0_i32_218] : memref<64x128xf32, #tpu.memory_space<any>> -> memref<1x128xf32, #tpu.memory_space<any>>
    %c30_i32_219 = arith.constant 30 : i32
    %c0_i32_220 = arith.constant 0 : i32
    %317 = tpu.memref_slice %arg14[%c30_i32_219, %c0_i32_220] : memref<64x128xf32, #tpu.memory_space<vmem>> -> memref<1x128xf32, #tpu.memory_space<vmem>>
    tpu.wait_dma2 semaphore(%arg15 : memref<!tpu.dma_semaphore, #tpu.memory_space<semaphore_mem>>) src(%316 : memref<1x128xf32, #tpu.memory_space<any>>) dst(%317 : memref<1x128xf32, #tpu.memory_space<vmem>>)
    %c0_i32_221 = arith.constant 0 : i32
    %318 = tpu.memref_slice %arg2[%125, %c0_i32_221] : memref<64x128xf32, #tpu.memory_space<any>> -> memref<1x128xf32, #tpu.memory_space<any>>
    %c31_i32_222 = arith.constant 31 : i32
    %c0_i32_223 = arith.constant 0 : i32
    %319 = tpu.memref_slice %arg14[%c31_i32_222, %c0_i32_223] : memref<64x128xf32, #tpu.memory_space<vmem>> -> memref<1x128xf32, #tpu.memory_space<vmem>>
    tpu.wait_dma2 semaphore(%arg15 : memref<!tpu.dma_semaphore, #tpu.memory_space<semaphore_mem>>) src(%318 : memref<1x128xf32, #tpu.memory_space<any>>) dst(%319 : memref<1x128xf32, #tpu.memory_space<vmem>>)
    %c0_i32_224 = arith.constant 0 : i32
    %320 = tpu.memref_slice %arg2[%129, %c0_i32_224] : memref<64x128xf32, #tpu.memory_space<any>> -> memref<1x128xf32, #tpu.memory_space<any>>
    %c32_i32_225 = arith.constant 32 : i32
    %c0_i32_226 = arith.constant 0 : i32
    %321 = tpu.memref_slice %arg14[%c32_i32_225, %c0_i32_226] : memref<64x128xf32, #tpu.memory_space<vmem>> -> memref<1x128xf32, #tpu.memory_space<vmem>>
    tpu.wait_dma2 semaphore(%arg15 : memref<!tpu.dma_semaphore, #tpu.memory_space<semaphore_mem>>) src(%320 : memref<1x128xf32, #tpu.memory_space<any>>) dst(%321 : memref<1x128xf32, #tpu.memory_space<vmem>>)
    %c0_i32_227 = arith.constant 0 : i32
    %322 = tpu.memref_slice %arg2[%133, %c0_i32_227] : memref<64x128xf32, #tpu.memory_space<any>> -> memref<1x128xf32, #tpu.memory_space<any>>
    %c33_i32_228 = arith.constant 33 : i32
    %c0_i32_229 = arith.constant 0 : i32
    %323 = tpu.memref_slice %arg14[%c33_i32_228, %c0_i32_229] : memref<64x128xf32, #tpu.memory_space<vmem>> -> memref<1x128xf32, #tpu.memory_space<vmem>>
    tpu.wait_dma2 semaphore(%arg15 : memref<!tpu.dma_semaphore, #tpu.memory_space<semaphore_mem>>) src(%322 : memref<1x128xf32, #tpu.memory_space<any>>) dst(%323 : memref<1x128xf32, #tpu.memory_space<vmem>>)
    %c0_i32_230 = arith.constant 0 : i32
    %324 = tpu.memref_slice %arg2[%137, %c0_i32_230] : memref<64x128xf32, #tpu.memory_space<any>> -> memref<1x128xf32, #tpu.memory_space<any>>
    %c34_i32_231 = arith.constant 34 : i32
    %c0_i32_232 = arith.constant 0 : i32
    %325 = tpu.memref_slice %arg14[%c34_i32_231, %c0_i32_232] : memref<64x128xf32, #tpu.memory_space<vmem>> -> memref<1x128xf32, #tpu.memory_space<vmem>>
    tpu.wait_dma2 semaphore(%arg15 : memref<!tpu.dma_semaphore, #tpu.memory_space<semaphore_mem>>) src(%324 : memref<1x128xf32, #tpu.memory_space<any>>) dst(%325 : memref<1x128xf32, #tpu.memory_space<vmem>>)
    %c0_i32_233 = arith.constant 0 : i32
    %326 = tpu.memref_slice %arg2[%141, %c0_i32_233] : memref<64x128xf32, #tpu.memory_space<any>> -> memref<1x128xf32, #tpu.memory_space<any>>
    %c35_i32_234 = arith.constant 35 : i32
    %c0_i32_235 = arith.constant 0 : i32
    %327 = tpu.memref_slice %arg14[%c35_i32_234, %c0_i32_235] : memref<64x128xf32, #tpu.memory_space<vmem>> -> memref<1x128xf32, #tpu.memory_space<vmem>>
    tpu.wait_dma2 semaphore(%arg15 : memref<!tpu.dma_semaphore, #tpu.memory_space<semaphore_mem>>) src(%326 : memref<1x128xf32, #tpu.memory_space<any>>) dst(%327 : memref<1x128xf32, #tpu.memory_space<vmem>>)
    %c0_i32_236 = arith.constant 0 : i32
    %328 = tpu.memref_slice %arg2[%145, %c0_i32_236] : memref<64x128xf32, #tpu.memory_space<any>> -> memref<1x128xf32, #tpu.memory_space<any>>
    %c36_i32_237 = arith.constant 36 : i32
    %c0_i32_238 = arith.constant 0 : i32
    %329 = tpu.memref_slice %arg14[%c36_i32_237, %c0_i32_238] : memref<64x128xf32, #tpu.memory_space<vmem>> -> memref<1x128xf32, #tpu.memory_space<vmem>>
    tpu.wait_dma2 semaphore(%arg15 : memref<!tpu.dma_semaphore, #tpu.memory_space<semaphore_mem>>) src(%328 : memref<1x128xf32, #tpu.memory_space<any>>) dst(%329 : memref<1x128xf32, #tpu.memory_space<vmem>>)
    %c0_i32_239 = arith.constant 0 : i32
    %330 = tpu.memref_slice %arg2[%149, %c0_i32_239] : memref<64x128xf32, #tpu.memory_space<any>> -> memref<1x128xf32, #tpu.memory_space<any>>
    %c37_i32_240 = arith.constant 37 : i32
    %c0_i32_241 = arith.constant 0 : i32
    %331 = tpu.memref_slice %arg14[%c37_i32_240, %c0_i32_241] : memref<64x128xf32, #tpu.memory_space<vmem>> -> memref<1x128xf32, #tpu.memory_space<vmem>>
    tpu.wait_dma2 semaphore(%arg15 : memref<!tpu.dma_semaphore, #tpu.memory_space<semaphore_mem>>) src(%330 : memref<1x128xf32, #tpu.memory_space<any>>) dst(%331 : memref<1x128xf32, #tpu.memory_space<vmem>>)
    %c0_i32_242 = arith.constant 0 : i32
    %332 = tpu.memref_slice %arg2[%153, %c0_i32_242] : memref<64x128xf32, #tpu.memory_space<any>> -> memref<1x128xf32, #tpu.memory_space<any>>
    %c38_i32_243 = arith.constant 38 : i32
    %c0_i32_244 = arith.constant 0 : i32
    %333 = tpu.memref_slice %arg14[%c38_i32_243, %c0_i32_244] : memref<64x128xf32, #tpu.memory_space<vmem>> -> memref<1x128xf32, #tpu.memory_space<vmem>>
    tpu.wait_dma2 semaphore(%arg15 : memref<!tpu.dma_semaphore, #tpu.memory_space<semaphore_mem>>) src(%332 : memref<1x128xf32, #tpu.memory_space<any>>) dst(%333 : memref<1x128xf32, #tpu.memory_space<vmem>>)
    %c0_i32_245 = arith.constant 0 : i32
    %334 = tpu.memref_slice %arg2[%157, %c0_i32_245] : memref<64x128xf32, #tpu.memory_space<any>> -> memref<1x128xf32, #tpu.memory_space<any>>
    %c39_i32_246 = arith.constant 39 : i32
    %c0_i32_247 = arith.constant 0 : i32
    %335 = tpu.memref_slice %arg14[%c39_i32_246, %c0_i32_247] : memref<64x128xf32, #tpu.memory_space<vmem>> -> memref<1x128xf32, #tpu.memory_space<vmem>>
    tpu.wait_dma2 semaphore(%arg15 : memref<!tpu.dma_semaphore, #tpu.memory_space<semaphore_mem>>) src(%334 : memref<1x128xf32, #tpu.memory_space<any>>) dst(%335 : memref<1x128xf32, #tpu.memory_space<vmem>>)
    %c0_i32_248 = arith.constant 0 : i32
    %336 = tpu.memref_slice %arg2[%161, %c0_i32_248] : memref<64x128xf32, #tpu.memory_space<any>> -> memref<1x128xf32, #tpu.memory_space<any>>
    %c40_i32_249 = arith.constant 40 : i32
    %c0_i32_250 = arith.constant 0 : i32
    %337 = tpu.memref_slice %arg14[%c40_i32_249, %c0_i32_250] : memref<64x128xf32, #tpu.memory_space<vmem>> -> memref<1x128xf32, #tpu.memory_space<vmem>>
    tpu.wait_dma2 semaphore(%arg15 : memref<!tpu.dma_semaphore, #tpu.memory_space<semaphore_mem>>) src(%336 : memref<1x128xf32, #tpu.memory_space<any>>) dst(%337 : memref<1x128xf32, #tpu.memory_space<vmem>>)
    %c0_i32_251 = arith.constant 0 : i32
    %338 = tpu.memref_slice %arg2[%165, %c0_i32_251] : memref<64x128xf32, #tpu.memory_space<any>> -> memref<1x128xf32, #tpu.memory_space<any>>
    %c41_i32_252 = arith.constant 41 : i32
    %c0_i32_253 = arith.constant 0 : i32
    %339 = tpu.memref_slice %arg14[%c41_i32_252, %c0_i32_253] : memref<64x128xf32, #tpu.memory_space<vmem>> -> memref<1x128xf32, #tpu.memory_space<vmem>>
    tpu.wait_dma2 semaphore(%arg15 : memref<!tpu.dma_semaphore, #tpu.memory_space<semaphore_mem>>) src(%338 : memref<1x128xf32, #tpu.memory_space<any>>) dst(%339 : memref<1x128xf32, #tpu.memory_space<vmem>>)
    %c0_i32_254 = arith.constant 0 : i32
    %340 = tpu.memref_slice %arg2[%169, %c0_i32_254] : memref<64x128xf32, #tpu.memory_space<any>> -> memref<1x128xf32, #tpu.memory_space<any>>
    %c42_i32_255 = arith.constant 42 : i32
    %c0_i32_256 = arith.constant 0 : i32
    %341 = tpu.memref_slice %arg14[%c42_i32_255, %c0_i32_256] : memref<64x128xf32, #tpu.memory_space<vmem>> -> memref<1x128xf32, #tpu.memory_space<vmem>>
    tpu.wait_dma2 semaphore(%arg15 : memref<!tpu.dma_semaphore, #tpu.memory_space<semaphore_mem>>) src(%340 : memref<1x128xf32, #tpu.memory_space<any>>) dst(%341 : memref<1x128xf32, #tpu.memory_space<vmem>>)
    %c0_i32_257 = arith.constant 0 : i32
    %342 = tpu.memref_slice %arg2[%173, %c0_i32_257] : memref<64x128xf32, #tpu.memory_space<any>> -> memref<1x128xf32, #tpu.memory_space<any>>
    %c43_i32_258 = arith.constant 43 : i32
    %c0_i32_259 = arith.constant 0 : i32
    %343 = tpu.memref_slice %arg14[%c43_i32_258, %c0_i32_259] : memref<64x128xf32, #tpu.memory_space<vmem>> -> memref<1x128xf32, #tpu.memory_space<vmem>>
    tpu.wait_dma2 semaphore(%arg15 : memref<!tpu.dma_semaphore, #tpu.memory_space<semaphore_mem>>) src(%342 : memref<1x128xf32, #tpu.memory_space<any>>) dst(%343 : memref<1x128xf32, #tpu.memory_space<vmem>>)
    %c0_i32_260 = arith.constant 0 : i32
    %344 = tpu.memref_slice %arg2[%177, %c0_i32_260] : memref<64x128xf32, #tpu.memory_space<any>> -> memref<1x128xf32, #tpu.memory_space<any>>
    %c44_i32_261 = arith.constant 44 : i32
    %c0_i32_262 = arith.constant 0 : i32
    %345 = tpu.memref_slice %arg14[%c44_i32_261, %c0_i32_262] : memref<64x128xf32, #tpu.memory_space<vmem>> -> memref<1x128xf32, #tpu.memory_space<vmem>>
    tpu.wait_dma2 semaphore(%arg15 : memref<!tpu.dma_semaphore, #tpu.memory_space<semaphore_mem>>) src(%344 : memref<1x128xf32, #tpu.memory_space<any>>) dst(%345 : memref<1x128xf32, #tpu.memory_space<vmem>>)
    %c0_i32_263 = arith.constant 0 : i32
    %346 = tpu.memref_slice %arg2[%181, %c0_i32_263] : memref<64x128xf32, #tpu.memory_space<any>> -> memref<1x128xf32, #tpu.memory_space<any>>
    %c45_i32_264 = arith.constant 45 : i32
    %c0_i32_265 = arith.constant 0 : i32
    %347 = tpu.memref_slice %arg14[%c45_i32_264, %c0_i32_265] : memref<64x128xf32, #tpu.memory_space<vmem>> -> memref<1x128xf32, #tpu.memory_space<vmem>>
    tpu.wait_dma2 semaphore(%arg15 : memref<!tpu.dma_semaphore, #tpu.memory_space<semaphore_mem>>) src(%346 : memref<1x128xf32, #tpu.memory_space<any>>) dst(%347 : memref<1x128xf32, #tpu.memory_space<vmem>>)
    %c0_i32_266 = arith.constant 0 : i32
    %348 = tpu.memref_slice %arg2[%185, %c0_i32_266] : memref<64x128xf32, #tpu.memory_space<any>> -> memref<1x128xf32, #tpu.memory_space<any>>
    %c46_i32_267 = arith.constant 46 : i32
    %c0_i32_268 = arith.constant 0 : i32
    %349 = tpu.memref_slice %arg14[%c46_i32_267, %c0_i32_268] : memref<64x128xf32, #tpu.memory_space<vmem>> -> memref<1x128xf32, #tpu.memory_space<vmem>>
    tpu.wait_dma2 semaphore(%arg15 : memref<!tpu.dma_semaphore, #tpu.memory_space<semaphore_mem>>) src(%348 : memref<1x128xf32, #tpu.memory_space<any>>) dst(%349 : memref<1x128xf32, #tpu.memory_space<vmem>>)
    %c0_i32_269 = arith.constant 0 : i32
    %350 = tpu.memref_slice %arg2[%189, %c0_i32_269] : memref<64x128xf32, #tpu.memory_space<any>> -> memref<1x128xf32, #tpu.memory_space<any>>
    %c47_i32_270 = arith.constant 47 : i32
    %c0_i32_271 = arith.constant 0 : i32
    %351 = tpu.memref_slice %arg14[%c47_i32_270, %c0_i32_271] : memref<64x128xf32, #tpu.memory_space<vmem>> -> memref<1x128xf32, #tpu.memory_space<vmem>>
    tpu.wait_dma2 semaphore(%arg15 : memref<!tpu.dma_semaphore, #tpu.memory_space<semaphore_mem>>) src(%350 : memref<1x128xf32, #tpu.memory_space<any>>) dst(%351 : memref<1x128xf32, #tpu.memory_space<vmem>>)
    %c0_i32_272 = arith.constant 0 : i32
    %352 = tpu.memref_slice %arg2[%193, %c0_i32_272] : memref<64x128xf32, #tpu.memory_space<any>> -> memref<1x128xf32, #tpu.memory_space<any>>
    %c48_i32_273 = arith.constant 48 : i32
    %c0_i32_274 = arith.constant 0 : i32
    %353 = tpu.memref_slice %arg14[%c48_i32_273, %c0_i32_274] : memref<64x128xf32, #tpu.memory_space<vmem>> -> memref<1x128xf32, #tpu.memory_space<vmem>>
    tpu.wait_dma2 semaphore(%arg15 : memref<!tpu.dma_semaphore, #tpu.memory_space<semaphore_mem>>) src(%352 : memref<1x128xf32, #tpu.memory_space<any>>) dst(%353 : memref<1x128xf32, #tpu.memory_space<vmem>>)
    %c0_i32_275 = arith.constant 0 : i32
    %354 = tpu.memref_slice %arg2[%197, %c0_i32_275] : memref<64x128xf32, #tpu.memory_space<any>> -> memref<1x128xf32, #tpu.memory_space<any>>
    %c49_i32_276 = arith.constant 49 : i32
    %c0_i32_277 = arith.constant 0 : i32
    %355 = tpu.memref_slice %arg14[%c49_i32_276, %c0_i32_277] : memref<64x128xf32, #tpu.memory_space<vmem>> -> memref<1x128xf32, #tpu.memory_space<vmem>>
    tpu.wait_dma2 semaphore(%arg15 : memref<!tpu.dma_semaphore, #tpu.memory_space<semaphore_mem>>) src(%354 : memref<1x128xf32, #tpu.memory_space<any>>) dst(%355 : memref<1x128xf32, #tpu.memory_space<vmem>>)
    %c0_i32_278 = arith.constant 0 : i32
    %356 = tpu.memref_slice %arg2[%201, %c0_i32_278] : memref<64x128xf32, #tpu.memory_space<any>> -> memref<1x128xf32, #tpu.memory_space<any>>
    %c50_i32_279 = arith.constant 50 : i32
    %c0_i32_280 = arith.constant 0 : i32
    %357 = tpu.memref_slice %arg14[%c50_i32_279, %c0_i32_280] : memref<64x128xf32, #tpu.memory_space<vmem>> -> memref<1x128xf32, #tpu.memory_space<vmem>>
    tpu.wait_dma2 semaphore(%arg15 : memref<!tpu.dma_semaphore, #tpu.memory_space<semaphore_mem>>) src(%356 : memref<1x128xf32, #tpu.memory_space<any>>) dst(%357 : memref<1x128xf32, #tpu.memory_space<vmem>>)
    %c0_i32_281 = arith.constant 0 : i32
    %358 = tpu.memref_slice %arg2[%205, %c0_i32_281] : memref<64x128xf32, #tpu.memory_space<any>> -> memref<1x128xf32, #tpu.memory_space<any>>
    %c51_i32_282 = arith.constant 51 : i32
    %c0_i32_283 = arith.constant 0 : i32
    %359 = tpu.memref_slice %arg14[%c51_i32_282, %c0_i32_283] : memref<64x128xf32, #tpu.memory_space<vmem>> -> memref<1x128xf32, #tpu.memory_space<vmem>>
    tpu.wait_dma2 semaphore(%arg15 : memref<!tpu.dma_semaphore, #tpu.memory_space<semaphore_mem>>) src(%358 : memref<1x128xf32, #tpu.memory_space<any>>) dst(%359 : memref<1x128xf32, #tpu.memory_space<vmem>>)
    %c0_i32_284 = arith.constant 0 : i32
    %360 = tpu.memref_slice %arg2[%209, %c0_i32_284] : memref<64x128xf32, #tpu.memory_space<any>> -> memref<1x128xf32, #tpu.memory_space<any>>
    %c52_i32_285 = arith.constant 52 : i32
    %c0_i32_286 = arith.constant 0 : i32
    %361 = tpu.memref_slice %arg14[%c52_i32_285, %c0_i32_286] : memref<64x128xf32, #tpu.memory_space<vmem>> -> memref<1x128xf32, #tpu.memory_space<vmem>>
    tpu.wait_dma2 semaphore(%arg15 : memref<!tpu.dma_semaphore, #tpu.memory_space<semaphore_mem>>) src(%360 : memref<1x128xf32, #tpu.memory_space<any>>) dst(%361 : memref<1x128xf32, #tpu.memory_space<vmem>>)
    %c0_i32_287 = arith.constant 0 : i32
    %362 = tpu.memref_slice %arg2[%213, %c0_i32_287] : memref<64x128xf32, #tpu.memory_space<any>> -> memref<1x128xf32, #tpu.memory_space<any>>
    %c53_i32_288 = arith.constant 53 : i32
    %c0_i32_289 = arith.constant 0 : i32
    %363 = tpu.memref_slice %arg14[%c53_i32_288, %c0_i32_289] : memref<64x128xf32, #tpu.memory_space<vmem>> -> memref<1x128xf32, #tpu.memory_space<vmem>>
    tpu.wait_dma2 semaphore(%arg15 : memref<!tpu.dma_semaphore, #tpu.memory_space<semaphore_mem>>) src(%362 : memref<1x128xf32, #tpu.memory_space<any>>) dst(%363 : memref<1x128xf32, #tpu.memory_space<vmem>>)
    %c0_i32_290 = arith.constant 0 : i32
    %364 = tpu.memref_slice %arg2[%217, %c0_i32_290] : memref<64x128xf32, #tpu.memory_space<any>> -> memref<1x128xf32, #tpu.memory_space<any>>
    %c54_i32_291 = arith.constant 54 : i32
    %c0_i32_292 = arith.constant 0 : i32
    %365 = tpu.memref_slice %arg14[%c54_i32_291, %c0_i32_292] : memref<64x128xf32, #tpu.memory_space<vmem>> -> memref<1x128xf32, #tpu.memory_space<vmem>>
    tpu.wait_dma2 semaphore(%arg15 : memref<!tpu.dma_semaphore, #tpu.memory_space<semaphore_mem>>) src(%364 : memref<1x128xf32, #tpu.memory_space<any>>) dst(%365 : memref<1x128xf32, #tpu.memory_space<vmem>>)
    %c0_i32_293 = arith.constant 0 : i32
    %366 = tpu.memref_slice %arg2[%221, %c0_i32_293] : memref<64x128xf32, #tpu.memory_space<any>> -> memref<1x128xf32, #tpu.memory_space<any>>
    %c55_i32_294 = arith.constant 55 : i32
    %c0_i32_295 = arith.constant 0 : i32
    %367 = tpu.memref_slice %arg14[%c55_i32_294, %c0_i32_295] : memref<64x128xf32, #tpu.memory_space<vmem>> -> memref<1x128xf32, #tpu.memory_space<vmem>>
    tpu.wait_dma2 semaphore(%arg15 : memref<!tpu.dma_semaphore, #tpu.memory_space<semaphore_mem>>) src(%366 : memref<1x128xf32, #tpu.memory_space<any>>) dst(%367 : memref<1x128xf32, #tpu.memory_space<vmem>>)
    %c0_i32_296 = arith.constant 0 : i32
    %368 = tpu.memref_slice %arg2[%225, %c0_i32_296] : memref<64x128xf32, #tpu.memory_space<any>> -> memref<1x128xf32, #tpu.memory_space<any>>
    %c56_i32_297 = arith.constant 56 : i32
    %c0_i32_298 = arith.constant 0 : i32
    %369 = tpu.memref_slice %arg14[%c56_i32_297, %c0_i32_298] : memref<64x128xf32, #tpu.memory_space<vmem>> -> memref<1x128xf32, #tpu.memory_space<vmem>>
    tpu.wait_dma2 semaphore(%arg15 : memref<!tpu.dma_semaphore, #tpu.memory_space<semaphore_mem>>) src(%368 : memref<1x128xf32, #tpu.memory_space<any>>) dst(%369 : memref<1x128xf32, #tpu.memory_space<vmem>>)
    %c0_i32_299 = arith.constant 0 : i32
    %370 = tpu.memref_slice %arg2[%229, %c0_i32_299] : memref<64x128xf32, #tpu.memory_space<any>> -> memref<1x128xf32, #tpu.memory_space<any>>
    %c57_i32_300 = arith.constant 57 : i32
    %c0_i32_301 = arith.constant 0 : i32
    %371 = tpu.memref_slice %arg14[%c57_i32_300, %c0_i32_301] : memref<64x128xf32, #tpu.memory_space<vmem>> -> memref<1x128xf32, #tpu.memory_space<vmem>>
    tpu.wait_dma2 semaphore(%arg15 : memref<!tpu.dma_semaphore, #tpu.memory_space<semaphore_mem>>) src(%370 : memref<1x128xf32, #tpu.memory_space<any>>) dst(%371 : memref<1x128xf32, #tpu.memory_space<vmem>>)
    %c0_i32_302 = arith.constant 0 : i32
    %372 = tpu.memref_slice %arg2[%233, %c0_i32_302] : memref<64x128xf32, #tpu.memory_space<any>> -> memref<1x128xf32, #tpu.memory_space<any>>
    %c58_i32_303 = arith.constant 58 : i32
    %c0_i32_304 = arith.constant 0 : i32
    %373 = tpu.memref_slice %arg14[%c58_i32_303, %c0_i32_304] : memref<64x128xf32, #tpu.memory_space<vmem>> -> memref<1x128xf32, #tpu.memory_space<vmem>>
    tpu.wait_dma2 semaphore(%arg15 : memref<!tpu.dma_semaphore, #tpu.memory_space<semaphore_mem>>) src(%372 : memref<1x128xf32, #tpu.memory_space<any>>) dst(%373 : memref<1x128xf32, #tpu.memory_space<vmem>>)
    %c0_i32_305 = arith.constant 0 : i32
    %374 = tpu.memref_slice %arg2[%237, %c0_i32_305] : memref<64x128xf32, #tpu.memory_space<any>> -> memref<1x128xf32, #tpu.memory_space<any>>
    %c59_i32_306 = arith.constant 59 : i32
    %c0_i32_307 = arith.constant 0 : i32
    %375 = tpu.memref_slice %arg14[%c59_i32_306, %c0_i32_307] : memref<64x128xf32, #tpu.memory_space<vmem>> -> memref<1x128xf32, #tpu.memory_space<vmem>>
    tpu.wait_dma2 semaphore(%arg15 : memref<!tpu.dma_semaphore, #tpu.memory_space<semaphore_mem>>) src(%374 : memref<1x128xf32, #tpu.memory_space<any>>) dst(%375 : memref<1x128xf32, #tpu.memory_space<vmem>>)
    %c0_i32_308 = arith.constant 0 : i32
    %376 = tpu.memref_slice %arg2[%241, %c0_i32_308] : memref<64x128xf32, #tpu.memory_space<any>> -> memref<1x128xf32, #tpu.memory_space<any>>
    %c60_i32_309 = arith.constant 60 : i32
    %c0_i32_310 = arith.constant 0 : i32
    %377 = tpu.memref_slice %arg14[%c60_i32_309, %c0_i32_310] : memref<64x128xf32, #tpu.memory_space<vmem>> -> memref<1x128xf32, #tpu.memory_space<vmem>>
    tpu.wait_dma2 semaphore(%arg15 : memref<!tpu.dma_semaphore, #tpu.memory_space<semaphore_mem>>) src(%376 : memref<1x128xf32, #tpu.memory_space<any>>) dst(%377 : memref<1x128xf32, #tpu.memory_space<vmem>>)
    %c0_i32_311 = arith.constant 0 : i32
    %378 = tpu.memref_slice %arg2[%245, %c0_i32_311] : memref<64x128xf32, #tpu.memory_space<any>> -> memref<1x128xf32, #tpu.memory_space<any>>
    %c61_i32_312 = arith.constant 61 : i32
    %c0_i32_313 = arith.constant 0 : i32
    %379 = tpu.memref_slice %arg14[%c61_i32_312, %c0_i32_313] : memref<64x128xf32, #tpu.memory_space<vmem>> -> memref<1x128xf32, #tpu.memory_space<vmem>>
    tpu.wait_dma2 semaphore(%arg15 : memref<!tpu.dma_semaphore, #tpu.memory_space<semaphore_mem>>) src(%378 : memref<1x128xf32, #tpu.memory_space<any>>) dst(%379 : memref<1x128xf32, #tpu.memory_space<vmem>>)
    %c0_i32_314 = arith.constant 0 : i32
    %380 = tpu.memref_slice %arg2[%249, %c0_i32_314] : memref<64x128xf32, #tpu.memory_space<any>> -> memref<1x128xf32, #tpu.memory_space<any>>
    %c62_i32_315 = arith.constant 62 : i32
    %c0_i32_316 = arith.constant 0 : i32
    %381 = tpu.memref_slice %arg14[%c62_i32_315, %c0_i32_316] : memref<64x128xf32, #tpu.memory_space<vmem>> -> memref<1x128xf32, #tpu.memory_space<vmem>>
    tpu.wait_dma2 semaphore(%arg15 : memref<!tpu.dma_semaphore, #tpu.memory_space<semaphore_mem>>) src(%380 : memref<1x128xf32, #tpu.memory_space<any>>) dst(%381 : memref<1x128xf32, #tpu.memory_space<vmem>>)
    %c0_i32_317 = arith.constant 0 : i32
    %382 = tpu.memref_slice %arg2[%253, %c0_i32_317] : memref<64x128xf32, #tpu.memory_space<any>> -> memref<1x128xf32, #tpu.memory_space<any>>
    %c63_i32_318 = arith.constant 63 : i32
    %c0_i32_319 = arith.constant 0 : i32
    %383 = tpu.memref_slice %arg14[%c63_i32_318, %c0_i32_319] : memref<64x128xf32, #tpu.memory_space<vmem>> -> memref<1x128xf32, #tpu.memory_space<vmem>>
    tpu.wait_dma2 semaphore(%arg15 : memref<!tpu.dma_semaphore, #tpu.memory_space<semaphore_mem>>) src(%382 : memref<1x128xf32, #tpu.memory_space<any>>) dst(%383 : memref<1x128xf32, #tpu.memory_space<vmem>>)
    %c0_320 = arith.constant 0 : index
    %c0_321 = arith.constant 0 : index
    %384 = vector.load %arg14[%c0_320, %c0_321] : memref<64x128xf32, #tpu.memory_space<vmem>>, vector<64x128xf32>
    %c0_322 = arith.constant 0 : index
    %c0_323 = arith.constant 0 : index
    %385 = vector.load %arg3[%c0_322, %c0_323] : memref<128x128xf32, #tpu.memory_space<vmem>>, vector<128x128xf32>
    %cst = arith.constant dense<0.000000e+00> : vector<64x128xf32>
    %386 = tpu.matmul %384, %385, %cst {dimension_numbers = #tpu.dot_dimension_numbers<[1], [0], [0], [1], [0, 0, 1, 1], [], []>} : vector<64x128xf32>, vector<128x128xf32>, vector<64x128xf32> -> vector<64x128xf32>
    %c0_324 = arith.constant 0 : index
    %c0_325 = arith.constant 0 : index
    %387 = vector.load %arg5[%c0_324, %c0_325] : memref<1x128xf32, #tpu.memory_space<vmem>>, vector<1x128xf32>
    %388 = vector.broadcast %387 : vector<1x128xf32> to vector<64x128xf32>
    %389 = arith.addf %386, %388 : vector<64x128xf32>
    %c0_326 = arith.constant 0 : index
    %c0_327 = arith.constant 0 : index
    %390 = vector.load %arg16[%c0_326, %c0_327] : memref<64x128xf32, #tpu.memory_space<vmem>>, vector<64x128xf32>
    tpu.vector_store %arg16[%c0_326, %c0_327], %389 {strides = array<i32>} : memref<64x128xf32, #tpu.memory_space<vmem>>, vector<64x128xf32>,
    %c0_328 = arith.constant 0 : index
    %c0_329 = arith.constant 0 : index
    %391 = vector.load %arg4[%c0_328, %c0_329] : memref<128x128xf32, #tpu.memory_space<vmem>>, vector<128x128xf32>
    %cst_330 = arith.constant 0.000000e+00 : f32
    %392 = vector.broadcast %cst_330 : f32 to vector<8x128xf32>
    %c0_331 = arith.constant 0 : index
    %c0_332 = arith.constant 0 : index
    %393 = vector.load %arg16[%c0_331, %c0_332] : memref<64x128xf32, #tpu.memory_space<vmem>>, vector<8x128xf32>
    %cst_333 = arith.constant dense<0.000000e+00> : vector<8x128xf32>
    %394 = tpu.matmul %392, %391, %cst_333 {dimension_numbers = #tpu.dot_dimension_numbers<[1], [0], [0], [1], [0, 0, 1, 1], [], []>} : vector<8x128xf32>, vector<128x128xf32>, vector<8x128xf32> -> vector<8x128xf32>
    %395 = arith.addf %393, %394 : vector<8x128xf32>
    %396 = math.tanh %395 : vector<8x128xf32>
    %c8_334 = arith.constant 8 : index
    %c0_335 = arith.constant 0 : index
    %397 = vector.load %arg16[%c8_334, %c0_335] : memref<64x128xf32, #tpu.memory_space<vmem>>, vector<8x128xf32>
    %cst_336 = arith.constant dense<0.000000e+00> : vector<8x128xf32>
    %398 = tpu.matmul %396, %391, %cst_336 {dimension_numbers = #tpu.dot_dimension_numbers<[1], [0], [0], [1], [0, 0, 1, 1], [], []>} : vector<8x128xf32>, vector<128x128xf32>, vector<8x128xf32> -> vector<8x128xf32>
    %399 = arith.addf %397, %398 : vector<8x128xf32>
    %400 = math.tanh %399 : vector<8x128xf32>
    %c16_337 = arith.constant 16 : index
    %c0_338 = arith.constant 0 : index
    %401 = vector.load %arg16[%c16_337, %c0_338] : memref<64x128xf32, #tpu.memory_space<vmem>>, vector<8x128xf32>
    %cst_339 = arith.constant dense<0.000000e+00> : vector<8x128xf32>
    %402 = tpu.matmul %400, %391, %cst_339 {dimension_numbers = #tpu.dot_dimension_numbers<[1], [0], [0], [1], [0, 0, 1, 1], [], []>} : vector<8x128xf32>, vector<128x128xf32>, vector<8x128xf32> -> vector<8x128xf32>
    %403 = arith.addf %401, %402 : vector<8x128xf32>
    %404 = math.tanh %403 : vector<8x128xf32>
    %c24_340 = arith.constant 24 : index
    %c0_341 = arith.constant 0 : index
    %405 = vector.load %arg16[%c24_340, %c0_341] : memref<64x128xf32, #tpu.memory_space<vmem>>, vector<8x128xf32>
    %cst_342 = arith.constant dense<0.000000e+00> : vector<8x128xf32>
    %406 = tpu.matmul %404, %391, %cst_342 {dimension_numbers = #tpu.dot_dimension_numbers<[1], [0], [0], [1], [0, 0, 1, 1], [], []>} : vector<8x128xf32>, vector<128x128xf32>, vector<8x128xf32> -> vector<8x128xf32>
    %407 = arith.addf %405, %406 : vector<8x128xf32>
    %408 = math.tanh %407 : vector<8x128xf32>
    %c32_343 = arith.constant 32 : index
    %c0_344 = arith.constant 0 : index
    %409 = vector.load %arg16[%c32_343, %c0_344] : memref<64x128xf32, #tpu.memory_space<vmem>>, vector<8x128xf32>
    %cst_345 = arith.constant dense<0.000000e+00> : vector<8x128xf32>
    %410 = tpu.matmul %408, %391, %cst_345 {dimension_numbers = #tpu.dot_dimension_numbers<[1], [0], [0], [1], [0, 0, 1, 1], [], []>} : vector<8x128xf32>, vector<128x128xf32>, vector<8x128xf32> -> vector<8x128xf32>
    %411 = arith.addf %409, %410 : vector<8x128xf32>
    %412 = math.tanh %411 : vector<8x128xf32>
    %c40_346 = arith.constant 40 : index
    %c0_347 = arith.constant 0 : index
    %413 = vector.load %arg16[%c40_346, %c0_347] : memref<64x128xf32, #tpu.memory_space<vmem>>, vector<8x128xf32>
    %cst_348 = arith.constant dense<0.000000e+00> : vector<8x128xf32>
    %414 = tpu.matmul %412, %391, %cst_348 {dimension_numbers = #tpu.dot_dimension_numbers<[1], [0], [0], [1], [0, 0, 1, 1], [], []>} : vector<8x128xf32>, vector<128x128xf32>, vector<8x128xf32> -> vector<8x128xf32>
    %415 = arith.addf %413, %414 : vector<8x128xf32>
    %416 = math.tanh %415 : vector<8x128xf32>
    %c48_349 = arith.constant 48 : index
    %c0_350 = arith.constant 0 : index
    %417 = vector.load %arg16[%c48_349, %c0_350] : memref<64x128xf32, #tpu.memory_space<vmem>>, vector<8x128xf32>
    %cst_351 = arith.constant dense<0.000000e+00> : vector<8x128xf32>
    %418 = tpu.matmul %416, %391, %cst_351 {dimension_numbers = #tpu.dot_dimension_numbers<[1], [0], [0], [1], [0, 0, 1, 1], [], []>} : vector<8x128xf32>, vector<128x128xf32>, vector<8x128xf32> -> vector<8x128xf32>
    %419 = arith.addf %417, %418 : vector<8x128xf32>
    %420 = math.tanh %419 : vector<8x128xf32>
    %c56_352 = arith.constant 56 : index
    %c0_353 = arith.constant 0 : index
    %421 = vector.load %arg16[%c56_352, %c0_353] : memref<64x128xf32, #tpu.memory_space<vmem>>, vector<8x128xf32>
    %cst_354 = arith.constant dense<0.000000e+00> : vector<8x128xf32>
    %422 = tpu.matmul %420, %391, %cst_354 {dimension_numbers = #tpu.dot_dimension_numbers<[1], [0], [0], [1], [0, 0, 1, 1], [], []>} : vector<8x128xf32>, vector<128x128xf32>, vector<8x128xf32> -> vector<8x128xf32>
    %423 = arith.addf %421, %422 : vector<8x128xf32>
    %424 = math.tanh %423 : vector<8x128xf32>
    %c0_355 = arith.constant 0 : index
    %c0_356 = arith.constant 0 : index
    %425 = vector.load %arg6[%c0_355, %c0_356] : memref<128x64xf32, #tpu.memory_space<vmem>>, vector<128x64xf32>
    %cst_357 = arith.constant dense<0.000000e+00> : vector<8x64xf32>
    %426 = tpu.matmul %424, %425, %cst_357 {dimension_numbers = #tpu.dot_dimension_numbers<[1], [0], [0], [1], [0, 0, 1, 1], [], []>} : vector<8x128xf32>, vector<128x64xf32>, vector<8x64xf32> -> vector<8x64xf32>
    %c0_358 = arith.constant 0 : index
    %c0_359 = arith.constant 0 : index
    %427 = vector.load %arg7[%c0_358, %c0_359] : memref<1x64xf32, #tpu.memory_space<vmem>>, vector<1x64xf32>
    %428 = vector.broadcast %427 : vector<1x64xf32> to vector<8x64xf32>
    %429 = arith.addf %426, %428 : vector<8x64xf32>
    %cst_360 = arith.constant dense<0.000000e+00> : vector<64xf32>
    %430 = vector.multi_reduction <add>, %429, %cst_360 [0] : vector<8x64xf32> to vector<64xf32>
    %431 = vector.shape_cast %430 : vector<64xf32> to vector<1x64xf32>
    %cst_361 = arith.constant 8.000000e+00 : f32
    %432 = vector.broadcast %cst_361 : f32 to vector<1x64xf32>
    %433 = arith.divf %431, %432 : vector<1x64xf32>
    %434 = vector.broadcast %433 : vector<1x64xf32> to vector<8x64xf32>
    %435 = arith.subf %429, %434 : vector<8x64xf32>
    %436 = arith.mulf %435, %435 : vector<8x64xf32>
    %cst_362 = arith.constant dense<0.000000e+00> : vector<64xf32>
    %437 = vector.multi_reduction <add>, %436, %cst_362 [0] : vector<8x64xf32> to vector<64xf32>
    %438 = vector.shape_cast %437 : vector<64xf32> to vector<1x64xf32>
    %cst_363 = arith.constant 8.000000e+00 : f32
    %439 = vector.broadcast %cst_363 : f32 to vector<1x64xf32>
    %440 = arith.divf %438, %439 : vector<1x64xf32>
    %441 = vector.broadcast %433 : vector<1x64xf32> to vector<8x64xf32>
    %442 = arith.subf %429, %441 : vector<8x64xf32>
    %cst_364 = arith.constant 9.99999974E-6 : f32
    %443 = vector.broadcast %cst_364 : f32 to vector<1x64xf32>
    %444 = arith.addf %440, %443 : vector<1x64xf32>
    %445 = math.rsqrt %444 : vector<1x64xf32>
    %446 = vector.broadcast %445 : vector<1x64xf32> to vector<8x64xf32>
    %447 = arith.mulf %442, %446 : vector<8x64xf32>
    %c0_365 = arith.constant 0 : index
    %c0_366 = arith.constant 0 : index
    %448 = vector.load %arg8[%c0_365, %c0_366] : memref<64x64xf32, #tpu.memory_space<vmem>>, vector<64x64xf32>
    %cst_367 = arith.constant dense<0.000000e+00> : vector<8x64xf32>
    %449 = tpu.matmul %447, %448, %cst_367 {dimension_numbers = #tpu.dot_dimension_numbers<[1], [0], [0], [1], [0, 0, 1, 1], [], []>} : vector<8x64xf32>, vector<64x64xf32>, vector<8x64xf32> -> vector<8x64xf32>
    %cst_368 = arith.constant dense<0.000000e+00> : vector<64xf32>
    %450 = vector.multi_reduction <add>, %449, %cst_368 [0] : vector<8x64xf32> to vector<64xf32>
    %451 = vector.shape_cast %450 : vector<64xf32> to vector<1x64xf32>
    %cst_369 = arith.constant 8.000000e+00 : f32
    %452 = vector.broadcast %cst_369 : f32 to vector<1x64xf32>
    %453 = arith.divf %451, %452 : vector<1x64xf32>
    %454 = vector.broadcast %453 : vector<1x64xf32> to vector<8x64xf32>
    %455 = arith.subf %449, %454 : vector<8x64xf32>
    %456 = arith.mulf %455, %455 : vector<8x64xf32>
    %cst_370 = arith.constant dense<0.000000e+00> : vector<64xf32>
    %457 = vector.multi_reduction <add>, %456, %cst_370 [0] : vector<8x64xf32> to vector<64xf32>
    %458 = vector.shape_cast %457 : vector<64xf32> to vector<1x64xf32>
    %cst_371 = arith.constant 8.000000e+00 : f32
    %459 = vector.broadcast %cst_371 : f32 to vector<1x64xf32>
    %460 = arith.divf %458, %459 : vector<1x64xf32>
    %461 = vector.broadcast %453 : vector<1x64xf32> to vector<8x64xf32>
    %462 = arith.subf %449, %461 : vector<8x64xf32>
    %cst_372 = arith.constant 9.99999974E-6 : f32
    %463 = vector.broadcast %cst_372 : f32 to vector<1x64xf32>
    %464 = arith.addf %460, %463 : vector<1x64xf32>
    %465 = math.rsqrt %464 : vector<1x64xf32>
    %466 = vector.broadcast %465 : vector<1x64xf32> to vector<8x64xf32>
    %467 = arith.mulf %462, %466 : vector<8x64xf32>
    %c0_373 = arith.constant 0 : index
    %c0_374 = arith.constant 0 : index
    %468 = vector.load %arg9[%c0_373, %c0_374] : memref<1x64xf32, #tpu.memory_space<vmem>>, vector<1x64xf32>
    %469 = vector.broadcast %468 : vector<1x64xf32> to vector<8x64xf32>
    %470 = arith.mulf %467, %469 : vector<8x64xf32>
    %c0_375 = arith.constant 0 : index
    %c0_376 = arith.constant 0 : index
    %471 = vector.load %arg10[%c0_375, %c0_376] : memref<1x64xf32, #tpu.memory_space<vmem>>, vector<1x64xf32>
    %472 = vector.broadcast %471 : vector<1x64xf32> to vector<8x64xf32>
    %473 = arith.addf %470, %472 : vector<8x64xf32>
    %cst_377 = arith.constant 0.000000e+00 : f32
    %474 = vector.broadcast %cst_377 : f32 to vector<8x64xf32>
    %475 = arith.maximumf %473, %474 : vector<8x64xf32>
    %c0_378 = arith.constant 0 : index
    %c0_379 = arith.constant 0 : index
    %476 = vector.load %arg11[%c0_378, %c0_379] : memref<64x64xf32, #tpu.memory_space<vmem>>, vector<64x64xf32>
    %cst_380 = arith.constant dense<0.000000e+00> : vector<8x64xf32>
    %477 = tpu.matmul %475, %476, %cst_380 {dimension_numbers = #tpu.dot_dimension_numbers<[1], [0], [0], [1], [0, 0, 1, 1], [], []>} : vector<8x64xf32>, vector<64x64xf32>, vector<8x64xf32> -> vector<8x64xf32>
    %c0_381 = arith.constant 0 : index
    %c0_382 = arith.constant 0 : index
    %478 = vector.load %arg12[%c0_381, %c0_382] : memref<1x64xf32, #tpu.memory_space<vmem>>, vector<1x64xf32>
    %479 = vector.broadcast %478 : vector<1x64xf32> to vector<8x64xf32>
    %480 = arith.addf %477, %479 : vector<8x64xf32>
    %481 = tpu.concatenate %480, %447 in 1 : vector<8x64xf32>, vector<8x64xf32> -> vector<8x128xf32>
    %c0_383 = arith.constant 0 : index
    %c0_384 = arith.constant 0 : index
    %482 = vector.load %arg13[%c0_383, %c0_384] : memref<8x128xf32, #tpu.memory_space<vmem>>, vector<8x128xf32>
    tpu.vector_store %arg13[%c0_383, %c0_384], %481 {strides = array<i32>} : memref<8x128xf32, #tpu.memory_space<vmem>>, vector<8x128xf32>,
    return
  }
  func.func @transform_1(%arg0: i32, %arg1: memref<2x64xi32, #tpu.memory_space<smem>>) -> (i32, i32) {
    %c0_i32 = arith.constant 0 : i32
    %c0_i32_0 = arith.constant 0 : i32
    %c0_i32_1 = arith.constant 0 : i32
    return %c0_i32, %c0_i32_0 : i32, i32
  }
  func.func @transform_2(%arg0: i32, %arg1: memref<2x64xi32, #tpu.memory_space<smem>>) -> (i32, i32) {
    %c0_i32 = arith.constant 0 : i32
    %c0_i32_0 = arith.constant 0 : i32
    %c0_i32_1 = arith.constant 0 : i32
    return %c0_i32, %c0_i32_0 : i32, i32
  }
  func.func @transform_3(%arg0: i32, %arg1: memref<2x64xi32, #tpu.memory_space<smem>>) -> (i32, i32) {
    %c0_i32 = arith.constant 0 : i32
    %c0_i32_0 = arith.constant 0 : i32
    %c0_i32_1 = arith.constant 0 : i32
    return %c0_i32, %c0_i32_0 : i32, i32
  }
  func.func @transform_4(%arg0: i32, %arg1: memref<2x64xi32, #tpu.memory_space<smem>>) -> (i32, i32) {
    %c0_i32 = arith.constant 0 : i32
    %c0_i32_0 = arith.constant 0 : i32
    %c0_i32_1 = arith.constant 0 : i32
    return %c0_i32, %c0_i32_0 : i32, i32
  }
  func.func @transform_5(%arg0: i32, %arg1: memref<2x64xi32, #tpu.memory_space<smem>>) -> (i32, i32) {
    %c0_i32 = arith.constant 0 : i32
    %c0_i32_0 = arith.constant 0 : i32
    %c0_i32_1 = arith.constant 0 : i32
    return %c0_i32, %c0_i32_0 : i32, i32
  }
  func.func @transform_6(%arg0: i32, %arg1: memref<2x64xi32, #tpu.memory_space<smem>>) -> (i32, i32) {
    %c0_i32 = arith.constant 0 : i32
    %c0_i32_0 = arith.constant 0 : i32
    %c0_i32_1 = arith.constant 0 : i32
    return %c0_i32, %c0_i32_0 : i32, i32
  }
  func.func @transform_7(%arg0: i32, %arg1: memref<2x64xi32, #tpu.memory_space<smem>>) -> (i32, i32) {
    %c0_i32 = arith.constant 0 : i32
    %c0_i32_0 = arith.constant 0 : i32
    %c0_i32_1 = arith.constant 0 : i32
    return %c0_i32, %c0_i32_0 : i32, i32
  }
  func.func @transform_8(%arg0: i32, %arg1: memref<2x64xi32, #tpu.memory_space<smem>>) -> (i32, i32) {
    %c0_i32 = arith.constant 0 : i32
    %c0_i32_0 = arith.constant 0 : i32
    %c0_i32_1 = arith.constant 0 : i32
    return %c0_i32, %c0_i32_0 : i32, i32
  }
  func.func @transform_9(%arg0: i32, %arg1: memref<2x64xi32, #tpu.memory_space<smem>>) -> (i32, i32) {
    %c0_i32 = arith.constant 0 : i32
    %c0_i32_0 = arith.constant 0 : i32
    %c0_i32_1 = arith.constant 0 : i32
    return %c0_i32, %c0_i32_0 : i32, i32
  }
  func.func @transform_10(%arg0: i32, %arg1: memref<2x64xi32, #tpu.memory_space<smem>>) -> (i32, i32) {
    %c0_i32 = arith.constant 0 : i32
    %c0_i32_0 = arith.constant 0 : i32
    %c0_i32_1 = arith.constant 0 : i32
    return %c0_i32, %c0_i32_0 : i32, i32
  }
  func.func @transform_11(%arg0: i32, %arg1: memref<2x64xi32, #tpu.memory_space<smem>>) -> (i32, i32) {
    %c0_i32 = arith.constant 0 : i32
    %c0_i32_0 = arith.constant 0 : i32
    return %arg0, %c0_i32 : i32, i32
  }
}

</mosaic_0001>

<bundles_post_ra>
// kernel: tpu_custom_call.1
= control target key start
LH: loop header
LB: loop body
LE: loop exit
PB: predicated region body
PF: predicated region fallthrough
CT: control target
= control target key end

     0   :  { %s7559_s0 = inlined_call_operand.vmem [shape: s32[2,64], index: 0, kind: input, shape index: {}]   ;;  %s7560_s1 = inlined_call_operand.vmem [shape: f32[64,128], index: 1, kind: input, shape index: {}]   ;;  %s7561_s2 = inlined_call_operand.vmem [shape: f32[128,128], index: 2, kind: input, shape index: {}]   ;;  %s7562_s3 = inlined_call_operand.hbm [shape: f32[128,128], index: 3, kind: input, shape index: {}]   ;;  %s7563_s4 = inlined_call_operand.vmem [shape: f32[1,128], index: 4, kind: input, shape index: {}]   ;;  %s7564_s5 = inlined_call_operand.vmem [shape: f32[128,64], index: 5, kind: input, shape index: {}]   ;;  %s7565_s6 = inlined_call_operand.vmem [shape: f32[1,64], index: 6, kind: input, shape index: {}]   ;;  %s7566_s7 = inlined_call_operand.hbm [shape: f32[64,64], index: 7, kind: input, shape index: {}]   ;;  %s7567_s8 = inlined_call_operand.vmem [shape: f32[1,64], index: 8, kind: input, shape index: {}]   ;;  %s7568_s9 = inlined_call_operand.vmem [shape: f32[1,64], index: 9, kind: input, shape index: {}]   ;;  %s7569_s10 = inlined_call_operand.hbm [shape: f32[64,64], index: 10, kind: input, shape index: {}]   ;;  %s7570_s11 = inlined_call_operand.vmem [shape: f32[1,64], index: 11, kind: input, shape index: {}]   ;;  %s7571_s12 = inlined_call_operand.hbm [shape: f32[16,128], index: 12, kind: output, shape index: {}]  }
   0x1   :  { %7582 = sst [smem:[#allocation89_spill]] %s7571_s12  ;;  %s17_s23 = sshll.u32 %s7559_s0, 4  ;;  %s18_s23 = int_to_ptr.vmem [resolvable:$true] %s17_s23 }
   0x2   :  { %s6511_s24 = scalar_lea.vmem %s18_s23, 32  ;;  %p6516_p1 = scmp.lt.s32.totalorder %s18_s23, %s18_s23 }
   0x3   :  { %p6512_p0 = scmp.ne.s32.totalorder %s18_s23, %s6511_s24  ;;  %p6517_p2 = scmp.lt.s32.totalorder %s6511_s24, %s6511_s24 }
   0x5   :  { %p6518_p3 = por %p6517_p2, %p6516_p1 }
   0x7   :  { %p6519_p4 = pnand %p6518_p3, %p6512_p0 }
   0x9   :  { %6522 = shalt.err (!%p6519_p4)  }
   0xa   :  { %s6683_s25 = smov [#allocation6]  }
   0xb   :  { %20 = dma.vmem_to_smem %s18_s23, 32, %s6683_s25, [#allocation5] }
   0xc   :  { %6651 = dma.done.wait [#allocation5], 32 }
   0xd   :  { %6652 = vsyncadd [#allocation5], 4294967264 }
   0xe   :  { %22 = sfence }
   0xf   :  { %23 = vsyncpa [#allocation8], 0 }
  0x10   :  { %24 = vsyncpa [#allocation11], 0 }
  0x11   :  { %25 = vsyncpa [#allocation9], 0 }
  0x12   :  { %27 = vsyncpa [#allocation9 + $0x1], 0  ;;  %s6762_s26 = smov 0   ;;  %s6764_s0 = smov 0  }
  0x13   :  { %s6766_s27 = smov 0   ;;  %s6768_s28 = smov 0  }
  0x14 LB: > { %7583 = sst [smem:[#allocation83_spill]] %s6669_s26  ;;  %s6783_s29 = sadd.s32 4294967295, %s6681_s28   ;;  %s6681_s28 = sphi %s6768_s28, %s7605_s28   ;;  %s6677_s27 = sphi %s6766_s27, %s7607_s27   ;;  %s6673_s0 = sphi %s6764_s0, %s7609_s0   ;;  %s6669_s26 = sphi %s6762_s26, %s7608_s26  }
  0x15   : > { %7584 = sst [smem:[#allocation84_spill]] %s6677_s27  ;;  %s5527_s30 = sadd.s32 4294967294, %s6681_s28  }
  0x16   : > { %7585 = sst [smem:[#allocation85_spill]] %s6681_s28  ;;  %s6787_s13 = sadd.s32 1, %s6681_s28  }
  0x17   : > { %7586 = sst [smem:[#allocation86_spill]] %s6787_s13  ;;  %s250_s14 = sadd.s32 1, %s6677_s27 }
  0x18   : > { %s247_s15 = ssub.s32 %s6681_s28, %s6787_s13  ;;  %p260_p5 = scmp.ne.s32.totalorder %s6677_s27, %s6673_s0 }
  0x19   : > { %p248_p6 = scmp.eq.s32.totalorder %s247_s15, 0  ;;  %p261_p7 = scmp.eq.s32.totalorder %s6783_s29, 1 }
  0x1a   : > { %p266_p8 = scmp.ne.s32.totalorder %s6673_s0, %s6669_s26  ;;  %p267_p9 = scmp.eq.s32.totalorder %s5527_s30, 1 }
  0x1b   : > { %s6798_s16 = scalar_select %p248_p6, %s6677_s27, %s250_s14  }
  0x1c   : > { %p6800_p10 = por %p261_p7, %p260_p5  ;;  %p6804_p11 = por %p267_p9, %p266_p8 }
  0x1d   : > { %7587 = sst [smem:[#allocation87_spill]] %s6798_s16  ;;  %p5528_p12 = scmp.ge.s32.totalorder %s6681_s28, 1 }
  0x1e   : > { %s7588_s17 = scalar_select %p6800_p10, 1, 0 }
  0x1f   : > { %s7589_s18 = scalar_select %p6804_p11, 1, 0 }
  0x20   : > { %p274_p13 = scmp.lt.s32.totalorder %s6681_s28, 3  ;;  %p7575_p0 = scmp.eq.s32.totalorder %s6783_s29, 0 }
  0x21   : > { %7590 = sst [smem:[#allocation88_spill]] %s7589_s18  ;;  %s6684_s20 = smov [#allocation10]  }
  0x22   : > { %p6811_p1 = pnand %p5528_p12, %p274_p13  ;;  %s311_s21 = sshll.u32 %s6684_s20, 4  ;;  %s6817_s21 = int_to_ptr.vmem [resolvable:$true] %s311_s21 }
  0x23   : > { %s6685_s23 = smov [#allocation7]   ;;  %s6686_s25 = smov [#allocation12]  }
  0x24   : > { %s7591_s19 = scalar_select %p6811_p1, 1, 0 }
  0x25   : > { %p6428_p2 = pneg %p6811_p1  ;;  %s289_s24 = sshll.u32 %s6685_s23, 4  ;;  %s6825_s24 = int_to_ptr.vmem [resolvable:$true] %s289_s24 }
  0x26   : > { %s6827_s30 = sshll.u32 %s6686_s25, 4  ;;  %s6523_s16 = scalar_lea.hbm %s7566_s7, 1024  ;;  %s331_s30 = int_to_ptr.vmem [resolvable:$true] %s6827_s30 }
  0x27   : > { %p6821_p3 = pnand %p7575_p0, %p6428_p2  ;;  %p6524_p4 = scmp.ne.s32.totalorder %s7566_s7, %s6523_s16 }
  0x28   : > { %p6530_p8 = scmp.lt.u32.totalorder %s6523_s16, %s7566_s7 }
  0x29   : > { %p6837_p5 = pneg %p6821_p3 }
  0x2b   : > { %p6526_p6 = pnand %p6837_p5, %p6524_p4 }
  0x2d   : > { %p6527_p7 = pneg %p6526_p6 }
  0x2f   : > { %p6532_p9 = pnand %p6530_p8, %p6527_p7 }
  0x31   : > { %6535 = shalt.err (!%p6532_p9)
}
  0x32   : > { %s6536_s27 = scalar_lea.vmem %s6817_s21, 1024  ;;  %p6544_p0 = scmp.lt.s32.totalorder %s6817_s21, %s6817_s21 }
  0x33   : > { %p6537_p12 = scmp.ne.s32.totalorder %s6817_s21, %s6536_s27  ;;  %p6545_p11 = scmp.lt.s32.totalorder %s6536_s27, %s6536_s27 }
  0x35   : > { %p6539_p13 = pnand %p6537_p12, %p6837_p5  ;;  %p6546_p4 = por %p6545_p11, %p6544_p0 }
  0x37   : > { %p6540_p2 = pneg %p6539_p13 }
  0x39   : > { %p6547_p6 = pnand %p6546_p4, %p6540_p2 }
  0x3b   : > { %6550 = shalt.err (!%p6547_p6)
}
  0x3c   : > { %s6687_s14 = smov 128   ;;  %s6688_s16 = smov 8  }
  0x3d   : > { %6434 = dma.hbm_to_vmem [thread:$0]  (!%p6821_p3), %s7566_s7, 1024, %s6817_s21, [#allocation11], %s6687_s14, %s6687_s14, %s6688_s16  }
  0x3e   : > { %s6551_s27 = scalar_lea.hbm %s7562_s3, 2048 }
  0x3f   : > { %p6552_p11 = scmp.ne.s32.totalorder %s7562_s3, %s6551_s27  ;;  %p6558_p8 = scmp.lt.u32.totalorder %s6551_s27, %s7562_s3 }
  0x41   : > { %p6554_p0 = pnand %p6552_p11, %p6837_p5 }
  0x43   : > { %p6555_p7 = pneg %p6554_p0 }
  0x45   : > { %p6560_p9 = pnand %p6558_p8, %p6555_p7 }
  0x47   : > { %6563 = shalt.err (!%p6560_p9)
}
  0x48   : > { %s6564_s21 = scalar_lea.vmem %s6825_s24, 2048  ;;  %p6572_p4 = scmp.lt.s32.totalorder %s6825_s24, %s6825_s24 }
  0x49   : > { %p6565_p12 = scmp.ne.s32.totalorder %s6825_s24, %s6564_s21  ;;  %p6573_p6 = scmp.lt.s32.totalorder %s6564_s21, %s6564_s21 }
  0x4b   : > { %p6567_p13 = pnand %p6565_p12, %p6837_p5  ;;  %p6574_p11 = por %p6573_p6, %p6572_p4 }
  0x4d   : > { %p6568_p2 = pneg %p6567_p13 }
  0x4f   : > { %p6575_p0 = pnand %p6574_p11, %p6568_p2 }
  0x51   : > { %6578 = shalt.err (!%p6575_p0)
}
  0x52   : > { %6431 = dma.hbm_to_vmem [thread:$0]  (!%p6821_p3), %s7562_s3, 2048, %s6825_s24, [#allocation8], %s6687_s14, %s6687_s14, %s6688_s16  }
  0x53   : > { %s6579_s15 = scalar_lea.hbm %s7569_s10, 1024 }
  0x54   : > { %p6580_p7 = scmp.ne.s32.totalorder %s7569_s10, %s6579_s15  ;;  %p6586_p12 = scmp.lt.u32.totalorder %s6579_s15, %s7569_s10 }
  0x56   : > { %p6582_p8 = pnand %p6580_p7, %p6837_p5 }
  0x58   : > { %p6583_p9 = pneg %p6582_p8 }
  0x5a   : > { %p6588_p13 = pnand %p6586_p12, %p6583_p9 }
  0x5c   : > { %6591 = shalt.err (!%p6588_p13)
}
  0x5d   : > { %s6592_s21 = scalar_lea.vmem %s331_s30, 1024  ;;  %p6600_p11 = scmp.lt.s32.totalorder %s331_s30, %s331_s30 }
  0x5e   : > { %p6593_p2 = scmp.ne.s32.totalorder %s331_s30, %s6592_s21  ;;  %p6601_p0 = scmp.lt.s32.totalorder %s6592_s21, %s6592_s21 }
  0x60   : > { %p6595_p4 = pnand %p6593_p2, %p6837_p5  ;;  %p6602_p10 = por %p6601_p0, %p6600_p11 }
  0x62   : > { %p6596_p6 = pneg %p6595_p4 }
  0x64   : > { %p6603_p1 = pnand %p6602_p10, %p6596_p6 }
  0x66   : > { %6606 = shalt.err (!%p6603_p1)
}
  0x67   : > { %6437 = dma.hbm_to_vmem [thread:$0]  (!%p6821_p3), %s7569_s10, 1024, %s331_s30, [#allocation11], %s6687_s14, %s6687_s14, %s6688_s16  }
  0x68   : > { %p7594_p7 = scmp.ne.s32.totalorder %s7591_s19, 0 }
  0x69   : > { %p7595_p5 = scmp.eq.s32.totalorder (!%p7594_p7), %s6783_s29, 0 }
  0x6a   : > { %349 = sbr.rel (%p7594_p7) target bundleno = 3357 (0xd1d), region = 60 }
  0x71   : > { %6654 = dma.done.wait (%p7595_p5), [#allocation8], 2048   ;;  %p7596_p8 = pmov %p7595_p5 }
  0x72   : > { %p7597_p10 = pmov %p7595_p5 }
  0x73   : > { %6656 = vsyncadd (%p7596_p8), [#allocation8], 4294965248 }
  0x74   : > { %6658 = dma.done.wait (%p7597_p10), [#allocation11], 2048   ;;  %p7598_p1 = pmov %p7595_p5 }
  0x75   : > { %s6920_s13 = sshll.u32 %s6783_s29, 7  ;;  %s387_s19 = sand.u32 1, %s6673_s0  }
  0x76   : > { %6660 = vsyncadd (%p7598_p1), [#allocation11], 4294965248  ;;  %s391_s22 = sld [smem:[#allocation6 + %s6920_s13]]  ;;  %s6926_s30 = sshll.u32 %s387_s19, 3 }
  0x77   : > { %s389_s28 = scalar_lea.vmem [#allocation13], %s6926_s30 }
  0x7c   : > { %s392_s26 = scalar_lea.vmem %s7560_s1, %s391_s22 }
  0x7d   : > { %v410_v0 = vld [vmem:[%s392_s26] sm:$0x1] }
  0x7e   : > { %411 = vst [vmem:[#allocation2] sm:$0x1] %v410_v0 }
  0x7f   : > { %436 = vsyncadd [#allocation3], 16  ;;  %s437_s18 = sadd.s32 1, %s6920_s13 }
  0x80   : > { %s438_s15 = sld [smem:[#allocation6 + %s437_s18]] }
  0x86   : > { %s439_s23 = scalar_lea.vmem %s7560_s1, %s438_s15 }
  0x87   : > { %v458_v1 = vld [vmem:[%s439_s23] sm:$0x1] }
  0x88   : > { %459 = vst [vmem:[#allocation2 + $0x1] sm:$0x1] %v458_v1 }
  0x89   : > { %484 = vsyncadd [#allocation3], 16  ;;  %s485_s25 = sadd.s32 2, %s6920_s13 }
  0x8a   : > { %s486_s27 = sld [smem:[#allocation6 + %s485_s25]] }
  0x90   : > { %s487_s12 = scalar_lea.vmem %s7560_s1, %s486_s27 }
  0x91   : > { %v506_v2 = vld [vmem:[%s487_s12] sm:$0x1] }
  0x92   : > { %507 = vst [vmem:[#allocation2 + $0x2] sm:$0x1] %v506_v2 }
  0x93   : > { %532 = vsyncadd [#allocation3], 16  ;;  %s533_s22 = sadd.s32 3, %s6920_s13 }
  0x94   : > { %s534_s14 = sld [smem:[#allocation6 + %s533_s22]] }
  0x9a   : > { %s535_s18 = scalar_lea.vmem %s7560_s1, %s534_s14 }
  0x9b   : > { %v554_v3 = vld [vmem:[%s535_s18] sm:$0x1] }
  0x9c   : > { %555 = vst [vmem:[#allocation2 + $0x3] sm:$0x1] %v554_v3 }
  0x9d   : > { %580 = vsyncadd [#allocation3], 16  ;;  %s581_s15 = sadd.s32 4, %s6920_s13 }
  0x9e   : > { %s582_s29 = sld [smem:[#allocation6 + %s581_s15]] }
  0xa4   : > { %s583_s25 = scalar_lea.vmem %s7560_s1, %s582_s29 }
  0xa5   : > { %v602_v4 = vld [vmem:[%s583_s25] sm:$0x1] }
  0xa6   : > { %603 = vst [vmem:[#allocation2 + $0x4] sm:$0x1] %v602_v4 }
  0xa7   : > { %628 = vsyncadd [#allocation3], 16  ;;  %s629_s27 = sadd.s32 5, %s6920_s13 }
  0xa8   : > { %s630_s21 = sld [smem:[#allocation6 + %s629_s27]] }
  0xae   : > { %s631_s22 = scalar_lea.vmem %s7560_s1, %s630_s21 }
  0xaf   : > { %v650_v5 = vld [vmem:[%s631_s22] sm:$0x1] }
  0xb0   : > { %651 = vst [vmem:[#allocation2 + $0x5] sm:$0x1] %v650_v5 }
  0xb1   : > { %676 = vsyncadd [#allocation3], 16  ;;  %s677_s14 = sadd.s32 6, %s6920_s13 }
  0xb2   : > { %s678_s16 = sld [smem:[#allocation6 + %s677_s14]] }
  0xb8   : > { %s679_s15 = scalar_lea.vmem %s7560_s1, %s678_s16 }
  0xb9   : > { %v698_v6 = vld [vmem:[%s679_s15] sm:$0x1] }
  0xba   : > { %699 = vst [vmem:[#allocation2 + $0x6] sm:$0x1] %v698_v6 }
  0xbb   : > { %724 = vsyncadd [#allocation3], 16  ;;  %s725_s29 = sadd.s32 7, %s6920_s13 }
  0xbc   : > { %s726_s20 = sld [smem:[#allocation6 + %s725_s29]] }
  0xc2   : > { %s727_s27 = scalar_lea.vmem %s7560_s1, %s726_s20 }
  0xc3   : > { %v746_v7 = vld [vmem:[%s727_s27] sm:$0x1] }
  0xc4   : > { %747 = vst [vmem:[#allocation2 + $0x7] sm:$0x1] %v746_v7 }
  0xc5   : > { %772 = vsyncadd [#allocation3], 16  ;;  %s773_s21 = sadd.s32 8, %s6920_s13 }
  0xc6   : > { %s774_s24 = sld [smem:[#allocation6 + %s773_s21]] }
  0xcc   : > { %s775_s14 = scalar_lea.vmem %s7560_s1, %s774_s24 }
  0xcd   : > { %v794_v8 = vld [vmem:[%s775_s14] sm:$0x1] }
  0xce   : > { %795 = vst [vmem:[#allocation2 + $0x8] sm:$0x1] %v794_v8 }
  0xcf   : > { %820 = vsyncadd [#allocation3], 16  ;;  %s821_s16 = sadd.s32 9, %s6920_s13 }
  0xd0   : > { %s822_s26 = sld [smem:[#allocation6 + %s821_s16]] }
  0xd6   : > { %s823_s29 = scalar_lea.vmem %s7560_s1, %s822_s26 }
  0xd7   : > { %v842_v9 = vld [vmem:[%s823_s29] sm:$0x1] }
  0xd8   : > { %843 = vst [vmem:[#allocation2 + $0x9] sm:$0x1] %v842_v9 }
  0xd9   : > { %868 = vsyncadd [#allocation3], 16  ;;  %s869_s20 = sadd.s32 10, %s6920_s13 }
  0xda   : > { %s870_s23 = sld [smem:[#allocation6 + %s869_s20]] }
  0xe0   : > { %s871_s21 = scalar_lea.vmem %s7560_s1, %s870_s23 }
  0xe1   : > { %v890_v10 = vld [vmem:[%s871_s21] sm:$0x1] }
  0xe2   : > { %891 = vst [vmem:[#allocation2 + $0xa] sm:$0x1] %v890_v10 }
  0xe3   : > { %916 = vsyncadd [#allocation3], 16  ;;  %s917_s24 = sadd.s32 11, %s6920_s13 }
  0xe4   : > { %s918_s12 = sld [smem:[#allocation6 + %s917_s24]] }
  0xea   : > { %s919_s16 = scalar_lea.vmem %s7560_s1, %s918_s12 }
  0xeb   : > { %v938_v11 = vld [vmem:[%s919_s16] sm:$0x1] }
  0xec   : > { %939 = vst [vmem:[#allocation2 + $0xb] sm:$0x1] %v938_v11 }
  0xed   : > { %964 = vsyncadd [#allocation3], 16  ;;  %s965_s26 = sadd.s32 12, %s6920_s13 }
  0xee   : > { %s966_s18 = sld [smem:[#allocation6 + %s965_s26]] }
  0xf4   : > { %s967_s20 = scalar_lea.vmem %s7560_s1, %s966_s18 }
  0xf5   : > { %v986_v12 = vld [vmem:[%s967_s20] sm:$0x1] }
  0xf6   : > { %987 = vst [vmem:[#allocation2 + $0xc] sm:$0x1] %v986_v12 }
  0xf7   : > { %1012 = vsyncadd [#allocation3], 16  ;;  %s1013_s23 = sadd.s32 13, %s6920_s13 }
  0xf8   : > { %s1014_s25 = sld [smem:[#allocation6 + %s1013_s23]] }
  0xfe   : > { %s1015_s24 = scalar_lea.vmem %s7560_s1, %s1014_s25 }
  0xff   : > { %v1034_v13 = vld [vmem:[%s1015_s24] sm:$0x1] }
 0x100   : > { %1035 = vst [vmem:[#allocation2 + $0xd] sm:$0x1] %v1034_v13 }
 0x101   : > { %1060 = vsyncadd [#allocation3], 16  ;;  %s1061_s12 = sadd.s32 14, %s6920_s13 }
 0x102   : > { %s1062_s22 = sld [smem:[#allocation6 + %s1061_s12]] }
 0x108   : > { %s1063_s26 = scalar_lea.vmem %s7560_s1, %s1062_s22 }
 0x109   : > { %v1082_v14 = vld [vmem:[%s1063_s26] sm:$0x1] }
 0x10a   : > { %1083 = vst [vmem:[#allocation2 + $0xe] sm:$0x1] %v1082_v14 }
 0x10b   : > { %1108 = vsyncadd [#allocation3], 16  ;;  %s1109_s18 = sadd.s32 15, %s6920_s13 }
 0x10c   : > { %s1110_s15 = sld [smem:[#allocation6 + %s1109_s18]] }
 0x112   : > { %s1111_s23 = scalar_lea.vmem %s7560_s1, %s1110_s15 }
 0x113   : > { %v1130_v15 = vld [vmem:[%s1111_s23] sm:$0x1] }
 0x114   : > { %1131 = vst [vmem:[#allocation2 + $0xf] sm:$0x1] %v1130_v15 }
 0x115   : > { %1156 = vsyncadd [#allocation3], 16  ;;  %s1157_s25 = sadd.s32 16, %s6920_s13 }
 0x116   : > { %s1158_s27 = sld [smem:[#allocation6 + %s1157_s25]] }
 0x11c   : > { %s1159_s12 = scalar_lea.vmem %s7560_s1, %s1158_s27 }
 0x11d   : > { %v1178_v16 = vld [vmem:[%s1159_s12] sm:$0x1] }
 0x11e   : > { %1179 = vst [vmem:[#allocation2 + $0x10] sm:$0x1] %v1178_v16 }
 0x11f   : > { %1204 = vsyncadd [#allocation3], 16  ;;  %s1205_s22 = sadd.s32 17, %s6920_s13 }
 0x120   : > { %s1206_s14 = sld [smem:[#allocation6 + %s1205_s22]] }
 0x126   : > { %s1207_s18 = scalar_lea.vmem %s7560_s1, %s1206_s14 }
 0x127   : > { %v1226_v17 = vld [vmem:[%s1207_s18] sm:$0x1] }
 0x128   : > { %1227 = vst [vmem:[#allocation2 + $0x11] sm:$0x1] %v1226_v17 }
 0x129   : > { %1252 = vsyncadd [#allocation3], 16  ;;  %s1253_s15 = sadd.s32 18, %s6920_s13 }
 0x12a   : > { %s1254_s29 = sld [smem:[#allocation6 + %s1253_s15]] }
 0x130   : > { %s1255_s25 = scalar_lea.vmem %s7560_s1, %s1254_s29 }
 0x131   : > { %v1274_v18 = vld [vmem:[%s1255_s25] sm:$0x1] }
 0x132   : > { %1275 = vst [vmem:[#allocation2 + $0x12] sm:$0x1] %v1274_v18 }
 0x133   : > { %1300 = vsyncadd [#allocation3], 16  ;;  %s1301_s27 = sadd.s32 19, %s6920_s13 }
 0x134   : > { %s1302_s21 = sld [smem:[#allocation6 + %s1301_s27]] }
 0x13a   : > { %s1303_s22 = scalar_lea.vmem %s7560_s1, %s1302_s21 }
 0x13b   : > { %v1322_v19 = vld [vmem:[%s1303_s22] sm:$0x1] }
 0x13c   : > { %1323 = vst [vmem:[#allocation2 + $0x13] sm:$0x1] %v1322_v19 }
 0x13d   : > { %1348 = vsyncadd [#allocation3], 16  ;;  %s1349_s14 = sadd.s32 20, %s6920_s13 }
 0x13e   : > { %s1350_s16 = sld [smem:[#allocation6 + %s1349_s14]] }
 0x144   : > { %s1351_s15 = scalar_lea.vmem %s7560_s1, %s1350_s16 }
 0x145   : > { %v1370_v20 = vld [vmem:[%s1351_s15] sm:$0x1] }
 0x146   : > { %1371 = vst [vmem:[#allocation2 + $0x14] sm:$0x1] %v1370_v20 }
 0x147   : > { %1396 = vsyncadd [#allocation3], 16  ;;  %s1397_s29 = sadd.s32 21, %s6920_s13 }
 0x148   : > { %s1398_s20 = sld [smem:[#allocation6 + %s1397_s29]] }
 0x14e   : > { %s1399_s27 = scalar_lea.vmem %s7560_s1, %s1398_s20 }
 0x14f   : > { %v1418_v21 = vld [vmem:[%s1399_s27] sm:$0x1] }
 0x150   : > { %1419 = vst [vmem:[#allocation2 + $0x15] sm:$0x1] %v1418_v21 }
 0x151   : > { %1444 = vsyncadd [#allocation3], 16  ;;  %s1445_s21 = sadd.s32 22, %s6920_s13 }
 0x152   : > { %s1446_s24 = sld [smem:[#allocation6 + %s1445_s21]] }
 0x158   : > { %s1447_s14 = scalar_lea.vmem %s7560_s1, %s1446_s24 }
 0x159   : > { %v1466_v22 = vld [vmem:[%s1447_s14] sm:$0x1] }
 0x15a   : > { %1467 = vst [vmem:[#allocation2 + $0x16] sm:$0x1] %v1466_v22 }
 0x15b   : > { %1492 = vsyncadd [#allocation3], 16  ;;  %s1493_s16 = sadd.s32 23, %s6920_s13 }
 0x15c   : > { %s1494_s26 = sld [smem:[#allocation6 + %s1493_s16]] }
 0x162   : > { %s1495_s29 = scalar_lea.vmem %s7560_s1, %s1494_s26 }
 0x163   : > { %v1514_v23 = vld [vmem:[%s1495_s29] sm:$0x1] }
 0x164   : > { %1515 = vst [vmem:[#allocation2 + $0x17] sm:$0x1] %v1514_v23 }
 0x165   : > { %1540 = vsyncadd [#allocation3], 16  ;;  %s1541_s20 = sadd.s32 24, %s6920_s13 }
 0x166   : > { %s1542_s23 = sld [smem:[#allocation6 + %s1541_s20]] }
 0x16c   : > { %s1543_s21 = scalar_lea.vmem %s7560_s1, %s1542_s23 }
 0x16d   : > { %v1562_v24 = vld [vmem:[%s1543_s21] sm:$0x1] }
 0x16e   : > { %1563 = vst [vmem:[#allocation2 + $0x18] sm:$0x1] %v1562_v24 }
 0x16f   : > { %1588 = vsyncadd [#allocation3], 16  ;;  %s1589_s24 = sadd.s32 25, %s6920_s13 }
 0x170   : > { %s1590_s12 = sld [smem:[#allocation6 + %s1589_s24]] }
 0x176   : > { %s1591_s16 = scalar_lea.vmem %s7560_s1, %s1590_s12 }
 0x177   : > { %v1610_v25 = vld [vmem:[%s1591_s16] sm:$0x1] }
 0x178   : > { %1611 = vst [vmem:[#allocation2 + $0x19] sm:$0x1] %v1610_v25 }
 0x179   : > { %1636 = vsyncadd [#allocation3], 16  ;;  %s1637_s26 = sadd.s32 26, %s6920_s13 }
 0x17a   : > { %s1638_s18 = sld [smem:[#allocation6 + %s1637_s26]] }
 0x180   : > { %s1639_s20 = scalar_lea.vmem %s7560_s1, %s1638_s18 }
 0x181   : > { %v1658_v26 = vld [vmem:[%s1639_s20] sm:$0x1] }
 0x182   : > { %1659 = vst [vmem:[#allocation2 + $0x1a] sm:$0x1] %v1658_v26 }
 0x183   : > { %1684 = vsyncadd [#allocation3], 16  ;;  %s1685_s23 = sadd.s32 27, %s6920_s13 }
 0x184   : > { %s1686_s25 = sld [smem:[#allocation6 + %s1685_s23]] }
 0x18a   : > { %s1687_s24 = scalar_lea.vmem %s7560_s1, %s1686_s25 }
 0x18b   : > { %v1706_v27 = vld [vmem:[%s1687_s24] sm:$0x1] }
 0x18c   : > { %1707 = vst [vmem:[#allocation2 + $0x1b] sm:$0x1] %v1706_v27 }
 0x18d   : > { %1732 = vsyncadd [#allocation3], 16  ;;  %s1733_s12 = sadd.s32 28, %s6920_s13 }
 0x18e   : > { %s1734_s22 = sld [smem:[#allocation6 + %s1733_s12]] }
 0x194   : > { %s1735_s26 = scalar_lea.vmem %s7560_s1, %s1734_s22 }
 0x195   : > { %v1754_v28 = vld [vmem:[%s1735_s26] sm:$0x1] }
 0x196   : > { %1755 = vst [vmem:[#allocation2 + $0x1c] sm:$0x1] %v1754_v28 }
 0x197   : > { %1780 = vsyncadd [#allocation3], 16  ;;  %s1781_s18 = sadd.s32 29, %s6920_s13 }
 0x198   : > { %s1782_s15 = sld [smem:[#allocation6 + %s1781_s18]] }
 0x19e   : > { %s1783_s23 = scalar_lea.vmem %s7560_s1, %s1782_s15 }
 0x19f   : > { %v1802_v29 = vld [vmem:[%s1783_s23] sm:$0x1] }
 0x1a0   : > { %1803 = vst [vmem:[#allocation2 + $0x1d] sm:$0x1] %v1802_v29 }
 0x1a1   : > { %1828 = vsyncadd [#allocation3], 16  ;;  %s1829_s25 = sadd.s32 30, %s6920_s13 }
 0x1a2   : > { %s1830_s27 = sld [smem:[#allocation6 + %s1829_s25]] }
 0x1a8   : > { %s1831_s12 = scalar_lea.vmem %s7560_s1, %s1830_s27 }
 0x1a9   : > { %v1850_v30 = vld [vmem:[%s1831_s12] sm:$0x1] }
 0x1aa   : > { %1851 = vst [vmem:[#allocation2 + $0x1e] sm:$0x1] %v1850_v30 }
 0x1ab   : > { %1876 = vsyncadd [#allocation3], 16  ;;  %s1877_s22 = sadd.s32 31, %s6920_s13 }
 0x1ac   : > { %s1878_s14 = sld [smem:[#allocation6 + %s1877_s22]] }
 0x1b2   : > { %s1879_s18 = scalar_lea.vmem %s7560_s1, %s1878_s14 }
 0x1b3   : > { %v1898_v31 = vld [vmem:[%s1879_s18] sm:$0x1] }
 0x1b4   : > { %1899 = vst [vmem:[#allocation2 + $0x1f] sm:$0x1] %v1898_v31 }
 0x1b5   : > { %1924 = vsyncadd [#allocation3], 16  ;;  %s1925_s15 = sadd.s32 32, %s6920_s13 }
 0x1b6   : > { %s1926_s29 = sld [smem:[#allocation6 + %s1925_s15]] }
 0x1bc   : > { %s1927_s25 = scalar_lea.vmem %s7560_s1, %s1926_s29 }
 0x1bd   : > { %v1946_v32 = vld [vmem:[%s1927_s25] sm:$0x1] }
 0x1be   : > { %1947 = vst [vmem:[#allocation2 + $0x20] sm:$0x1] %v1946_v32 }
 0x1bf   : > { %1972 = vsyncadd [#allocation3], 16  ;;  %s1973_s27 = sadd.s32 33, %s6920_s13 }
 0x1c0   : > { %s1974_s21 = sld [smem:[#allocation6 + %s1973_s27]] }
 0x1c6   : > { %s1975_s22 = scalar_lea.vmem %s7560_s1, %s1974_s21 }
 0x1c7   : > { %v1994_v33 = vld [vmem:[%s1975_s22] sm:$0x1] }
 0x1c8   : > { %1995 = vst [vmem:[#allocation2 + $0x21] sm:$0x1] %v1994_v33 }
 0x1c9   : > { %2020 = vsyncadd [#allocation3], 16  ;;  %s2021_s14 = sadd.s32 34, %s6920_s13 }
 0x1ca   : > { %s2022_s16 = sld [smem:[#allocation6 + %s2021_s14]] }
 0x1d0   : > { %s2023_s15 = scalar_lea.vmem %s7560_s1, %s2022_s16 }
 0x1d1   : > { %v2042_v34 = vld [vmem:[%s2023_s15] sm:$0x1] }
 0x1d2   : > { %2043 = vst [vmem:[#allocation2 + $0x22] sm:$0x1] %v2042_v34 }
 0x1d3   : > { %2068 = vsyncadd [#allocation3], 16  ;;  %s2069_s29 = sadd.s32 35, %s6920_s13 }
 0x1d4   : > { %s2070_s20 = sld [smem:[#allocation6 + %s2069_s29]] }
 0x1da   : > { %s2071_s27 = scalar_lea.vmem %s7560_s1, %s2070_s20 }
 0x1db   : > { %v2090_v35 = vld [vmem:[%s2071_s27] sm:$0x1] }
 0x1dc   : > { %2091 = vst [vmem:[#allocation2 + $0x23] sm:$0x1] %v2090_v35 }
 0x1dd   : > { %2116 = vsyncadd [#allocation3], 16  ;;  %s2117_s21 = sadd.s32 36, %s6920_s13 }
 0x1de   : > { %s2118_s24 = sld [smem:[#allocation6 + %s2117_s21]] }
 0x1e4   : > { %s2119_s14 = scalar_lea.vmem %s7560_s1, %s2118_s24 }
 0x1e5   : > { %v2138_v36 = vld [vmem:[%s2119_s14] sm:$0x1] }
 0x1e6   : > { %2139 = vst [vmem:[#allocation2 + $0x24] sm:$0x1] %v2138_v36 }
 0x1e7   : > { %2164 = vsyncadd [#allocation3], 16  ;;  %s2165_s16 = sadd.s32 37, %s6920_s13 }
 0x1e8   : > { %s2166_s26 = sld [smem:[#allocation6 + %s2165_s16]] }
 0x1ee   : > { %s2167_s29 = scalar_lea.vmem %s7560_s1, %s2166_s26 }
 0x1ef   : > { %v2186_v37 = vld [vmem:[%s2167_s29] sm:$0x1] }
 0x1f0   : > { %2187 = vst [vmem:[#allocation2 + $0x25] sm:$0x1] %v2186_v37 }
 0x1f1   : > { %2212 = vsyncadd [#allocation3], 16  ;;  %s2213_s20 = sadd.s32 38, %s6920_s13 }
 0x1f2   : > { %s2214_s23 = sld [smem:[#allocation6 + %s2213_s20]] }
 0x1f8   : > { %s2215_s21 = scalar_lea.vmem %s7560_s1, %s2214_s23 }
 0x1f9   : > { %v2234_v38 = vld [vmem:[%s2215_s21] sm:$0x1] }
 0x1fa   : > { %2235 = vst [vmem:[#allocation2 + $0x26] sm:$0x1] %v2234_v38 }
 0x1fb   : > { %2260 = vsyncadd [#allocation3], 16  ;;  %s2261_s24 = sadd.s32 39, %s6920_s13 }
 0x1fc   : > { %s2262_s12 = sld [smem:[#allocation6 + %s2261_s24]] }
 0x202   : > { %s2263_s16 = scalar_lea.vmem %s7560_s1, %s2262_s12 }
 0x203   : > { %v2282_v39 = vld [vmem:[%s2263_s16] sm:$0x1] }
 0x204   : > { %2283 = vst [vmem:[#allocation2 + $0x27] sm:$0x1] %v2282_v39 }
 0x205   : > { %2308 = vsyncadd [#allocation3], 16  ;;  %s2309_s26 = sadd.s32 40, %s6920_s13 }
 0x206   : > { %s2310_s18 = sld [smem:[#allocation6 + %s2309_s26]] }
 0x20c   : > { %s2311_s20 = scalar_lea.vmem %s7560_s1, %s2310_s18 }
 0x20d   : > { %v2330_v40 = vld [vmem:[%s2311_s20] sm:$0x1] }
 0x20e   : > { %2331 = vst [vmem:[#allocation2 + $0x28] sm:$0x1] %v2330_v40 }
 0x20f   : > { %2356 = vsyncadd [#allocation3], 16  ;;  %s2357_s23 = sadd.s32 41, %s6920_s13 }
 0x210   : > { %s2358_s25 = sld [smem:[#allocation6 + %s2357_s23]] }
 0x216   : > { %s2359_s24 = scalar_lea.vmem %s7560_s1, %s2358_s25 }
 0x217   : > { %v2378_v41 = vld [vmem:[%s2359_s24] sm:$0x1] }
 0x218   : > { %2379 = vst [vmem:[#allocation2 + $0x29] sm:$0x1] %v2378_v41 }
 0x219   : > { %2404 = vsyncadd [#allocation3], 16  ;;  %s2405_s12 = sadd.s32 42, %s6920_s13 }
 0x21a   : > { %s2406_s22 = sld [smem:[#allocation6 + %s2405_s12]] }
 0x220   : > { %s2407_s26 = scalar_lea.vmem %s7560_s1, %s2406_s22 }
 0x221   : > { %v2426_v42 = vld [vmem:[%s2407_s26] sm:$0x1] }
 0x222   : > { %2427 = vst [vmem:[#allocation2 + $0x2a] sm:$0x1] %v2426_v42 }
 0x223   : > { %2452 = vsyncadd [#allocation3], 16  ;;  %s2453_s18 = sadd.s32 43, %s6920_s13 }
 0x224   : > { %s2454_s15 = sld [smem:[#allocation6 + %s2453_s18]] }
 0x22a   : > { %s2455_s23 = scalar_lea.vmem %s7560_s1, %s2454_s15 }
 0x22b   : > { %v2474_v43 = vld [vmem:[%s2455_s23] sm:$0x1] }
 0x22c   : > { %2475 = vst [vmem:[#allocation2 + $0x2b] sm:$0x1] %v2474_v43 }
 0x22d   : > { %2500 = vsyncadd [#allocation3], 16  ;;  %s2501_s25 = sadd.s32 44, %s6920_s13 }
 0x22e   : > { %s2502_s27 = sld [smem:[#allocation6 + %s2501_s25]] }
 0x234   : > { %s2503_s12 = scalar_lea.vmem %s7560_s1, %s2502_s27 }
 0x235   : > { %v2522_v44 = vld [vmem:[%s2503_s12] sm:$0x1] }
 0x236   : > { %2523 = vst [vmem:[#allocation2 + $0x2c] sm:$0x1] %v2522_v44 }
 0x237   : > { %2548 = vsyncadd [#allocation3], 16  ;;  %s2549_s22 = sadd.s32 45, %s6920_s13 }
 0x238   : > { %s2550_s14 = sld [smem:[#allocation6 + %s2549_s22]] }
 0x23e   : > { %s2551_s18 = scalar_lea.vmem %s7560_s1, %s2550_s14 }
 0x23f   : > { %v2570_v45 = vld [vmem:[%s2551_s18] sm:$0x1] }
 0x240   : > { %2571 = vst [vmem:[#allocation2 + $0x2d] sm:$0x1] %v2570_v45 }
 0x241   : > { %2596 = vsyncadd [#allocation3], 16  ;;  %s2597_s15 = sadd.s32 46, %s6920_s13 }
 0x242   : > { %s2598_s29 = sld [smem:[#allocation6 + %s2597_s15]] }
 0x248   : > { %s2599_s25 = scalar_lea.vmem %s7560_s1, %s2598_s29 }
 0x249   : > { %v2618_v46 = vld [vmem:[%s2599_s25] sm:$0x1] }
 0x24a   : > { %2619 = vst [vmem:[#allocation2 + $0x2e] sm:$0x1] %v2618_v46 }
 0x24b   : > { %2644 = vsyncadd [#allocation3], 16  ;;  %s2645_s27 = sadd.s32 47, %s6920_s13 }
 0x24c   : > { %s2646_s21 = sld [smem:[#allocation6 + %s2645_s27]] }
 0x252   : > { %s2647_s22 = scalar_lea.vmem %s7560_s1, %s2646_s21 }
 0x253   : > { %v2666_v47 = vld [vmem:[%s2647_s22] sm:$0x1] }
 0x254   : > { %2667 = vst [vmem:[#allocation2 + $0x2f] sm:$0x1] %v2666_v47 }
 0x255   : > { %2692 = vsyncadd [#allocation3], 16  ;;  %s2693_s14 = sadd.s32 48, %s6920_s13 }
 0x256   : > { %s2694_s16 = sld [smem:[#allocation6 + %s2693_s14]] }
 0x25c   : > { %s2695_s15 = scalar_lea.vmem %s7560_s1, %s2694_s16 }
 0x25d   : > { %v2714_v48 = vld [vmem:[%s2695_s15] sm:$0x1] }
 0x25e   : > { %2715 = vst [vmem:[#allocation2 + $0x30] sm:$0x1] %v2714_v48 }
 0x25f   : > { %2740 = vsyncadd [#allocation3], 16  ;;  %s2741_s29 = sadd.s32 49, %s6920_s13 }
 0x260   : > { %s2742_s20 = sld [smem:[#allocation6 + %s2741_s29]] }
 0x266   : > { %s2743_s27 = scalar_lea.vmem %s7560_s1, %s2742_s20 }
 0x267   : > { %v2762_v49 = vld [vmem:[%s2743_s27] sm:$0x1] }
 0x268   : > { %2763 = vst [vmem:[#allocation2 + $0x31] sm:$0x1] %v2762_v49 }
 0x269   : > { %2788 = vsyncadd [#allocation3], 16  ;;  %s2789_s21 = sadd.s32 50, %s6920_s13 }
 0x26a   : > { %s2790_s24 = sld [smem:[#allocation6 + %s2789_s21]] }
 0x270   : > { %s2791_s14 = scalar_lea.vmem %s7560_s1, %s2790_s24 }
 0x271   : > { %v2810_v50 = vld [vmem:[%s2791_s14] sm:$0x1] }
 0x272   : > { %2811 = vst [vmem:[#allocation2 + $0x32] sm:$0x1] %v2810_v50 }
 0x273   : > { %2836 = vsyncadd [#allocation3], 16  ;;  %s2837_s16 = sadd.s32 51, %s6920_s13 }
 0x274   : > { %s2838_s26 = sld [smem:[#allocation6 + %s2837_s16]] }
 0x27a   : > { %s2839_s29 = scalar_lea.vmem %s7560_s1, %s2838_s26 }
 0x27b   : > { %v2858_v51 = vld [vmem:[%s2839_s29] sm:$0x1] }
 0x27c   : > { %2859 = vst [vmem:[#allocation2 + $0x33] sm:$0x1] %v2858_v51 }
 0x27d   : > { %2884 = vsyncadd [#allocation3], 16  ;;  %s2885_s20 = sadd.s32 52, %s6920_s13 }
 0x27e   : > { %s2886_s23 = sld [smem:[#allocation6 + %s2885_s20]] }
 0x284   : > { %s2887_s21 = scalar_lea.vmem %s7560_s1, %s2886_s23 }
 0x285   : > { %v2906_v52 = vld [vmem:[%s2887_s21] sm:$0x1] }
 0x286   : > { %2907 = vst [vmem:[#allocation2 + $0x34] sm:$0x1] %v2906_v52 }
 0x287   : > { %2932 = vsyncadd [#allocation3], 16  ;;  %s2933_s24 = sadd.s32 53, %s6920_s13 }
 0x288   : > { %s2934_s12 = sld [smem:[#allocation6 + %s2933_s24]] }
 0x28e   : > { %s2935_s16 = scalar_lea.vmem %s7560_s1, %s2934_s12 }
 0x28f   : > { %v2954_v53 = vld [vmem:[%s2935_s16] sm:$0x1] }
 0x290   : > { %2955 = vst [vmem:[#allocation2 + $0x35] sm:$0x1] %v2954_v53 }
 0x291   : > { %2980 = vsyncadd [#allocation3], 16  ;;  %s2981_s26 = sadd.s32 54, %s6920_s13 }
 0x292   : > { %s2982_s18 = sld [smem:[#allocation6 + %s2981_s26]] }
 0x298   : > { %s2983_s20 = scalar_lea.vmem %s7560_s1, %s2982_s18 }
 0x299   : > { %v3002_v54 = vld [vmem:[%s2983_s20] sm:$0x1] }
 0x29a   : > { %3003 = vst [vmem:[#allocation2 + $0x36] sm:$0x1] %v3002_v54 }
 0x29b   : > { %3028 = vsyncadd [#allocation3], 16  ;;  %s3029_s23 = sadd.s32 55, %s6920_s13 }
 0x29c   : > { %s3030_s25 = sld [smem:[#allocation6 + %s3029_s23]] }
 0x2a2   : > { %s3031_s24 = scalar_lea.vmem %s7560_s1, %s3030_s25 }
 0x2a3   : > { %v3050_v55 = vld [vmem:[%s3031_s24] sm:$0x1] }
 0x2a4   : > { %3051 = vst [vmem:[#allocation2 + $0x37] sm:$0x1] %v3050_v55 }
 0x2a5   : > { %3076 = vsyncadd [#allocation3], 16  ;;  %s3077_s12 = sadd.s32 56, %s6920_s13 }
 0x2a6   : > { %s3078_s22 = sld [smem:[#allocation6 + %s3077_s12]] }
 0x2ac   : > { %s3079_s26 = scalar_lea.vmem %s7560_s1, %s3078_s22 }
 0x2ad   : > { %v3098_v56 = vld [vmem:[%s3079_s26] sm:$0x1] }
 0x2ae   : > { %3099 = vst [vmem:[#allocation2 + $0x38] sm:$0x1] %v3098_v56 }
 0x2af   : > { %3124 = vsyncadd [#allocation3], 16  ;;  %s3125_s18 = sadd.s32 57, %s6920_s13 }
 0x2b0   : > { %s3126_s15 = sld [smem:[#allocation6 + %s3125_s18]] }
 0x2b6   : > { %s3127_s23 = scalar_lea.vmem %s7560_s1, %s3126_s15 }
 0x2b7   : > { %v3146_v57 = vld [vmem:[%s3127_s23] sm:$0x1] }
 0x2b8   : > { %3147 = vst [vmem:[#allocation2 + $0x39] sm:$0x1] %v3146_v57 }
 0x2b9   : > { %3172 = vsyncadd [#allocation3], 16  ;;  %s3173_s25 = sadd.s32 58, %s6920_s13 }
 0x2ba   : > { %s3174_s27 = sld [smem:[#allocation6 + %s3173_s25]] }
 0x2c0   : > { %s3175_s12 = scalar_lea.vmem %s7560_s1, %s3174_s27 }
 0x2c1   : > { %v3194_v58 = vld [vmem:[%s3175_s12] sm:$0x1] }
 0x2c2   : > { %3195 = vst [vmem:[#allocation2 + $0x3a] sm:$0x1] %v3194_v58 }
 0x2c3   : > { %3220 = vsyncadd [#allocation3], 16  ;;  %s3221_s22 = sadd.s32 59, %s6920_s13 }
 0x2c4   : > { %s3222_s14 = sld [smem:[#allocation6 + %s3221_s22]] }
 0x2ca   : > { %s3223_s18 = scalar_lea.vmem %s7560_s1, %s3222_s14 }
 0x2cb   : > { %v3242_v59 = vld [vmem:[%s3223_s18] sm:$0x1] }
 0x2cc   : > { %3243 = vst [vmem:[#allocation2 + $0x3b] sm:$0x1] %v3242_v59 }
 0x2cd   : > { %3268 = vsyncadd [#allocation3], 16  ;;  %s3269_s15 = sadd.s32 60, %s6920_s13 }
 0x2ce   : > { %s3270_s29 = sld [smem:[#allocation6 + %s3269_s15]] }
 0x2d4   : > { %s3271_s25 = scalar_lea.vmem %s7560_s1, %s3270_s29 }
 0x2d5   : > { %v3290_v60 = vld [vmem:[%s3271_s25] sm:$0x1] }
 0x2d6   : > { %3291 = vst [vmem:[#allocation2 + $0x3c] sm:$0x1] %v3290_v60 }
 0x2d7   : > { %3316 = vsyncadd [#allocation3], 16  ;;  %s3317_s27 = sadd.s32 61, %s6920_s13 }
 0x2d8   : > { %s3318_s21 = sld [smem:[#allocation6 + %s3317_s27]] }
 0x2de   : > { %s3319_s22 = scalar_lea.vmem %s7560_s1, %s3318_s21 }
 0x2df   : > { %v3338_v61 = vld [vmem:[%s3319_s22] sm:$0x1] }
 0x2e0   : > { %3339 = vst [vmem:[#allocation2 + $0x3d] sm:$0x1] %v3338_v61 }
 0x2e1   : > { %3364 = vsyncadd [#allocation3], 16  ;;  %s3365_s14 = sadd.s32 62, %s6920_s13 }
 0x2e2   : > { %s3366_s16 = sld [smem:[#allocation6 + %s3365_s14]] }
 0x2e8   : > { %s3367_s15 = scalar_lea.vmem %s7560_s1, %s3366_s16 }
 0x2e9   : > { %v3386_v62 = vld [vmem:[%s3367_s15] sm:$0x1] }
 0x2ea   : > { %3387 = vst [vmem:[#allocation2 + $0x3e] sm:$0x1] %v3386_v62 }
 0x2eb   : > { %3412 = vsyncadd [#allocation3], 16  ;;  %s3413_s29 = sadd.s32 63, %s6920_s13 }
 0x2ec   : > { %s3414_s20 = sld [smem:[#allocation6 + %s3413_s29]] }
 0x2f2   : > { %s3415_s27 = scalar_lea.vmem %s7560_s1, %s3414_s20 }
 0x2f3   : > { %v3434_v63 = vld [vmem:[%s3415_s27] sm:$0x1] }
 0x2f4   : > { %3435 = vst [vmem:[#allocation2 + $0x3f] sm:$0x1] %v3434_v63 }
 0x2f5   : > { %3460 = vsyncadd [#allocation3], 16 }
 0x2f6   : > { %6661 = dma.done.wait [#allocation3], 1024 }
 0x2f7   : > { %6662 = vsyncadd [#allocation3], 4294966272  ;;  %v6689_v0 = vmov 0.0|0.0   ;;  %vm6690_vm0 = vmmov 0   ;;  %v6691_v1 = vmov 0.0   ;;  %v3598_v2 = vld [vmem:[%s7561_s2] sm:$0xff] }
 0x2f8   : > { %6174 = vmatprep.subr.bf16.mxu1 %v6689_v0  ;;  %5821 = vmatprep.mubr.msk.f32.mxu1 %vm6690_vm0, %v6691_v1  ;;  %v3599_v3 = vld [vmem:[%s7561_s2 + $0x8] sm:$0xff]  ;;  %v3734_v4 = vld [vmem:[#allocation7] sm:$0xff]  ;;  %v3600_v7 = vld [vmem:[%s7561_s2 + $0x10] sm:$0xff]  ;;  %vm4427_vm1 = vcmask 523264   ;;  %s6692_s25 = smov 64   ;;  %s4676_s16 = sshll.u32 %s389_s28, 4  ;;  %s7514_s16 = int_to_ptr.vmem [resolvable:$true] %s4676_s16 }
 0x2f9   : > { %v6142_v5 = vpack.c.bf16 %v3599_v3, %v3598_v2  ;;  %v3735_v6 = vld [vmem:[#allocation7 + $0x8] sm:$0xff]  ;;  %v3601_v8 = vld [vmem:[%s7561_s2 + $0x18] sm:$0xff]  ;;  %v3736_v11 = vld [vmem:[#allocation7 + $0x10] sm:$0xff]  ;;  %s7599_s15 = sld [smem:[#allocation89_spill]]  ;;  %s4663_s20 = scalar_lea.sflag [#allocation9], %s387_s19 }
 0x2fa   : > { %v7199_v9 = vpack.c.bf16 %v3735_v6, %v3734_v4  ;;  %v6146_v10 = vpack.c.bf16 %v3601_v8, %v3600_v7  ;;  %v3737_v12 = vld [vmem:[#allocation7 + $0x18] sm:$0xff]  ;;  %v3602_v13 = vld [vmem:[%s7561_s2 + $0x20] sm:$0xff]  ;;  %v3603_v14 = vld [vmem:[%s7561_s2 + $0x28] sm:$0xff]  ;;  %s6607_s23 = scalar_lea.vmem %s7514_s16, 128  ;;  %p7600_p9 = scmp.ne.s32.totalorder %s7588_s17, 0 }
 0x2fb   : > { %6143 = vmatprep.subr.bf16.mxu0 %v6142_v5  ;;  %v7208_v15 = vpack.c.bf16 %v3737_v12, %v3736_v11  ;;  %v6150_v16 = vpack.c.bf16 %v3603_v14, %v3602_v13  ;;  %v3738_v17 = vld [vmem:[#allocation7 + $0x20] sm:$0xff]  ;;  %v3739_v18 = vld [vmem:[#allocation7 + $0x28] sm:$0xff]  ;;  %v3604_v19 = vld [vmem:[%s7561_s2 + $0x30] sm:$0xff]  ;;  %p6608_p3 = scmp.ne.s32.totalorder %s7514_s16, %s6607_s23 }
 0x2fc   : > { %6145 = vmatpush3.bf16.msra.mxu0 %v6142_v5  ;;  %6176 = vmatpush3.bf16.msra.mxu1 %v7199_v9  ;;  %v3605_v20 = vld [vmem:[%s7561_s2 + $0x38] sm:$0xff]  ;;  %v7218_v21 = vpack.c.bf16 %v3739_v18, %v3738_v17  ;;  %v3740_v23 = vld [vmem:[#allocation7 + $0x30] sm:$0xff]  ;;  %v3606_v25 = vld [vmem:[%s7561_s2 + $0x40] sm:$0xff] }
 0x2fd   : > { %6147 = vmatprep.subr.bf16.mxu0 %v6146_v10  ;;  %6177 = vmatprep.subr.bf16.mxu1 %v6689_v0  ;;  %v6154_v22 = vpack.c.bf16 %v3605_v20, %v3604_v19  ;;  %v3741_v24 = vld [vmem:[#allocation7 + $0x38] sm:$0xff]  ;;  %v3607_v26 = vld [vmem:[%s7561_s2 + $0x48] sm:$0xff]  ;;  %v3590_v27 = vld [vmem:[#allocation2] sm:$0xff]  ;;  %p6609_p12 = pnand %p6608_p3, %p7600_p9 }
 0x2fe   : > { %5777 = vmatprep.mubr.f32.mxu0 %v3590_v27  ;;  %v7228_v28 = vpack.c.bf16 %v3741_v24, %v3740_v23  ;;  %v6158_v29 = vpack.c.bf16 %v3607_v26, %v3606_v25  ;;  %v3742_v30 = vld [vmem:[#allocation7 + $0x40] sm:$0xff]  ;;  %v3743_v31 = vld [vmem:[#allocation7 + $0x48] sm:$0xff]  ;;  %v3608_v32 = vld [vmem:[%s7561_s2 + $0x50] sm:$0xff] }
 0x2ff   : > { %v3609_v33 = vld [vmem:[%s7561_s2 + $0x58] sm:$0xff]  ;;  %v7238_v34 = vpack.c.bf16 %v3743_v31, %v3742_v30  ;;  %v3744_v36 = vld [vmem:[#allocation7 + $0x50] sm:$0xff]  ;;  %v3610_v38 = vld [vmem:[%s7561_s2 + $0x60] sm:$0xff]  ;;  %s7512_s29 = scalar_lea.hbm %s7599_s15, %s6920_s13  ;;  %p6610_p13 = pneg %p6609_p12 }
 0x300   : > { %6149 = vmatpush3.bf16.msra.mxu0 %v6146_v10  ;;  %6179 = vmatpush3.bf16.msra.mxu1 %v7208_v15  ;;  %v6162_v35 = vpack.c.bf16 %v3609_v33, %v3608_v32  ;;  %v3745_v37 = vld [vmem:[#allocation7 + $0x58] sm:$0xff]  ;;  %v3611_v39 = vld [vmem:[%s7561_s2 + $0x68] sm:$0xff]  ;;  %v3746_v42 = vld [vmem:[#allocation7 + $0x60] sm:$0xff] }
 0x301   : > { %6151 = vmatprep.subr.bf16.mxu0 %v6150_v16  ;;  %6180 = vmatprep.subr.bf16.mxu1 %v6689_v0  ;;  %v7248_v40 = vpack.c.bf16 %v3745_v37, %v3744_v36  ;;  %v6166_v41 = vpack.c.bf16 %v3611_v39, %v3610_v38  ;;  %v3747_v43 = vld [vmem:[#allocation7 + $0x68] sm:$0xff]  ;;  %v3612_v44 = vld [vmem:[%s7561_s2 + $0x70] sm:$0xff]  ;;  %v3613_v45 = vld [vmem:[%s7561_s2 + $0x78] sm:$0xff] }
 0x302   : > { %v7258_v46 = vpack.c.bf16 %v3747_v43, %v3746_v42  ;;  %v6170_v47 = vpack.c.bf16 %v3613_v45, %v3612_v44  ;;  %v3748_v48 = vld [vmem:[#allocation7 + $0x70] sm:$0xff]  ;;  %v3749_v49 = vld [vmem:[#allocation7 + $0x78] sm:$0xff]  ;;  %v3591_v51 = vld [vmem:[#allocation2 + $0x8] sm:$0xff] }
 0x303   : > { %v7262_v50 = vpack.c.bf16 %v3749_v49, %v3748_v48  ;;  %v3592_v52 = vld [vmem:[#allocation2 + $0x10] sm:$0xff]  ;;  %v3593_v53 = vld [vmem:[#allocation2 + $0x18] sm:$0xff]  ;;  %v3594_v54 = vld [vmem:[#allocation2 + $0x20] sm:$0xff] }
 0x304   : > { %6153 = vmatpush3.bf16.msra.mxu0 %v6150_v16  ;;  %6182 = vmatpush3.bf16.msra.mxu1 %v7218_v21  ;;  %v3595_v55 = vld [vmem:[#allocation2 + $0x28] sm:$0xff]  ;;  %v3596_v56 = vld [vmem:[#allocation2 + $0x30] sm:$0xff]  ;;  %v3597_v57 = vld [vmem:[#allocation2 + $0x38] sm:$0xff] }
 0x305   : > { %6155 = vmatprep.subr.bf16.mxu0 %v6154_v22  ;;  %6183 = vmatprep.subr.bf16.mxu1 %v6689_v0  ;;  %v7308_v58 = vld [vmem:[%s7563_s4] ss:$0 sm:$0xff]  ;;  %v4335_v36 = vld [vmem:[%s7564_s5 + $0x8] sm:$0xff]  ;;  %v4336_v37 = vld [vmem:[%s7564_s5 + $0x10] sm:$0xff] }
 0x306   : > { %v4337_v39 = vld [vmem:[%s7564_s5 + $0x18] sm:$0xff]  ;;  %v4339_v42 = vld [vmem:[%s7564_s5 + $0x28] sm:$0xff]  ;;  %v4340_v44 = vld [vmem:[%s7564_s5 + $0x30] sm:$0xff] }
 0x307   : > { %v4341_v45 = vld [vmem:[%s7564_s5 + $0x38] sm:$0xff]  ;;  %v4343_v48 = vld [vmem:[%s7564_s5 + $0x48] sm:$0xff] }
 0x308   : > { %6157 = vmatpush3.bf16.msra.mxu0 %v6154_v22  ;;  %6185 = vmatpush3.bf16.msra.mxu1 %v7228_v28 }
 0x309   : > { %6159 = vmatprep.subr.bf16.mxu0 %v6158_v29  ;;  %6186 = vmatprep.subr.bf16.mxu1 %v6689_v0 }
 0x30c   : > { %6161 = vmatpush3.bf16.msra.mxu0 %v6158_v29  ;;  %6188 = vmatpush3.bf16.msra.mxu1 %v7238_v34 }
 0x30d   : > { %6163 = vmatprep.subr.bf16.mxu0 %v6162_v35  ;;  %6189 = vmatprep.subr.bf16.mxu1 %v6689_v0 }
 0x310   : > { %6165 = vmatpush3.bf16.msra.mxu0 %v6162_v35  ;;  %6191 = vmatpush3.bf16.msra.mxu1 %v7248_v40  ;;  %v4334_v35 = vld [vmem:[%s7564_s5] sm:$0xff] }
 0x311   : > { %6167 = vmatprep.subr.bf16.mxu0 %v6166_v41  ;;  %6192 = vmatprep.subr.bf16.mxu1 %v6689_v0  ;;  %v6367_v38 = vpack.c.bf16 %v4335_v36, %v4334_v35 }
 0x314   : > { %6169 = vmatpush3.bf16.msra.mxu0 %v6166_v41  ;;  %6194 = vmatpush3.bf16.msra.mxu1 %v7258_v46  ;;  %v4338_v41 = vld [vmem:[%s7564_s5 + $0x20] sm:$0xff] }
 0x315   : > { %6171 = vmatprep.subr.bf16.mxu0 %v6170_v47  ;;  %6195 = vmatprep.subr.bf16.mxu1 %v6689_v0  ;;  %v6373_v43 = vpack.c.bf16 %v4339_v42, %v4338_v41 }
 0x318   : > { %6173 = vmatpush3.bf16.msra.mxu0 %v6170_v47  ;;  %6197 = vmatpush3.bf16.msra.mxu1 %v7262_v50  ;;  %v4342_v47 = vld [vmem:[%s7564_s5 + $0x40] sm:$0xff] }
 0x319   : > { %6198 = vmatprep.subr.bf16.mxu0 %v6689_v0  ;;  %6222 = vmatprep.subr.bf16.mxu1 %v6689_v0  ;;  %v6379_v49 = vpack.c.bf16 %v4343_v48, %v4342_v47  ;;  %v4572_v47 = vld [vmem:[#allocation12 + $0x18] sm:$0xff] }
 0x31b   : > { %5778 = vmatmul.mubr.f32.vlgmr.msra.gmra.mrb[0].mxu0 %v3591_v51  ;;  %5822 = vmatmul.mubr.f32.vlgmr.msra.gmra.mrb[0].mxu1 %v6691_v1 }
 0x31c   : > { %6200 = vmatpush3.bf16.msra.mxu0 %v7199_v9  ;;  %6224 = vmatpush3.bf16.msra.mxu1 %v7199_v9 }
 0x31d   : > { %6201 = vmatprep.subr.bf16.mxu0 %v6689_v0  ;;  %6225 = vmatprep.subr.bf16.mxu1 %v6689_v0 }
 0x31e   : > { %5891 = vmatprep.mubr.msk.f32.mxu1 %vm6690_vm0, %v6691_v1  ;;  %5780 = vmatprep.mubr.f32.mxu0 %v3592_v52 }
 0x31f   : > { %5781 = vmatmul.mubr.f32.gmra.mrb[2].mxu0 %v3593_v53 }
 0x320   : > { %6203 = vmatpush3.bf16.msra.mxu0 %v7208_v15  ;;  %6227 = vmatpush3.bf16.msra.mxu1 %v7208_v15 }
 0x321   : > { %6204 = vmatprep.subr.bf16.mxu0 %v6689_v0  ;;  %6228 = vmatprep.subr.bf16.mxu1 %v6689_v0 }
 0x322   : > { %5783 = vmatprep.mubr.f32.mxu0 %v3594_v54 }
 0x323   : > { %5784 = vmatmul.mubr.f32.gmra.mrb[4].mxu0 %v3595_v55  ;;  %v4344_v55 = vld [vmem:[%s7564_s5 + $0x50] sm:$0xff] }
 0x324   : > { %6206 = vmatpush3.bf16.msra.mxu0 %v7218_v21  ;;  %6230 = vmatpush3.bf16.msra.mxu1 %v7218_v21 }
 0x325   : > { %6207 = vmatprep.subr.bf16.mxu0 %v6689_v0  ;;  %6231 = vmatprep.subr.bf16.mxu1 %v6689_v0 }
 0x326   : > { %5786 = vmatprep.mubr.f32.mxu0 %v3596_v56  ;;  %v4345_v56 = vld [vmem:[%s7564_s5 + $0x58] sm:$0xff] }
 0x327   : > { %5787 = vmatmul.mubr.f32.gmra.mrb[6].mxu0 %v3597_v57  ;;  %v6382_v57 = vpack.c.bf16 %v4345_v56, %v4344_v55 }
 0x328   : > { %6209 = vmatpush3.bf16.msra.mxu0 %v7228_v28  ;;  %6233 = vmatpush3.bf16.msra.mxu1 %v7228_v28 }
 0x329   : > { %6210 = vmatprep.subr.bf16.mxu0 %v6689_v0  ;;  %6234 = vmatprep.subr.bf16.mxu1 %v6689_v0 }
 0x32a   : > { %5856 = vmatprep.mubr.msk.f32.mxu0 %vm6690_vm0, %v6691_v1 }
 0x32c   : > { %6212 = vmatpush3.bf16.msra.mxu0 %v7238_v34  ;;  %6236 = vmatpush3.bf16.msra.mxu1 %v7238_v34 }
 0x32d   : > { %6213 = vmatprep.subr.bf16.mxu0 %v6689_v0  ;;  %6237 = vmatprep.subr.bf16.mxu1 %v6689_v0 }
 0x330   : > { %6215 = vmatpush3.bf16.msra.mxu0 %v7248_v40  ;;  %6239 = vmatpush3.bf16.msra.mxu1 %v7248_v40 }
 0x331   : > { %6216 = vmatprep.subr.bf16.mxu0 %v6689_v0  ;;  %6240 = vmatprep.subr.bf16.mxu1 %v6689_v0 }
 0x334   : > { %6218 = vmatpush3.bf16.msra.mxu0 %v7258_v46  ;;  %6242 = vmatpush3.bf16.msra.mxu1 %v7258_v46 }
 0x335   : > { %6219 = vmatprep.subr.bf16.mxu0 %v6689_v0  ;;  %6243 = vmatprep.subr.bf16.mxu1 %v6689_v0 }
 0x338   : > { %6221 = vmatpush3.bf16.msra.mxu0 %v7262_v50  ;;  %6245 = vmatpush3.bf16.msra.mxu1 %v7262_v50 }
 0x339   : > { %6246 = vmatprep.subr.bf16.mxu0 %v6689_v0  ;;  %6270 = vmatprep.subr.bf16.mxu1 %v6689_v0 }
 0x3ee   : > { %v5779_v59 = vpop.f32.mrb[0].mxu0  ;;  %v3817_v60 = vpop.f32.mrb[0].mxu1 }
 0x3ef   : > { %v3687_v61 = vpop.f32.mrb[1].mxu0  ;;  %v5823_v62 = vpop.f32.mrb[1].mxu1  ;;  %v3693_v11 = vadd.f32 %v5779_v59, %v7308_v58  ;;  %v4346_v59 = vld [vmem:[%s7564_s5 + $0x60] sm:$0xff] }
 0x3f0   : > { %v3688_v63 = vadd.f32 %v7308_v58, %v3687_v61  ;;  %v4348_v62 = vld [vmem:[%s7564_s5 + $0x70] sm:$0xff] }
 0x3f2   : > { %v3821_v2 = vadd.f32 %v3817_v60, %v3688_v63  ;;  %v5782_v4 = vpop.f32.mrb[2].mxu0  ;;  %v4347_v60 = vld [vmem:[%s7564_s5 + $0x68] sm:$0xff]  ;;  %v4349_v63 = vld [vmem:[%s7564_s5 + $0x78] sm:$0xff] }
 0x3f3   : > { %v3697_v5 = vpop.f32.mrb[3].mxu0  ;;  %v3703_v23 = vadd.f32 %v5782_v4, %v7308_v58  ;;  %v6385_v61 = vpack.c.bf16 %v4347_v60, %v4346_v59 }
 0x3f4   : > { %6491 = vtanh.f32 %v3821_v2  ;;  %v3698_v17 = vadd.f32 %v7308_v58, %v3697_v5  ;;  %v6388_v2 = vpack.c.bf16 %v4349_v63, %v4348_v62 }
 0x3f6   : > { %v7329_v6 = vpop.f32.mrb[4].mxu0 }
 0x3f7   : > { %v7331_v7 = vpop.f32.mrb[5].mxu0 }
 0x3f8   : > { %v3708_v29 = vadd.f32 %v7308_v58, %v7331_v7 }
 0x3fa   : > { %v7333_v8 = vpop.f32.mrb[6].mxu0 }
 0x3fb   : > { %v7335_v10 = vpop.f32.mrb[7].mxu0 }
 0x3fe   : > { %v6492_v3 = vpop.eup %6491 }
 0x3ff   : > { %5857 = vmatmul.mubr.f32.vlgmr.msra.gmra.mrb[8].mxu0 %v6492_v3  ;;  %v3723_v3 = vadd.f32 %v7333_v8, %v7308_v58  ;;  %v4455_v8 = vld [vmem:[#allocation10 + $0x28] sm:$0xff] }
 0x400   : > { %6248 = vmatpush3.bf16.msra.mxu0 %v7199_v9  ;;  %5926 = vmatprep.mubr.msk.f32.mxu0 %vm6690_vm0, %v6691_v1 }
 0x401   : > { %6249 = vmatprep.subr.bf16.mxu0 %v6689_v0 }
 0x404   : > { %6251 = vmatpush3.bf16.msra.mxu0 %v7208_v15 }
 0x405   : > { %6252 = vmatprep.subr.bf16.mxu0 %v6689_v0 }
 0x408   : > { %6254 = vmatpush3.bf16.msra.mxu0 %v7218_v21 }
 0x409   : > { %6255 = vmatprep.subr.bf16.mxu0 %v6689_v0 }
 0x40c   : > { %6257 = vmatpush3.bf16.msra.mxu0 %v7228_v28 }
 0x40d   : > { %6258 = vmatprep.subr.bf16.mxu0 %v6689_v0 }
 0x410   : > { %6260 = vmatpush3.bf16.msra.mxu0 %v7238_v34 }
 0x411   : > { %6261 = vmatprep.subr.bf16.mxu0 %v6689_v0 }
 0x414   : > { %6263 = vmatpush3.bf16.msra.mxu0 %v7248_v40 }
 0x415   : > { %6264 = vmatprep.subr.bf16.mxu0 %v6689_v0 }
 0x418   : > { %6266 = vmatpush3.bf16.msra.mxu0 %v7258_v46 }
 0x419   : > { %6267 = vmatprep.subr.bf16.mxu0 %v6689_v0 }
 0x41c   : > { %6269 = vmatpush3.bf16.msra.mxu0 %v7262_v50 }
 0x41d   : > { %6294 = vmatprep.subr.bf16.mxu0 %v6689_v0 }
 0x4d2   : > { %v3890_v12 = vpop.f32.mrb[8].mxu0 }
 0x4d3   : > { %v3894_v13 = vadd.f32 %v3890_v12, %v3693_v11  ;;  %v5858_v14 = vpop.f32.mrb[9].mxu0  ;;  %v4451_v11 = vld [vmem:[#allocation10 + $0x8] sm:$0xff] }
 0x4d4   : > { %v4453_v14 = vld [vmem:[#allocation10 + $0x18] sm:$0xff] }
 0x4d5   : > { %6493 = vtanh.f32 %v3894_v13  ;;  %v4452_v13 = vld [vmem:[#allocation10 + $0x10] sm:$0xff] }
 0x4df   : > { %v6494_v16 = vpop.eup %6493 }
 0x4e0   : > { %5892 = vmatmul.mubr.f32.vlgmr.msra.gmra.mrb[2].mxu1 %v6494_v16  ;;  %v6394_v16 = vpack.c.bf16 %v4453_v14, %v4452_v13 }
 0x4e1   : > { %6272 = vmatpush3.bf16.msra.mxu1 %v7199_v9  ;;  %5961 = vmatprep.mubr.msk.f32.mxu1 %vm6690_vm0, %v6691_v1 }
 0x4e2   : > { %6273 = vmatprep.subr.bf16.mxu1 %v6689_v0 }
 0x4e5   : > { %6275 = vmatpush3.bf16.msra.mxu1 %v7208_v15 }
 0x4e6   : > { %6276 = vmatprep.subr.bf16.mxu1 %v6689_v0 }
 0x4e9   : > { %6278 = vmatpush3.bf16.msra.mxu1 %v7218_v21 }
 0x4ea   : > { %6279 = vmatprep.subr.bf16.mxu1 %v6689_v0 }
 0x4ed   : > { %6281 = vmatpush3.bf16.msra.mxu1 %v7228_v28 }
 0x4ee   : > { %6282 = vmatprep.subr.bf16.mxu1 %v6689_v0 }
 0x4f1   : > { %6284 = vmatpush3.bf16.msra.mxu1 %v7238_v34 }
 0x4f2   : > { %6285 = vmatprep.subr.bf16.mxu1 %v6689_v0 }
 0x4f5   : > { %6287 = vmatpush3.bf16.msra.mxu1 %v7248_v40 }
 0x4f6   : > { %6288 = vmatprep.subr.bf16.mxu1 %v6689_v0 }
 0x4f9   : > { %6290 = vmatpush3.bf16.msra.mxu1 %v7258_v46 }
 0x4fa   : > { %6291 = vmatprep.subr.bf16.mxu1 %v6689_v0 }
 0x4fd   : > { %6293 = vmatpush3.bf16.msra.mxu1 %v7262_v50 }
 0x4fe   : > { %6318 = vmatprep.subr.bf16.mxu1 %v6689_v0 }
 0x5b3   : > { %v3963_v18 = vpop.f32.mrb[2].mxu1 }
 0x5b4   : > { %v3967_v19 = vadd.f32 %v3963_v18, %v3698_v17  ;;  %v5893_v20 = vpop.f32.mrb[3].mxu1  ;;  %v4456_v18 = vld [vmem:[#allocation10 + $0x30] sm:$0xff] }
 0x5b5   : > { %v5539_v20 = vld [vmem:[%s7565_s6] ss:$0 sm:$0xff] }
 0x5b6   : > { %6495 = vtanh.f32 %v3967_v19 }
 0x5c0   : > { %v6496_v22 = vpop.eup %6495 }
 0x5c1   : > { %5927 = vmatmul.mubr.f32.vlgmr.msra.gmra.mrb[10].mxu0 %v6496_v22 }
 0x5c2   : > { %6296 = vmatpush3.bf16.msra.mxu0 %v7199_v9  ;;  %5996 = vmatprep.mubr.msk.f32.mxu0 %vm6690_vm0, %v6691_v1 }
 0x5c3   : > { %6297 = vmatprep.subr.bf16.mxu0 %v6689_v0 }
 0x5c6   : > { %6299 = vmatpush3.bf16.msra.mxu0 %v7208_v15 }
 0x5c7   : > { %6300 = vmatprep.subr.bf16.mxu0 %v6689_v0 }
 0x5ca   : > { %6302 = vmatpush3.bf16.msra.mxu0 %v7218_v21 }
 0x5cb   : > { %6303 = vmatprep.subr.bf16.mxu0 %v6689_v0 }
 0x5ce   : > { %6305 = vmatpush3.bf16.msra.mxu0 %v7228_v28 }
 0x5cf   : > { %6306 = vmatprep.subr.bf16.mxu0 %v6689_v0 }
 0x5d2   : > { %6308 = vmatpush3.bf16.msra.mxu0 %v7238_v34 }
 0x5d3   : > { %6309 = vmatprep.subr.bf16.mxu0 %v6689_v0 }
 0x5d6   : > { %6311 = vmatpush3.bf16.msra.mxu0 %v7248_v40 }
 0x5d7   : > { %6312 = vmatprep.subr.bf16.mxu0 %v6689_v0 }
 0x5da   : > { %6314 = vmatpush3.bf16.msra.mxu0 %v7258_v46 }
 0x5db   : > { %6315 = vmatprep.subr.bf16.mxu0 %v6689_v0 }
 0x5de   : > { %6317 = vmatpush3.bf16.msra.mxu0 %v7262_v50 }
 0x5df   : > { %6342 = vmatprep.subr.bf16.mxu0 %v6689_v0 }
 0x694   : > { %v4036_v24 = vpop.f32.mrb[10].mxu0 }
 0x695   : > { %v4040_v25 = vadd.f32 %v4036_v24, %v3703_v23  ;;  %v5928_v26 = vpop.f32.mrb[11].mxu0 }
 0x697   : > { %6497 = vtanh.f32 %v4040_v25 }
 0x6a1   : > { %v6498_v27 = vpop.eup %6497 }
 0x6a2   : > { %5962 = vmatmul.mubr.f32.vlgmr.msra.gmra.mrb[4].mxu1 %v6498_v27 }
 0x6a3   : > { %6320 = vmatpush3.bf16.msra.mxu1 %v7199_v9  ;;  %6031 = vmatprep.mubr.msk.f32.mxu1 %vm6690_vm0, %v6691_v1 }
 0x6a4   : > { %6321 = vmatprep.subr.bf16.mxu1 %v6689_v0 }
 0x6a7   : > { %6323 = vmatpush3.bf16.msra.mxu1 %v7208_v15 }
 0x6a8   : > { %6324 = vmatprep.subr.bf16.mxu1 %v6689_v0 }
 0x6ab   : > { %6326 = vmatpush3.bf16.msra.mxu1 %v7218_v21 }
 0x6ac   : > { %6327 = vmatprep.subr.bf16.mxu1 %v6689_v0 }
 0x6af   : > { %6329 = vmatpush3.bf16.msra.mxu1 %v7228_v28 }
 0x6b0   : > { %6330 = vmatprep.subr.bf16.mxu1 %v6689_v0 }
 0x6b3   : > { %6332 = vmatpush3.bf16.msra.mxu1 %v7238_v34 }
 0x6b4   : > { %6333 = vmatprep.subr.bf16.mxu1 %v6689_v0 }
 0x6b7   : > { %6335 = vmatpush3.bf16.msra.mxu1 %v7248_v40 }
 0x6b8   : > { %6336 = vmatprep.subr.bf16.mxu1 %v6689_v0 }
 0x6bb   : > { %6338 = vmatpush3.bf16.msra.mxu1 %v7258_v46 }
 0x6bc   : > { %6339 = vmatprep.subr.bf16.mxu1 %v6689_v0 }
 0x6bf   : > { %6341 = vmatpush3.bf16.msra.mxu1 %v7262_v50 }
 0x6c0   : > { %6366 = vmatprep.subr.bf16.mxu1 %v6689_v0 }
 0x775   : > { %v4109_v30 = vpop.f32.mrb[4].mxu1 }
 0x776   : > { %v4113_v31 = vadd.f32 %v4109_v30, %v3708_v29  ;;  %v5963_v32 = vpop.f32.mrb[5].mxu1 }
 0x778   : > { %6499 = vtanh.f32 %v4113_v31 }
 0x782   : > { %v6500_v33 = vpop.eup %6499 }
 0x783   : > { %5997 = vmatmul.mubr.f32.vlgmr.msra.gmra.mrb[12].mxu0 %v6500_v33 }
 0x784   : > { %6344 = vmatpush3.bf16.msra.mxu0 %v7199_v9  ;;  %6066 = vmatprep.mubr.msk.f32.mxu0 %vm6690_vm0, %v6691_v1  ;;  %v3713_v9 = vadd.f32 %v7329_v6, %v7308_v58 }
 0x785   : > { %6345 = vmatprep.subr.bf16.mxu0 %v6689_v0 }
 0x788   : > { %6347 = vmatpush3.bf16.msra.mxu0 %v7208_v15 }
 0x789   : > { %6348 = vmatprep.subr.bf16.mxu0 %v6689_v0 }
 0x78c   : > { %6350 = vmatpush3.bf16.msra.mxu0 %v7218_v21 }
 0x78d   : > { %6351 = vmatprep.subr.bf16.mxu0 %v6689_v0 }
 0x790   : > { %6353 = vmatpush3.bf16.msra.mxu0 %v7228_v28 }
 0x791   : > { %6354 = vmatprep.subr.bf16.mxu0 %v6689_v0 }
 0x794   : > { %6356 = vmatpush3.bf16.msra.mxu0 %v7238_v34 }
 0x795   : > { %6357 = vmatprep.subr.bf16.mxu0 %v6689_v0 }
 0x798   : > { %6359 = vmatpush3.bf16.msra.mxu0 %v7248_v40  ;;  %v6370_v40 = vpack.c.bf16 %v4337_v39, %v4336_v37 }
 0x799   : > { %6360 = vmatprep.subr.bf16.mxu0 %v6689_v0 }
 0x79c   : > { %6362 = vmatpush3.bf16.msra.mxu0 %v7258_v46  ;;  %v6376_v46 = vpack.c.bf16 %v4341_v45, %v4340_v44  ;;  %v4570_v44 = vld [vmem:[#allocation12 + $0x8] sm:$0xff] }
 0x79d   : > { %6363 = vmatprep.subr.bf16.mxu0 %v6689_v0 }
 0x7a0   : > { %6365 = vmatpush3.bf16.msra.mxu0 %v7262_v50  ;;  %v3718_v50 = vadd.f32 %v7308_v58, %v7335_v10  ;;  %v4450_v10 = vld [vmem:[#allocation10] sm:$0xff] }
 0x7a1   : > { %6390 = vmatprep.subr.bf16.mxu0 %v6689_v0  ;;  %v6391_v12 = vpack.c.bf16 %v4451_v11, %v4450_v10  ;;  %v4454_v58 = vld [vmem:[#allocation10 + $0x20] sm:$0xff] }
 0x7a2   : > { %v6397_v17 = vpack.c.bf16 %v4455_v8, %v4454_v58  ;;  %v5541_v8 = vld [vmem:[%s7567_s8] ss:$0 sm:$0xff] }
 0x856   : > { %v4182_v15 = vpop.f32.mrb[12].mxu0 }
 0x857   : > { %v4186_v21 = vadd.f32 %v4182_v15, %v3713_v9  ;;  %v5998_v28 = vpop.f32.mrb[13].mxu0 }
 0x859   : > { %6501 = vtanh.f32 %v4186_v21 }
 0x863   : > { %v6502_v34 = vpop.eup %6501 }
 0x864   : > { %6032 = vmatmul.mubr.f32.vlgmr.msra.gmra.mrb[6].mxu1 %v6502_v34 }
 0x865   : > { %6101 = vmatprep.mubr.msk.f32.mxu1 %vm6690_vm0, %v6691_v1  ;;  %6368 = vmatpush3.bf16.msra.mxu1 %v6367_v38 }
 0x866   : > { %6369 = vmatprep.subr.bf16.mxu1 %v6689_v0 }
 0x869   : > { %6371 = vmatpush3.bf16.msra.mxu1 %v6370_v40 }
 0x86a   : > { %6372 = vmatprep.subr.bf16.mxu1 %v6689_v0 }
 0x86d   : > { %6374 = vmatpush3.bf16.msra.mxu1 %v6373_v43  ;;  %v4569_v43 = vld [vmem:[#allocation12] sm:$0xff] }
 0x86e   : > { %6375 = vmatprep.subr.bf16.mxu1 %v6689_v0  ;;  %v6403_v45 = vpack.c.bf16 %v4570_v44, %v4569_v43 }
 0x871   : > { %6377 = vmatpush3.bf16.msra.mxu1 %v6376_v46  ;;  %v4571_v46 = vld [vmem:[#allocation12 + $0x10] sm:$0xff] }
 0x872   : > { %6378 = vmatprep.subr.bf16.mxu1 %v6689_v0  ;;  %v6406_v48 = vpack.c.bf16 %v4572_v47, %v4571_v46 }
 0x875   : > { %6380 = vmatpush3.bf16.msra.mxu1 %v6379_v49  ;;  %v4573_v49 = vld [vmem:[#allocation12 + $0x20] sm:$0xff] }
 0x876   : > { %6381 = vmatprep.subr.bf16.mxu1 %v6689_v0 }
 0x879   : > { %6383 = vmatpush3.bf16.msra.mxu1 %v6382_v57 }
 0x87a   : > { %6384 = vmatprep.subr.bf16.mxu1 %v6689_v0 }
 0x87d   : > { %6386 = vmatpush3.bf16.msra.mxu1 %v6385_v61 }
 0x87e   : > { %6387 = vmatprep.subr.bf16.mxu1 %v6689_v0 }
 0x881   : > { %6389 = vmatpush3.bf16.msra.mxu1 %v6388_v2 }
 0x882   : > { %6402 = vmatprep.subr.bf16.mxu1 %v6689_v0 }
 0x937   : > { %v4255_v51 = vpop.f32.mrb[6].mxu1 }
 0x938   : > { %v4259_v52 = vadd.f32 %v4255_v51, %v3718_v50  ;;  %v6033_v53 = vpop.f32.mrb[7].mxu1  ;;  %v4574_v50 = vld [vmem:[#allocation12 + $0x28] sm:$0xff] }
 0x939   : > { %v6409_v51 = vpack.c.bf16 %v4574_v50, %v4573_v49  ;;  %v4576_v53 = vld [vmem:[#allocation12 + $0x38] sm:$0xff] }
 0x93a   : > { %6503 = vtanh.f32 %v4259_v52  ;;  %v4575_v52 = vld [vmem:[#allocation12 + $0x30] sm:$0xff] }
 0x944   : > { %v6504_v54 = vpop.eup %6503 }
 0x945   : > { %6067 = vmatmul.mubr.f32.vlgmr.msra.gmra.mrb[14].mxu0 %v6504_v54  ;;  %v6412_v54 = vpack.c.bf16 %v4576_v53, %v4575_v52 }
 0x946   : > { %6120 = vmatprep.mubr.msk.f32.mxu0 %vm6690_vm0, %v6691_v1  ;;  %6392 = vmatpush3.bf16.msra.mxu0 %v6391_v12 }
 0x947   : > { %6393 = vmatprep.subr.bf16.mxu0 %v6689_v0 }
 0x94a   : > { %6395 = vmatpush3.bf16.msra.mxu0 %v6394_v16 }
 0x94b   : > { %6396 = vmatprep.subr.bf16.mxu0 %v6689_v0 }
 0x94e   : > { %6398 = vmatpush3.bf16.msra.mxu0 %v6397_v17 }
 0x94f   : > { %6399 = vmatprep.subr.bf16.mxu0 %v6689_v0 }
 0xa18   : > { %v4328_v4 = vpop.f32.mrb[14].mxu0 }
 0xa19   : > { %v4332_v5 = vadd.f32 %v4328_v4, %v3723_v3  ;;  %v6068_v6 = vpop.f32.mrb[15].mxu0 }
 0xa1b   : > { %6505 = vtanh.f32 %v4332_v5 }
 0xa25   : > { %v6506_v7 = vpop.eup %6505 }
 0xa26   : > { %6102 = vmatmul.mubr.f32.vlgmr.msra.gmra.mrb[8].mxu1 %v6506_v7 }
 0xa27   : > { %6139 = vmatprep.mubr.msk.f32.mxu1 %vm6690_vm0, %v6691_v1  ;;  %v4457_v1 = vld [vmem:[#allocation10 + $0x38] sm:$0xff]  ;;  %6404 = vmatpush3.bf16.msra.mxu1 %v6403_v45 }
 0xa28   : > { %v6400_v19 = vpack.c.bf16 %v4457_v1, %v4456_v18  ;;  %6405 = vmatprep.subr.bf16.mxu1 %v6689_v0  ;;  %v5542_v18 = vld [vmem:[%s7568_s9] ss:$0 sm:$0xff] }
 0xa2a   : > { %6401 = vmatpush3.bf16.msra.mxu0 %v6400_v19 }
 0xa2b   : > { %6407 = vmatpush3.bf16.msra.mxu1 %v6406_v48 }
 0xa2c   : > { %6408 = vmatprep.subr.bf16.mxu1 %v6689_v0 }
 0xa2f   : > { %6410 = vmatpush3.bf16.msra.mxu1 %v6409_v51 }
 0xa30   : > { %6411 = vmatprep.subr.bf16.mxu1 %v6689_v0 }
 0xa33   : > { %6413 = vmatpush3.bf16.msra.mxu1 %v6412_v54 }
 0xaf9   : > { %v4423_v22 = vpop.f32.mrb[8].mxu1 }
 0xafa   : > { %v4424_v23 = vadd.f32 %v5539_v20, %v4423_v22  ;;  %v6103_v24 = vpop.f32.mrb[9].mxu1  ;;  %v5543_v22 = vld [vmem:[%s7570_s11] ss:$0 sm:$0xff] }
 0xafc   : > { %v4428_v25 = vsel %vm4427_vm1, %v4424_v23, 0.0 }
 0xafd   : > { %v4429_v26 = vrot.slane %v4428_v25, 4 }
 0xaff   : > { %v4430_v27 = vadd.f32 %v4429_v26, %v4428_v25 }
 0xb01   : > { %v4431_v29 = vrot.slane %v4430_v27, 2 }
 0xb03   : > { %v4432_v30 = vadd.f32 %v4431_v29, %v4430_v27 }
 0xb05   : > { %v4433_v31 = vrot.slane %v4432_v30, 1 }
 0xb07   : > { %v4434_v32 = vadd.f32 %v4433_v31, %v4432_v30 }
 0xb09   : > { %v4436_v33 = vmul.f32 0.125, %v4434_v32 }
 0xb0b   : > { %v4437_v9 = vsub.f32 %v4424_v23, %v4436_v33 }
 0xb0d   : > { %v4438_v15 = vmul.f32 %v4437_v9, %v4437_v9 }
 0xb0f   : > { %v4439_v21 = vsel %vm4427_vm1, %v4438_v15, 0.0 }
 0xb10   : > { %v4440_v28 = vrot.slane %v4439_v21, 4 }
 0xb12   : > { %v4441_v34 = vadd.f32 %v4440_v28, %v4439_v21 }
 0xb14   : > { %v4442_v35 = vrot.slane %v4441_v34, 2 }
 0xb16   : > { %v4443_v36 = vadd.f32 %v4442_v35, %v4441_v34 }
 0xb18   : > { %v4444_v37 = vrot.slane %v4443_v36, 1 }
 0xb1a   : > { %v4445_v38 = vadd.f32 %v4444_v37, %v4443_v36 }
 0xb1c   : > { %v4446_v39 = vmul.f32 0.125, %v4445_v38 }
 0xb1e   : > { %v4447_v40 = vadd.f32 1e-05, %v4446_v39 }
 0xb20   : > { %6507 = vrsqrt.f32 %v4447_v40 }
 0xb2a   : > { %v6508_v41 = vpop.eup %6507 }
 0xb2b   : > { %v4449_v42 = vmul.f32 %v6508_v41, %v4437_v9 }
 0xb2d   : > { %6121 = vmatmul.mubr.msk.f32.vlgmr.msra.gmra.mrb[16].mxu0 %vm4427_vm1, %v4449_v42  ;;  %4657 = vrot.lane.b32.xlu0 %v4449_v42, %s6692_s25  ;;  %s6693_s25 = smov [#allocation13]  }
 0xb2e   : > { %s6611_s27 = sshll.u32 %s6693_s25, 4  ;;  %s6612_s27 = int_to_ptr.vmem [resolvable:$false] %s6611_s27 }
 0xb2f   : > { %s6613_s13 = scalar_lea.vmem %s6612_s27, 256  ;;  %p6614_p2 = scmp.lt.s32.totalorder %s7514_s16, %s6612_s27 }
 0xb30   : > { %p6615_p4 = scmp.lt.s32.totalorder %s6613_s13, %s6607_s23 }
 0xb32   : > { %p6616_p6 = por %p6615_p4, %p6614_p2 }
 0xb34   : > { %p6617_p11 = pnand %p6616_p6, %p6610_p13 }
 0xb9f   : > { %v4658_v26 = vpop.permute.xlu0 %4657 }
 0xc00   : > { %v4527_v55 = vpop.f32.mrb[16].mxu0 }
 0xc01   : > { %v4531_v56 = vsel %vm4427_vm1, %v4527_v55, 0.0  ;;  %v6122_v57 = vpop.f32.mrb[17].mxu0 }
 0xc02   : > { %v4532_v59 = vrot.slane %v4531_v56, 4 }
 0xc04   : > { %v4533_v60 = vadd.f32 %v4532_v59, %v4531_v56 }
 0xc06   : > { %v4534_v61 = vrot.slane %v4533_v60, 2 }
 0xc08   : > { %v4535_v62 = vadd.f32 %v4534_v61, %v4533_v60 }
 0xc0a   : > { %v4536_v63 = vrot.slane %v4535_v62, 1 }
 0xc0c   : > { %v4537_v2 = vadd.f32 %v4536_v63, %v4535_v62 }
 0xc0e   : > { %v4538_v3 = vmul.f32 0.125, %v4537_v2 }
 0xc10   : > { %v4539_v4 = vsub.f32 %v4527_v55, %v4538_v3 }
 0xc12   : > { %v4540_v5 = vmul.f32 %v4539_v4, %v4539_v4 }
 0xc14   : > { %v4541_v6 = vsel %vm4427_vm1, %v4540_v5, 0.0 }
 0xc15   : > { %v4542_v0 = vrot.slane %v4541_v6, 4 }
 0xc17   : > { %v4543_v7 = vadd.f32 %v4542_v0, %v4541_v6 }
 0xc19   : > { %v4544_v10 = vrot.slane %v4543_v7, 2 }
 0xc1b   : > { %v4545_v11 = vadd.f32 %v4544_v10, %v4543_v7 }
 0xc1d   : > { %v4546_v12 = vrot.slane %v4545_v11, 1 }
 0xc1f   : > { %v4547_v13 = vadd.f32 %v4546_v12, %v4545_v11 }
 0xc21   : > { %v4548_v14 = vmul.f32 0.125, %v4547_v13 }
 0xc23   : > { %v4549_v16 = vadd.f32 1e-05, %v4548_v14 }
 0xc25   : > { %6509 = vrsqrt.f32 %v4549_v16 }
 0xc2f   : > { %v6510_v58 = vpop.eup %6509 }
 0xc30   : > { %v4551_v17 = vmul.f32 %v6510_v58, %v4539_v4 }
 0xc32   : > { %v4559_v1 = vmul.f32 %v5541_v8, %v4551_v17 }
 0xc34   : > { %v4567_v19 = vadd.f32 %v5542_v18, %v4559_v1 }
 0xc36   : > { %v4568_v20 = vmax.f32 %v4567_v19, 0.0 }
 0xc38   : > { %6140 = vmatmul.mubr.msk.f32.vlgmr.msra.gmra.mrb[10].mxu1 %vm4427_vm1, %v4568_v20 }
 0xd0b   : > { %v4653_v23 = vpop.f32.mrb[10].mxu1 }
 0xd0c   : > { %v4654_v24 = vadd.f32 %v5543_v22, %v4653_v23  ;;  %v6141_v25 = vpop.f32.mrb[11].mxu1 }
 0xd0e   : > { %v4660_v27 = vsel %vm4427_vm1, %v4654_v24, %v4658_v26 }
 0xd0f   : > { %4661 = vst [vmem:[%s389_s28] sm:$0xff] %v4660_v27 }
 0xd10   : > { %6620 = shalt.err (!%p6617_p11)
}
 0xd11   : > { %s6621_s19 = scalar_lea.hbm %s7512_s29, 128  ;;  %s6625_s21 = scalar_lea.hbm %s7599_s15, 256 }
 0xd12   : > { %p6622_p0 = scmp.ne.s32.totalorder %s7512_s29, %s6621_s19  ;;  %p6626_p8 = scmp.lt.u32.totalorder %s7512_s29, %s7599_s15 }
 0xd13   : > { %p6627_p10 = scmp.lt.u32.totalorder %s6625_s21, %s6621_s19  ;;  %p6629_p3 = scmp.lt.u32.totalorder %s6621_s19, %s7512_s29 }
 0xd14   : > { %p6623_p7 = pnand %p6622_p0, %p7600_p9 }
 0xd15   : > { %p6628_p1 = por %p6627_p10, %p6626_p8 }
 0xd16   : > { %p6624_p5 = pneg %p6623_p7 }
 0xd17   : > { %p6630_p12 = por %p6629_p3, %p6628_p1 }
 0xd19   : > { %p6631_p13 = pnand %p6630_p12, %p6624_p5 }
 0xd1b   : > { %6634 = shalt.err (!%p6631_p13)
}
 0xd1c   : > { %6426 = dma.vmem_to_hbm [thread:$0]  (%p7600_p9), %s7514_s16, 128, %s7512_s29, %s4663_s20  }
 0xd1d PF: > { %s7601_s22 = sld [smem:[#allocation85_spill]]  ;;  %s7602_s14 = sld [smem:[#allocation83_spill]] }
 0xd1e   : > { %s7603_s26 = sld [smem:[#allocation88_spill]] }
 0xd23   : > { %p6448_p2 = scmp.ge.s32.totalorder %s7601_s22, 2  ;;  %s4688_s18 = sand.u32 1, %s7602_s14  }
 0xd24   : > { %p7604_p4 = scmp.ne.s32.totalorder %s7603_s26, 0  ;;  %s4689_s23 = scalar_lea.sflag [#allocation9], %s4688_s18 }
 0xd26   : > { %p6439_p6 = pnand %p6448_p2, %p7604_p4 }
 0xd28   : > { %6664 = dma.done.wait (!%p6439_p6), %s4689_s23, 128  }
 0xd29   : > { %6666 = vsyncadd (!%p6439_p6), %s4689_s23, 4294967168  ;;  %s7605_s28 = sld [smem:[#allocation86_spill]]  ;;  %s7606_s25 = sld [smem:[#allocation84_spill]] }
 0xd2a   : > { %s7607_s27 = sld [smem:[#allocation87_spill]]  ;;  %s7608_s26 = smov %s6673_s0 }
 0xd2f   : > { %p30_p11 = scmp.ge.s32.totalorder %s7605_s28, 4   ;;  %s7609_s0 = smov %s7606_s25 }
 0xd31   :  { %32 = sbr.rel (!%p30_p11) target bundleno = 20 (0x14), region = 2792 }
 0xd38   :  { %4694 = vsyncpa [#allocation8], 1 }
 0xd39   :  { %4696 = vsyncpa [#allocation8 + $0x1], 1 }
 0xd3a   :  { %4697 = vsyncpa [#allocation11], 1 }
 0xd3b   :  { %4698 = vsyncpa [#allocation9], 1 }
 0xd3c   :  { %4700 = vsyncpa [#allocation9 + $0x1], 1 }
 0xd3d   :  { %4701 = vsyncmov [#allocation3] }
 0xd40   :  { %s4702_s17 = vpop.sfrf %4701 }
 0xd41   :  { %p5549_p9 = scmp.ne.s32.totalorder %s4702_s17, 0 }
 0xd43   :  { %4706 = shalt.err (%p5549_p9)  }

</bundles_post_ra>
